<compile_context>
chip_gen: v6e
topology: v6e:2x2x1
jax: 0.10.0
libtpu: 0.0.40
codegen_flags: <defaults>
</compile_context>

<pallas_src>
import functools

import jax
import jax.numpy as jnp
from jax.experimental import pallas as pl
from jax.experimental.pallas import tpu as pltpu


CAMERA_N = 121
BUTTONS_N = 8641
N_BUT_PAD = 8704                 # buttons lanes padded up to a multiple of 128 (68*128)
CV_PAD = 128                     # camera (121) + value (1) + 6 pad lanes
N_FUSED = N_BUT_PAD + CV_PAD     # 8832 fused output lanes
VALUE_COL = CAMERA_N             # value-head column inside the camera+value segment
NEG_BIG = -1e9                   # baked into padded buttons bias columns (finite, exp -> 0)


def _round_up(x, m):
    return (x + m - 1) // m * m


def _vmem_capacity_bytes():
    try:
        return int(pltpu.get_tpu_info().vmem_capacity_bytes)
    except Exception:
        return 64 * 1024 * 1024  # conservative default (v7x per-TensorCore VMEM)


def _plan(hiddim):
    """Generation-aware tile plan derived from VMEM capacity."""
    vmem = _vmem_capacity_bytes()
    if vmem >= 96 * 1024 * 1024:
        # v5e / v6e: 128 MiB physical VMEM -> big K window, generous scoped limit.
        tm_max, tk_max, vmem_limit = 256, 512, 96 * 1024 * 1024
    else:
        # v7x: 64 MiB per TensorCore -> halve the double-buffered weight window.
        tm_max, tk_max, vmem_limit = 256, 256, 60 * 1024 * 1024
    tk = min(tk_max, _round_up(hiddim, 128))
    Kp = _round_up(hiddim, tk)
    return tm_max, tk, Kp, vmem_limit


# ---------------------------------------------------------------------------
# Fused kernel: K-tiled GEMM + bias + (buttons log-softmax | camera log-softmax
#               + plain-linear value lane)
# ---------------------------------------------------------------------------
def _fused_heads_kernel(x_ref, w_ref, b_ref, o_but_ref, o_cv_ref, acc_ref):
    k = pl.program_id(1)

    @pl.when(k == 0)
    def _():
        acc_ref[...] = jnp.zeros_like(acc_ref)

    acc_ref[...] += jnp.dot(x_ref[...], w_ref[...],
                            preferred_element_type=jnp.float32)

    @pl.when(k == pl.num_programs(1) - 1)
    def _():
        y = acc_ref[...] + b_ref[...]

        # Buttons segment (lanes [0, 8704)): the 63 padded lanes carry a large
        # negative baked bias, so a plain unmasked log-softmax is correct — no
        # broadcasted_iota / where passes over the big tile.
        yb = y[:, :N_BUT_PAD]
        mb = jnp.max(yb, axis=-1, keepdims=True)
        lse_b = mb + jnp.log(jnp.sum(jnp.exp(yb - mb), axis=-1, keepdims=True))
        o_but_ref[...] = yb - lse_b

        # Camera + value segment (128 lanes): mask only this small block so the
        # value lane (col 121) bypasses the softmax and stays plain linear.
        ycv = y[:, N_BUT_PAD:]
        col = jax.lax.broadcasted_iota(jnp.int32, ycv.shape, 1)
        lcv = jnp.where(col < CAMERA_N, ycv, NEG_BIG)
        mc = jnp.max(lcv, axis=-1, keepdims=True)
        lse_c = mc + jnp.log(jnp.sum(jnp.exp(lcv - mc), axis=-1, keepdims=True))
        o_cv_ref[...] = jnp.where(col < CAMERA_N, lcv - lse_c, ycv)


def _fused_heads_call(xp, w, b, tm, tk, vmem_limit):
    Mp, Kp = xp.shape
    Np = w.shape[1]
    m_tiles = Mp // tm
    grid = (m_tiles, Kp // tk)

    cost = pl.CostEstimate(
        flops=2 * Mp * Kp * Np,
        transcendentals=Mp * Np,
        # Weight tiles are re-streamed from HBM once per M tile.
        bytes_accessed=(Mp * Kp * 2
                        + m_tiles * Kp * Np * 2
                        + Np * 4
                        + Mp * Np * 4),
    )

    # TODO(synk): for single-M-tile inference on v7x, sharding N across the two
    # TensorCores (split-softmax combine) would halve per-core weight streaming;
    # not implemented here.
    return pl.pallas_call(
        _fused_heads_kernel,
        out_shape=(jax.ShapeDtypeStruct((Mp, N_BUT_PAD), jnp.float32),
                   jax.ShapeDtypeStruct((Mp, CV_PAD), jnp.float32)),
        grid=grid,
        in_specs=[
            pl.BlockSpec((tm, tk), lambda i, k: (i, k)),   # activations (bf16)
            pl.BlockSpec((tk, Np), lambda i, k: (k, 0)),   # fused weights (bf16)
            pl.BlockSpec((1, Np), lambda i, k: (0, 0)),    # fused bias (f32)
        ],
        out_specs=(
            pl.BlockSpec((tm, N_BUT_PAD), lambda i, k: (i, 0)),
            pl.BlockSpec((tm, CV_PAD), lambda i, k: (i, 0)),
        ),
        scratch_shapes=[pltpu.VMEM((tm, Np), jnp.float32)],
        compiler_params=pltpu.CompilerParams(
            dimension_semantics=("parallel", "arbitrary"),
            vmem_limit_bytes=vmem_limit,
        ),
        cost_estimate=cost,
    )(xp, w, b)


# ---------------------------------------------------------------------------
# Jitted forward: latent (B, T, H) -> heads
# ---------------------------------------------------------------------------
@functools.partial(jax.jit, static_argnums=(3, 4, 5))
def _heads_forward(latent, w_fused, b_fused, tm_max, tk, vmem_limit):
    B, T, H = latent.shape
    M = B * T
    Kp = w_fused.shape[0]
    # bf16 activation block: round the M tile to a multiple of 16 (native bf16
    # sublane packing), not 8.
    tm = min(tm_max, _round_up(M, 16))
    Mp = _round_up(M, tm)

    # Only the (small) activations are padded per call; weights were padded once.
    xp = jnp.zeros((Mp, Kp), jnp.bfloat16)
    xp = xp.at[:M, :H].set(latent.reshape(M, H).astype(jnp.bfloat16))

    but, cv = _fused_heads_call(xp, w_fused, b_fused, tm, tk, vmem_limit)

    # TODO(synk): the :BUTTONS_N lane slice is a strided XLA copy; consumers that
    # can mask should take the padded (Mp, 8704) log-probs directly instead.
    buttons = but[:M, :BUTTONS_N].reshape(B, T, 1, BUTTONS_N)
    cam = cv[:M, :CAMERA_N].reshape(B, T, 1, CAMERA_N)
    vpred = cv[:M, VALUE_COL].reshape(B, T, 1)
    return {"pi_logits": {"camera": cam, "buttons": buttons}, "vpred": vpred}


# ---------------------------------------------------------------------------
# MinePolicy heads (deterministically initialized, synthetic weights)
# ---------------------------------------------------------------------------
class MinePolicyHeadsPallas:
    CAMERA_N = CAMERA_N
    BUTTONS_N = BUTTONS_N

    def __init__(self, hiddim, temperature=1.0, key=None):
        if key is None:
            key = jax.random.PRNGKey(0)
        self.hiddim = hiddim
        self.temperature = float(temperature)
        inv_temp = 1.0 / self.temperature

        k1, k2, k3 = jax.random.split(key, 3)
        scale = 1.0 / jnp.sqrt(jnp.float32(hiddim))

        # f32 master parameters (also used by the reference check).
        self.w_cam = jax.random.normal(k1, (hiddim, CAMERA_N), jnp.float32) * scale
        self.b_cam = jnp.zeros((CAMERA_N,), jnp.float32)
        self.w_but = jax.random.normal(k2, (hiddim, BUTTONS_N), jnp.float32) * scale
        self.b_but = jnp.zeros((BUTTONS_N,), jnp.float32)
        self.w_val = jax.random.normal(k3, (hiddim, 1), jnp.float32) * scale
        self.b_val = jnp.zeros((1,), jnp.float32)
        # TODO(synk): ScaledMSEHead's EWMA normalizer only affects loss/denormalize,
        # not forward(), so it is intentionally not modeled here.

        # Generation-aware tile plan (built once).
        self._tm_max, self._tk, Kp, self._vmem_limit = _plan(hiddim)

        # One fused, pre-padded bf16 weight / f32 bias block, built ONCE:
        #   lanes [0, 8641)      buttons logits  (pre-scaled by 1/temperature)
        #   lanes [8641, 8704)   padding         (bias = NEG_BIG -> exp underflows to 0)
        #   lanes [8704, 8825)   camera logits   (pre-scaled by 1/temperature)
        #   lane  8825           value head      (unscaled plain linear)
        #   lanes [8826, 8832)   padding         (masked in the 128-lane epilogue)
        w = jnp.zeros((Kp, N_FUSED), jnp.bfloat16)
        w = w.at[:hiddim, :BUTTONS_N].set((self.w_but * inv_temp).astype(jnp.bfloat16))
        w = w.at[:hiddim, N_BUT_PAD:N_BUT_PAD + CAMERA_N].set(
            (self.w_cam * inv_temp).astype(jnp.bfloat16))
        w = w.at[:hiddim, N_BUT_PAD + VALUE_COL].set(self.w_val[:, 0].astype(jnp.bfloat16))

        b = jnp.zeros((1, N_FUSED), jnp.float32)
        b = b.at[0, :BUTTONS_N].set(self.b_but * inv_temp)
        b = b.at[0, BUTTONS_N:N_BUT_PAD].set(NEG_BIG)
        b = b.at[0, N_BUT_PAD:N_BUT_PAD + CAMERA_N].set(self.b_cam * inv_temp)
        b = b.at[0, N_BUT_PAD + VALUE_COL].set(self.b_val[0])
        self._w_fused, self._b_fused = w, b

    def __call__(self, latent, state_in=None):
        """latent: (B, T, hiddim) -> ({'pi_logits': {...}, 'vpred': ...}, state_out)."""
        B, T, H = latent.shape
        assert H == self.hiddim
        latents = _heads_forward(latent, self._w_fused, self._b_fused,
                                 self._tm_max, self._tk, self._vmem_limit)
        state_out = [] if state_in is None else state_in
        return latents, state_out


# ---------------------------------------------------------------------------
# Pure-JAX reference (same bf16-rounded operands, f32 math) for verification
# ---------------------------------------------------------------------------
def _ref_heads(policy, latent):
    B, T, H = latent.shape
    x = latent.reshape(B * T, H).astype(jnp.bfloat16).astype(jnp.float32)
    w_cam = policy.w_cam.astype(jnp.bfloat16).astype(jnp.float32)
    w_but = policy.w_but.astype(jnp.bfloat16).astype(jnp.float32)
    w_val = policy.w_val.astype(jnp.bfloat16).astype(jnp.float32)

    def pi(w, b, n):
        y = (x @ w + b) / policy.temperature
        return jax.nn.log_softmax(y, axis=-1).reshape(B, T, 1, n)

    cam = pi(w_cam, policy.b_cam, CAMERA_N)
    but = pi(w_but, policy.b_but, BUTTONS_N)
    vpred = (x @ w_val + policy.b_val).reshape(B, T, 1)
    return cam, but, vpred


if __name__ == "__main__":
    B, T, HID = 2, 8, 32
    key = jax.random.PRNGKey(0)
    k_x, k_p = jax.random.split(key)
    latent = jax.random.normal(k_x, (B, T, HID), jnp.float32)

    policy = MinePolicyHeadsPallas(hiddim=HID, temperature=1.0, key=k_p)
    latents, state_out = policy(latent, state_in=None)
    latents = jax.block_until_ready(latents)

    cam = latents["pi_logits"]["camera"]
    but = latents["pi_logits"]["buttons"]
    vpred = latents["vpred"]

    assert cam.shape == (B, T, 1, 121)
    assert but.shape == (B, T, 1, 8641)
    assert vpred.shape == (B, T, 1)

    cam_ref, but_ref, vpred_ref = _ref_heads(policy, latent)
    assert jnp.allclose(cam, cam_ref, atol=1e-3, rtol=1e-3)
    assert jnp.allclose(but, but_ref, atol=1e-3, rtol=1e-3)
    assert jnp.allclose(vpred, vpred_ref, atol=1e-3, rtol=1e-3)

    print("KERNEL_OK")
</pallas_src>

<mosaic_0001>
module attributes {stable_mosaic.version = 11 : i64} {
  func.func @_fused_heads_kernel(%arg0: i32, %arg1: i32, %arg2: memref<16x128xbf16, #tpu.memory_space<vmem>>, %arg3: memref<128x8832xbf16, #tpu.memory_space<vmem>>, %arg4: memref<1x8832xf32, #tpu.memory_space<vmem>>, %arg5: memref<16x8704xf32, #tpu.memory_space<vmem>>, %arg6: memref<16x128xf32, #tpu.memory_space<vmem>>, %arg7: memref<16x8832xf32, #tpu.memory_space<vmem>>) attributes {dimension_semantics = [#tpu.dimension_semantics<parallel>, #tpu.dimension_semantics<arbitrary>], iteration_bounds = array<i64: 1, 1>, scalar_prefetch = 0 : i64, scratch_operands = 1 : i64, tpu.core_type = #tpu.core_type<tc>, window_params = [{transform_indices = @transform_0, window_bounds = array<i64: 16, 128>}, {transform_indices = @transform_1, window_bounds = array<i64: 128, 8832>}, {pipeline_mode = #tpu.pipeline_mode<synchronous>, transform_indices = @transform_2, window_bounds = array<i64: 1, 8832>}, {transform_indices = @transform_3, window_bounds = array<i64: 16, 8704>}, {transform_indices = @transform_4, window_bounds = array<i64: 16, 128>}]} {
    %c0_i32 = arith.constant 0 : i32
    %0 = arith.cmpi eq, %arg1, %c0_i32 : i32
    %1 = arith.extui %0 : i1 to i32
    %c0_i32_0 = arith.constant 0 : i32
    %2 = arith.cmpi ne, %1, %c0_i32_0 : i32
    scf.if %2 {
      %cst_10 = arith.constant 0.000000e+00 : f32
      %12 = vector.broadcast %cst_10 : f32 to vector<16x8832xf32>
      %c0_11 = arith.constant 0 : index
      %c0_12 = arith.constant 0 : index
      %13 = vector.load %arg7[%c0_11, %c0_12] : memref<16x8832xf32, #tpu.memory_space<vmem>>, vector<16x8832xf32>
      tpu.vector_store %arg7[%c0_11, %c0_12], %12 {strides = array<i32>} : memref<16x8832xf32, #tpu.memory_space<vmem>>, vector<16x8832xf32>,
    } else {
    }
    %c0 = arith.constant 0 : index
    %c0_1 = arith.constant 0 : index
    %3 = vector.load %arg7[%c0, %c0_1] : memref<16x8832xf32, #tpu.memory_space<vmem>>, vector<16x8832xf32>
    %c0_2 = arith.constant 0 : index
    %c0_3 = arith.constant 0 : index
    %4 = vector.load %arg2[%c0_2, %c0_3] : memref<16x128xbf16, #tpu.memory_space<vmem>>, vector<16x128xbf16>
    %c0_4 = arith.constant 0 : index
    %c0_5 = arith.constant 0 : index
    %5 = vector.load %arg3[%c0_4, %c0_5] : memref<128x8832xbf16, #tpu.memory_space<vmem>>, vector<128x8832xbf16>
    %cst = arith.constant dense<0.000000e+00> : vector<16x8832xf32>
    %6 = tpu.matmul %4, %5, %cst {dimension_numbers = #tpu.dot_dimension_numbers<[1], [0], [0], [1], [0, 0, 1, 1], [], []>} : vector<16x128xbf16>, vector<128x8832xbf16>, vector<16x8832xf32> -> vector<16x8832xf32>
    %7 = arith.addf %3, %6 : vector<16x8832xf32>
    %c0_6 = arith.constant 0 : index
    %c0_7 = arith.constant 0 : index
    %8 = vector.load %arg7[%c0_6, %c0_7] : memref<16x8832xf32, #tpu.memory_space<vmem>>, vector<16x8832xf32>
    tpu.vector_store %arg7[%c0_6, %c0_7], %7 {strides = array<i32>} : memref<16x8832xf32, #tpu.memory_space<vmem>>, vector<16x8832xf32>,
    %c0_i32_8 = arith.constant 0 : i32
    %9 = arith.cmpi eq, %arg1, %c0_i32_8 : i32
    %10 = arith.extui %9 : i1 to i32
    %c0_i32_9 = arith.constant 0 : i32
    %11 = arith.cmpi ne, %10, %c0_i32_9 : i32
    scf.if %11 {
      %c0_10 = arith.constant 0 : index
      %c0_11 = arith.constant 0 : index
      %12 = vector.load %arg7[%c0_10, %c0_11] : memref<16x8832xf32, #tpu.memory_space<vmem>>, vector<16x8832xf32>
      %c0_12 = arith.constant 0 : index
      %c0_13 = arith.constant 0 : index
      %13 = vector.load %arg4[%c0_12, %c0_13] : memref<1x8832xf32, #tpu.memory_space<vmem>>, vector<1x8832xf32>
      %14 = vector.broadcast %13 : vector<1x8832xf32> to vector<16x8832xf32>
      %15 = arith.addf %12, %14 : vector<16x8832xf32>
      %16 = vector.extract_strided_slice %15 {offsets = [0, 0], sizes = [16, 8704], strides = [1, 1]} : vector<16x8832xf32> to vector<16x8704xf32>
      %cst_14 = arith.constant dense<0xFF800000> : vector<16xf32>
      %17 = vector.multi_reduction <maximumf>, %16, %cst_14 [1] : vector<16x8704xf32> to vector<16xf32>
      %18 = vector.shape_cast %17 : vector<16xf32> to vector<16x1xf32>
      %19 = vector.broadcast %18 : vector<16x1xf32> to vector<16x8704xf32>
      %20 = arith.subf %16, %19 : vector<16x8704xf32>
      %21 = math.exp %20 : vector<16x8704xf32>
      %cst_15 = arith.constant dense<0.000000e+00> : vector<16xf32>
      %22 = vector.multi_reduction <add>, %21, %cst_15 [1] : vector<16x8704xf32> to vector<16xf32>
      %23 = vector.shape_cast %22 : vector<16xf32> to vector<16x1xf32>
      %24 = math.log %23 : vector<16x1xf32>
      %25 = arith.addf %18, %24 : vector<16x1xf32>
      %26 = vector.broadcast %25 : vector<16x1xf32> to vector<16x8704xf32>
      %27 = arith.subf %16, %26 : vector<16x8704xf32>
      %c0_16 = arith.constant 0 : index
      %c0_17 = arith.constant 0 : index
      %28 = vector.load %arg5[%c0_16, %c0_17] : memref<16x8704xf32, #tpu.memory_space<vmem>>, vector<16x8704xf32>
      tpu.vector_store %arg5[%c0_16, %c0_17], %27 {strides = array<i32>} : memref<16x8704xf32, #tpu.memory_space<vmem>>, vector<16x8704xf32>,
      %29 = vector.extract_strided_slice %15 {offsets = [0, 8704], sizes = [16, 128], strides = [1, 1]} : vector<16x8832xf32> to vector<16x128xf32>
      %30 = tpu.iota {dimensions = array<i32: 1>} : vector<16x128xi32>
      %c121_i32 = arith.constant 121 : i32
      %31 = vector.broadcast %c121_i32 : i32 to vector<16x128xi32>
      %32 = arith.cmpi slt, %30, %31 : vector<16x128xi32>
      %cst_18 = arith.constant -1.000000e+09 : f32
      %33 = vector.broadcast %cst_18 : f32 to vector<16x128xf32>
      %34 = arith.select %32, %29, %33 : vector<16x128xi1>, vector<16x128xf32>
      %cst_19 = arith.constant dense<0xFF800000> : vector<16xf32>
      %35 = vector.multi_reduction <maximumf>, %34, %cst_19 [1] : vector<16x128xf32> to vector<16xf32>
      %36 = vector.shape_cast %35 : vector<16xf32> to vector<16x1xf32>
      %37 = vector.broadcast %36 : vector<16x1xf32> to vector<16x128xf32>
      %38 = arith.subf %34, %37 : vector<16x128xf32>
      %39 = math.exp %38 : vector<16x128xf32>
      %cst_20 = arith.constant dense<0.000000e+00> : vector<16xf32>
      %40 = vector.multi_reduction <add>, %39, %cst_20 [1] : vector<16x128xf32> to vector<16xf32>
      %41 = vector.shape_cast %40 : vector<16xf32> to vector<16x1xf32>
      %42 = math.log %41 : vector<16x1xf32>
      %43 = arith.addf %36, %42 : vector<16x1xf32>
      %c121_i32_21 = arith.constant 121 : i32
      %44 = vector.broadcast %c121_i32_21 : i32 to vector<16x128xi32>
      %45 = arith.cmpi slt, %30, %44 : vector<16x128xi32>
      %46 = vector.broadcast %43 : vector<16x1xf32> to vector<16x128xf32>
      %47 = arith.subf %34, %46 : vector<16x128xf32>
      %48 = arith.select %45, %47, %29 : vector<16x128xi1>, vector<16x128xf32>
      %c0_22 = arith.constant 0 : index
      %c0_23 = arith.constant 0 : index
      %49 = vector.load %arg6[%c0_22, %c0_23] : memref<16x128xf32, #tpu.memory_space<vmem>>, vector<16x128xf32>
      tpu.vector_store %arg6[%c0_22, %c0_23], %48 {strides = array<i32>} : memref<16x128xf32, #tpu.memory_space<vmem>>, vector<16x128xf32>,
    } else {
    }
    return
  }
  func.func @transform_0(%arg0: i32, %arg1: i32) -> (i32, i32) {
    %c0_i32 = arith.constant 0 : i32
    return %arg0, %arg1 : i32, i32
  }
  func.func @transform_1(%arg0: i32, %arg1: i32) -> (i32, i32) {
    %c0_i32 = arith.constant 0 : i32
    %c0_i32_0 = arith.constant 0 : i32
    return %arg1, %c0_i32 : i32, i32
  }
  func.func @transform_2(%arg0: i32, %arg1: i32) -> (i32, i32) {
    %c0_i32 = arith.constant 0 : i32
    %c0_i32_0 = arith.constant 0 : i32
    %c0_i32_1 = arith.constant 0 : i32
    return %c0_i32, %c0_i32_0 : i32, i32
  }
  func.func @transform_3(%arg0: i32, %arg1: i32) -> (i32, i32) {
    %c0_i32 = arith.constant 0 : i32
    %c0_i32_0 = arith.constant 0 : i32
    return %arg0, %c0_i32 : i32, i32
  }
  func.func @transform_4(%arg0: i32, %arg1: i32) -> (i32, i32) {
    %c0_i32 = arith.constant 0 : i32
    %c0_i32_0 = arith.constant 0 : i32
    return %arg0, %c0_i32 : i32, i32
  }
}

</mosaic_0001>

<bundles_post_ra>
// kernel: squeeze.1
= control target key start
LH: loop header
LB: loop body
LE: loop exit
PB: predicated region body
PF: predicated region fallthrough
CT: control target
= control target key end

     0   :  { %s77_s0 = inlined_call_operand.vmem [shape: f32[16], index: 0, kind: input, shape index: {}]   ;;  %s78_s1 = inlined_call_operand.hbm [shape: f32[2,8,1], index: 1, kind: output, shape index: {}]  }
   0x1   :  { %v6_v0 = vld [vmem:[%s77_s0] sm:$0x1] }
   0x2   :  { %2 = vsyncpa [#allocation1], 0  ;;  %7 = vst [vmem:[#allocation3] sm:$0x1] %v6_v0  ;;  %vm9_vm0 = vcmask 64512   ;;  %s59_s0 = smov 120  }
   0x3   :  { %s60_s8 = smov [#allocation0]  }
   0x4   :  { %s29_s9 = sshll.u32 %s60_s8, 4  ;;  %s30_s9 = int_to_ptr.vmem [resolvable:$true] %s29_s9 }
   0x5   :  { %s37_s10 = scalar_lea.vmem %s30_s9, 32  ;;  %p42_p1 = scmp.lt.s32.totalorder %s30_s9, %s30_s9 }
   0x6   :  { %p38_p0 = scmp.ne.s32.totalorder %s30_s9, %s37_s10  ;;  %p43_p2 = scmp.lt.s32.totalorder %s37_s10, %s37_s10 }
   0x8   :  { %p44_p3 = por %p43_p2, %p42_p1 }
   0x9   :  { %v11_v1 = vld [vmem:[#allocation3] sm:$0x1]  }
   0xa   :  { %v8_v2 = vld [vmem:[#allocation3] sm:$0x1]   ;;  %12 = vrot.lane.b32.xlu0 %v11_v1, %s59_s0  ;;  %p45_p4 = pnand %p44_p3, %p38_p0 }
   0xb   :  { %10 = vst.msk [vmem:[#allocation2] sm:$0x1] %vm9_vm0, %v8_v2  }
  0x7c   :  { %v13_v3 = vpop.permute.xlu0 %12  }
  0x7d   :  { %16 = vst.msk [vmem:[#allocation2 + $0x1] sm:$0x1] %vm9_vm0, %v13_v3  }
  0x84   :  { %v21_v4 = vld [vmem:[#allocation2] sm:$0x3] }
  0x85   :  { %24 = vst [vmem:[#allocation0] sm:$0x3] %v21_v4 }
  0x86   :  { %48 = shalt.err (!%p45_p4)
}
  0x87   :  { %32 = dma.vmem_to_hbm [thread:$0]  %s30_s9, 32, %s78_s1, [#allocation1]  }
  0x88   :  { %57 = dma.done.wait [#allocation1], 32  }
  0x89   :  { %58 = vsyncadd [#allocation1], 4294967264 }
  0x8a   :  { %34 = vsyncpa [#allocation1], 1 }

// kernel: _heads_forward.1
= control target key start
LH: loop header
LB: loop body
LE: loop exit
PB: predicated region body
PF: predicated region fallthrough
CT: control target
= control target key end

     0   :  { %10 = vsyncpa [#allocation4], 0  ;;  %s10501_s0 = inlined_call_operand.vmem [shape: bf16[16,128], index: 0, kind: input, shape index: {}]   ;;  %s10502_s1 = inlined_call_operand.hbm [shape: bf16[128,8832], index: 1, kind: input, shape index: {}]   ;;  %s10503_s2 = inlined_call_operand.hbm [shape: f32[1,8832], index: 2, kind: input, shape index: {}]   ;;  %s10504_s3 = inlined_call_operand.vmem [shape: f32[16,8704], index: 3, kind: output, shape index: {0}]   ;;  %s10505_s4 = inlined_call_operand.vmem [shape: f32[16,128], index: 4, kind: output, shape index: {1}]  }
   0x1   :  { %11 = vsyncpa [#allocation6], 0  ;;  %s8828_s15 = smov [#allocation3]  }
   0x2   :  { %s19_s16 = sshll.u32 %s8828_s15, 4  ;;  %s20_s16 = int_to_ptr.vmem [resolvable:$true] %s19_s16 }
   0x3   :  { %s8792_s17 = scalar_lea.vmem %s20_s16, 70656  ;;  %p8797_p1 = scmp.lt.s32.totalorder %s20_s16, %s20_s16 }
   0x4   :  { %p8793_p0 = scmp.ne.s32.totalorder %s20_s16, %s8792_s17  ;;  %p8798_p2 = scmp.lt.s32.totalorder %s8792_s17, %s8792_s17 }
   0x6   :  { %p8799_p3 = por %p8798_p2, %p8797_p1 }
   0x8   :  { %p8800_p4 = pnand %p8799_p3, %p8793_p0 }
   0xa   :  { %8803 = shalt.err (!%p8800_p4)
}
   0xb   :  { %s8829_s18 = smov 4416   ;;  %s8830_s19 = smov 276  }
   0xc   :  { %25 = dma.hbm_to_vmem [thread:$0]  %s10502_s1, 70656, %s20_s16, [#allocation4], %s8829_s18, %s8829_s18, %s8830_s19  }
   0xd   :  { %s8831_s22 = smov [#allocation5]  }
   0xe   :  { %s32_s23 = sshll.u32 %s8831_s22, 4  ;;  %s33_s23 = int_to_ptr.vmem [resolvable:$true] %s32_s23 }
   0xf   :  { %s8812_s24 = scalar_lea.vmem %s33_s23, 1104  ;;  %s8816_s25 = scalar_lea.vmem %s33_s23, 1120 }
  0x10   :  { %p8813_p5 = scmp.ne.s32.totalorder %s33_s23, %s8812_s24  ;;  %p8817_p6 = scmp.lt.s32.totalorder %s33_s23, %s33_s23 }
  0x11   :  { %p8818_p7 = scmp.lt.s32.totalorder %s8816_s25, %s8812_s24 }
  0x13   :  { %p8819_p8 = por %p8818_p7, %p8817_p6 }
  0x15   :  { %p8820_p9 = pnand %p8819_p8, %p8813_p5 }
  0x17   :  { %8823 = shalt.err (!%p8820_p9)
}
  0x18   :  { %35 = dma.hbm_to_vmem [thread:$0]  %s10503_s2, 1104, %s33_s23, [#allocation6]  }
  0x19   :  { %8824 = dma.done.wait [#allocation4], 70656  }
  0x1a   :  { %8825 = vsyncadd [#allocation4], 4294896640 }
  0x1b   :  { %8826 = dma.done.wait [#allocation6], 1104  }
  0x1c   :  { %8827 = vsyncadd [#allocation6], 4294966192  ;;  %v8832_v0 = vmov 0   ;;  %v7672_v1 = vld [vmem:[#allocation3 + $0xf1c] ss:$276 sps:$4 sm:$0xff]   ;;  %v8871_v35 = vld [vmem:[%s10501_s0] sm:$0xff]  }
  0x1d   :  { %3691 = vmatprep.mubr.bf16.mxu0 %v8832_v0  ;;  %3734 = vmatprep.mubr.bf16.mxu1 %v8832_v0  ;;  %v7674_v2 = vld [vmem:[#allocation3 + $0xf24] ss:$276 sps:$4 sm:$0xff]   ;;  %v7677_v4 = vld [vmem:[#allocation3 + $0xf20] ss:$276 sps:$4 sm:$0xff]   ;;  %v7680_v6 = vld [vmem:[#allocation3 + $0xcfc] ss:$276 sps:$4 sm:$0xff]  }
  0x1e   :  { %3659 = vmatprep.subr.bf16.mxu0 %v7672_v1  ;;  %v7676_v3 = vld [vmem:[#allocation3 + $0xf18] ss:$276 sps:$4 sm:$0xff]   ;;  %3702 = vmatprep.subr.bf16.mxu1 %v7674_v2  ;;  %v7678_v5 = vld [vmem:[#allocation3 + $0xcf4] ss:$276 sps:$4 sm:$0xff]   ;;  %v7682_v7 = vld [vmem:[#allocation3 + $0xcf0] ss:$276 sps:$4 sm:$0xff]  }
  0x1f   :  { %3660 = vmatpush1.bf16.msra.mxu0 %v7676_v3  ;;  %3703 = vmatpush1.bf16.msra.mxu1 %v7677_v4  ;;  %v7683_v8 = vld [vmem:[#allocation3 + $0xcf8] ss:$276 sps:$4 sm:$0xff]   ;;  %v7686_v10 = vld [vmem:[#allocation3 + $0xad4] ss:$276 sps:$4 sm:$0xff]   ;;  %v7689_v12 = vld [vmem:[#allocation3 + $0xad0] ss:$276 sps:$4 sm:$0xff]  }
  0x20   :  { %3661 = vmatprep.subr.bf16.mxu0 %v7678_v5  ;;  %3704 = vmatprep.subr.bf16.mxu1 %v7680_v6  ;;  %v7684_v9 = vld [vmem:[#allocation3 + $0xacc] ss:$276 sps:$4 sm:$0xff]   ;;  %v7688_v11 = vld [vmem:[#allocation3 + $0xac8] ss:$276 sps:$4 sm:$0xff]   ;;  %v7690_v13 = vld [vmem:[#allocation3 + $0x8a4] ss:$276 sps:$4 sm:$0xff]  }
  0x21   :  { %v7692_v14 = vld [vmem:[#allocation3 + $0x8ac] ss:$276 sps:$4 sm:$0xff]   ;;  %v7695_v16 = vld [vmem:[#allocation3 + $0x8a8] ss:$276 sps:$4 sm:$0xff]   ;;  %v7698_v18 = vld [vmem:[#allocation3 + $0x684] ss:$276 sps:$4 sm:$0xff]  }
  0x22   :  { %v7694_v15 = vld [vmem:[#allocation3 + $0x8a0] ss:$276 sps:$4 sm:$0xff]   ;;  %v7696_v17 = vld [vmem:[#allocation3 + $0x67c] ss:$276 sps:$4 sm:$0xff]   ;;  %v7700_v19 = vld [vmem:[#allocation3 + $0x678] ss:$276 sps:$4 sm:$0xff]  }
  0x23   :  { %3662 = vmatpush1.bf16.msra.mxu0 %v7682_v7  ;;  %3705 = vmatpush1.bf16.msra.mxu1 %v7683_v8  ;;  %v7701_v20 = vld [vmem:[#allocation3 + $0x680] ss:$276 sps:$4 sm:$0xff]   ;;  %v7704_v22 = vld [vmem:[#allocation3 + $0x45c] ss:$276 sps:$4 sm:$0xff]   ;;  %v7707_v24 = vld [vmem:[#allocation3 + $0x458] ss:$276 sps:$4 sm:$0xff]  }
  0x24   :  { %3663 = vmatprep.subr.bf16.mxu0 %v7684_v9  ;;  %3706 = vmatprep.subr.bf16.mxu1 %v7686_v10  ;;  %v7702_v21 = vld [vmem:[#allocation3 + $0x454] ss:$276 sps:$4 sm:$0xff]   ;;  %v7706_v23 = vld [vmem:[#allocation3 + $0x450] ss:$276 sps:$4 sm:$0xff]   ;;  %v7708_v25 = vld [vmem:[#allocation3 + $0x22c] ss:$276 sps:$4 sm:$0xff]  }
  0x25   :  { %v7710_v26 = vld [vmem:[#allocation3 + $0x234] ss:$276 sps:$4 sm:$0xff]   ;;  %v7713_v28 = vld [vmem:[#allocation3 + $0x230] ss:$276 sps:$4 sm:$0xff]   ;;  %v7716_v30 = vld [vmem:[#allocation3 + $0xc] ss:$276 sps:$4 sm:$0xff]  }
  0x26   :  { %v7712_v27 = vld [vmem:[#allocation3 + $0x228] ss:$276 sps:$4 sm:$0xff]   ;;  %v7714_v29 = vld [vmem:[#allocation3 + $0x4] ss:$276 sps:$4 sm:$0xff]   ;;  %v7718_v31 = vld [vmem:[#allocation3] ss:$276 sps:$4 sm:$0xff]  }
  0x27   :  { %3664 = vmatpush1.bf16.msra.mxu0 %v7688_v11  ;;  %3707 = vmatpush1.bf16.msra.mxu1 %v7689_v12  ;;  %v7719_v32 = vld [vmem:[#allocation3 + $0x8] ss:$276 sps:$4 sm:$0xff]   ;;  %v7723_v33 = vld [vmem:[#allocation3 + $0xf2c] ss:$276 sps:$4 sm:$0xff]   ;;  %v7724_v37 = vld [vmem:[#allocation3 + $0xf30] ss:$276 sps:$4 sm:$0xff]  }
  0x28   :  { %3665 = vmatprep.subr.bf16.mxu0 %v7690_v13  ;;  %3708 = vmatprep.subr.bf16.mxu1 %v7692_v14  ;;  %v7726_v34 = vld [vmem:[#allocation3 + $0xf34] ss:$276 sps:$4 sm:$0xff]   ;;  %v7729_v38 = vld [vmem:[#allocation3 + $0xd04] ss:$276 sps:$4 sm:$0xff]   ;;  %v7732_v39 = vld [vmem:[#allocation3 + $0xd0c] ss:$276 sps:$4 sm:$0xff]  }
  0x29   :  { %v7721_v36 = vld [vmem:[#allocation3 + $0xf28] ss:$276 sps:$4 sm:$0xff]   ;;  %v7727_v40 = vld [vmem:[#allocation3 + $0xd00] ss:$276 sps:$4 sm:$0xff]   ;;  %v7738_v43 = vld [vmem:[#allocation3 + $0xae4] ss:$276 sps:$4 sm:$0xff]  }
  0x2a   :  { %v7730_v41 = vld [vmem:[#allocation3 + $0xd08] ss:$276 sps:$4 sm:$0xff]   ;;  %v7733_v44 = vld [vmem:[#allocation3 + $0xad8] ss:$276 sps:$4 sm:$0xff]   ;;  %v7736_v45 = vld [vmem:[#allocation3 + $0xae0] ss:$276 sps:$4 sm:$0xff]  }
  0x2b   :  { %3666 = vmatpush1.bf16.msra.mxu0 %v7694_v15  ;;  %3709 = vmatpush1.bf16.msra.mxu1 %v7695_v16  ;;  %v7735_v42 = vld [vmem:[#allocation3 + $0xadc] ss:$276 sps:$4 sm:$0xff]   ;;  %v7741_v46 = vld [vmem:[#allocation3 + $0x8b4] ss:$276 sps:$4 sm:$0xff]   ;;  %v7742_v49 = vld [vmem:[#allocation3 + $0x8b8] ss:$276 sps:$4 sm:$0xff]  }
  0x2c   :  { %3667 = vmatprep.subr.bf16.mxu0 %v7696_v17  ;;  %3710 = vmatprep.subr.bf16.mxu1 %v7698_v18  ;;  %v7744_v47 = vld [vmem:[#allocation3 + $0x8bc] ss:$276 sps:$4 sm:$0xff]   ;;  %v7747_v50 = vld [vmem:[#allocation3 + $0x68c] ss:$276 sps:$4 sm:$0xff]   ;;  %v7750_v51 = vld [vmem:[#allocation3 + $0x694] ss:$276 sps:$4 sm:$0xff]  }
  0x2d   :  { %v7739_v48 = vld [vmem:[#allocation3 + $0x8b0] ss:$276 sps:$4 sm:$0xff]   ;;  %v7745_v52 = vld [vmem:[#allocation3 + $0x688] ss:$276 sps:$4 sm:$0xff]   ;;  %v7756_v55 = vld [vmem:[#allocation3 + $0x46c] ss:$276 sps:$4 sm:$0xff]  }
  0x2e   :  { %v7748_v53 = vld [vmem:[#allocation3 + $0x690] ss:$276 sps:$4 sm:$0xff]   ;;  %v7751_v56 = vld [vmem:[#allocation3 + $0x460] ss:$276 sps:$4 sm:$0xff]   ;;  %v7754_v57 = vld [vmem:[#allocation3 + $0x468] ss:$276 sps:$4 sm:$0xff]  }
  0x2f   :  { %3668 = vmatpush1.bf16.msra.mxu0 %v7700_v19  ;;  %3711 = vmatpush1.bf16.msra.mxu1 %v7701_v20  ;;  %v7753_v54 = vld [vmem:[#allocation3 + $0x464] ss:$276 sps:$4 sm:$0xff]   ;;  %v7759_v58 = vld [vmem:[#allocation3 + $0x23c] ss:$276 sps:$4 sm:$0xff]   ;;  %v7760_v61 = vld [vmem:[#allocation3 + $0x240] ss:$276 sps:$4 sm:$0xff]  }
  0x30   :  { %3669 = vmatprep.subr.bf16.mxu0 %v7702_v21  ;;  %3712 = vmatprep.subr.bf16.mxu1 %v7704_v22  ;;  %v7762_v59 = vld [vmem:[#allocation3 + $0x244] ss:$276 sps:$4 sm:$0xff]   ;;  %v7765_v62 = vld [vmem:[#allocation3 + $0x14] ss:$276 sps:$4 sm:$0xff]   ;;  %v7768_v63 = vld [vmem:[#allocation3 + $0x1c] ss:$276 sps:$4 sm:$0xff]  }
  0x31   :  { %v7757_v60 = vld [vmem:[#allocation3 + $0x238] ss:$276 sps:$4 sm:$0xff]   ;;  %v7763_v1 = vld [vmem:[#allocation3 + $0x10] ss:$276 sps:$4 sm:$0xff]   ;;  %v7772_v6 = vld [vmem:[#allocation3 + $0xf40] ss:$276 sps:$4 sm:$0xff]  }
  0x32   :  { %v7766_v2 = vld [vmem:[#allocation3 + $0x18] ss:$276 sps:$4 sm:$0xff]   ;;  %v7771_v3 = vld [vmem:[#allocation3 + $0xf3c] ss:$276 sps:$4 sm:$0xff]   ;;  %v7777_v7 = vld [vmem:[#allocation3 + $0xd14] ss:$276 sps:$4 sm:$0xff]  }
  0x33   :  { %3670 = vmatpush1.bf16.msra.mxu0 %v7706_v23  ;;  %3713 = vmatpush1.bf16.msra.mxu1 %v7707_v24  ;;  %v7774_v4 = vld [vmem:[#allocation3 + $0xf44] ss:$276 sps:$4 sm:$0xff]   ;;  %v7780_v8 = vld [vmem:[#allocation3 + $0xd1c] ss:$276 sps:$4 sm:$0xff]   ;;  %v7783_v11 = vld [vmem:[#allocation3 + $0xaec] ss:$276 sps:$4 sm:$0xff]  }
  0x34   :  { %3671 = vmatprep.subr.bf16.mxu0 %v7708_v25  ;;  %3714 = vmatprep.subr.bf16.mxu1 %v7710_v26  ;;  %v7769_v5 = vld [vmem:[#allocation3 + $0xf38] ss:$276 sps:$4 sm:$0xff]   ;;  %v7775_v9 = vld [vmem:[#allocation3 + $0xd10] ss:$276 sps:$4 sm:$0xff]   ;;  %v7786_v12 = vld [vmem:[#allocation3 + $0xaf4] ss:$276 sps:$4 sm:$0xff]  }
  0x35   :  { %v7778_v10 = vld [vmem:[#allocation3 + $0xd18] ss:$276 sps:$4 sm:$0xff]   ;;  %v7781_v13 = vld [vmem:[#allocation3 + $0xae8] ss:$276 sps:$4 sm:$0xff]   ;;  %v7784_v14 = vld [vmem:[#allocation3 + $0xaf0] ss:$276 sps:$4 sm:$0xff]  }
  0x36   :  { %v7789_v15 = vld [vmem:[#allocation3 + $0x8c4] ss:$276 sps:$4 sm:$0xff]   ;;  %v7792_v16 = vld [vmem:[#allocation3 + $0x8cc] ss:$276 sps:$4 sm:$0xff]   ;;  %v7790_v18 = vld [vmem:[#allocation3 + $0x8c8] ss:$276 sps:$4 sm:$0xff]  }
  0x37   :  { %3672 = vmatpush1.bf16.msra.mxu0 %v7712_v27  ;;  %3715 = vmatpush1.bf16.msra.mxu1 %v7713_v28  ;;  %v7787_v17 = vld [vmem:[#allocation3 + $0x8c0] ss:$276 sps:$4 sm:$0xff]   ;;  %v7795_v19 = vld [vmem:[#allocation3 + $0x69c] ss:$276 sps:$4 sm:$0xff]   ;;  %v7798_v20 = vld [vmem:[#allocation3 + $0x6a4] ss:$276 sps:$4 sm:$0xff]  }
  0x38   :  { %3673 = vmatprep.subr.bf16.mxu0 %v7714_v29  ;;  %3716 = vmatprep.subr.bf16.mxu1 %v7716_v30  ;;  %v7793_v21 = vld [vmem:[#allocation3 + $0x698] ss:$276 sps:$4 sm:$0xff]   ;;  %v7796_v22 = vld [vmem:[#allocation3 + $0x6a0] ss:$276 sps:$4 sm:$0xff]   ;;  %v7804_v24 = vld [vmem:[#allocation3 + $0x47c] ss:$276 sps:$4 sm:$0xff]  }
  0x39   :  { %v7801_v23 = vld [vmem:[#allocation3 + $0x474] ss:$276 sps:$4 sm:$0xff]   ;;  %v7799_v25 = vld [vmem:[#allocation3 + $0x470] ss:$276 sps:$4 sm:$0xff]   ;;  %v7802_v26 = vld [vmem:[#allocation3 + $0x478] ss:$276 sps:$4 sm:$0xff]  }
  0x3a   :  { %v7807_v27 = vld [vmem:[#allocation3 + $0x24c] ss:$276 sps:$4 sm:$0xff]   ;;  %v7810_v28 = vld [vmem:[#allocation3 + $0x254] ss:$276 sps:$4 sm:$0xff]   ;;  %v7808_v30 = vld [vmem:[#allocation3 + $0x250] ss:$276 sps:$4 sm:$0xff]  }
  0x3b   :  { %3674 = vmatpush1.bf16.msra.mxu0 %v7718_v31  ;;  %3717 = vmatpush1.bf16.msra.mxu1 %v7719_v32  ;;  %v7805_v29 = vld [vmem:[#allocation3 + $0x248] ss:$276 sps:$4 sm:$0xff]   ;;  %v7813_v31 = vld [vmem:[#allocation3 + $0x24] ss:$276 sps:$4 sm:$0xff]   ;;  %v7816_v32 = vld [vmem:[#allocation3 + $0x2c] ss:$276 sps:$4 sm:$0xff]  }
  0x3c   :  { %3745 = vmatprep.subr.bf16.mxu0 %v7723_v33  ;;  %3788 = vmatprep.subr.bf16.mxu1 %v7726_v34  ;;  %v7811_v33 = vld [vmem:[#allocation3 + $0x20] ss:$276 sps:$4 sm:$0xff]   ;;  %v7814_v34 = vld [vmem:[#allocation3 + $0x28] ss:$276 sps:$4 sm:$0xff]   ;;  %vm8834_vm0 = vmmov 0  }
  0x3e   :  { %3692 = vmatmul.mubr.bf16.vlgmr.msra.gmra.mxu0 %v8871_v35  ;;  %3735 = vmatmul.mubr.bf16.vlgmr.msra.gmra.mxu1 %v8871_v35 }
  0x3f   :  { %3746 = vmatpush1.bf16.msra.mxu0 %v7721_v36  ;;  %3789 = vmatpush1.bf16.msra.mxu1 %v7724_v37  ;;  %v7819_v36 = vld [vmem:[#allocation3 + $0xf4c] ss:$276 sps:$4 sm:$0xff]   ;;  %v7822_v37 = vld [vmem:[#allocation3 + $0xf54] ss:$276 sps:$4 sm:$0xff]  }
  0x40   :  { %3747 = vmatprep.subr.bf16.mxu0 %v7729_v38  ;;  %3790 = vmatprep.subr.bf16.mxu1 %v7732_v39  ;;  %v7817_v38 = vld [vmem:[#allocation3 + $0xf48] ss:$276 sps:$4 sm:$0xff]   ;;  %v7820_v39 = vld [vmem:[#allocation3 + $0xf50] ss:$276 sps:$4 sm:$0xff]  }
  0x41   :  { %3777 = vmatprep.mubr.bf16.mxu0 %v8832_v0  ;;  %3820 = vmatprep.mubr.bf16.mxu1 %v8832_v0 }
  0x43   :  { %3748 = vmatpush1.bf16.msra.mxu0 %v7727_v40  ;;  %3791 = vmatpush1.bf16.msra.mxu1 %v7730_v41  ;;  %v7825_v40 = vld [vmem:[#allocation3 + $0xd24] ss:$276 sps:$4 sm:$0xff]   ;;  %v7828_v41 = vld [vmem:[#allocation3 + $0xd2c] ss:$276 sps:$4 sm:$0xff]  }
  0x44   :  { %3749 = vmatprep.subr.bf16.mxu0 %v7735_v42  ;;  %3792 = vmatprep.subr.bf16.mxu1 %v7738_v43  ;;  %v7823_v42 = vld [vmem:[#allocation3 + $0xd20] ss:$276 sps:$4 sm:$0xff]   ;;  %v7826_v43 = vld [vmem:[#allocation3 + $0xd28] ss:$276 sps:$4 sm:$0xff]  }
  0x47   :  { %3750 = vmatpush1.bf16.msra.mxu0 %v7733_v44  ;;  %3793 = vmatpush1.bf16.msra.mxu1 %v7736_v45  ;;  %v7831_v44 = vld [vmem:[#allocation3 + $0xafc] ss:$276 sps:$4 sm:$0xff]   ;;  %v7834_v45 = vld [vmem:[#allocation3 + $0xb04] ss:$276 sps:$4 sm:$0xff]  }
  0x48   :  { %3751 = vmatprep.subr.bf16.mxu0 %v7741_v46  ;;  %3794 = vmatprep.subr.bf16.mxu1 %v7744_v47  ;;  %v7829_v46 = vld [vmem:[#allocation3 + $0xaf8] ss:$276 sps:$4 sm:$0xff]   ;;  %v7832_v47 = vld [vmem:[#allocation3 + $0xb00] ss:$276 sps:$4 sm:$0xff]  }
  0x4b   :  { %3752 = vmatpush1.bf16.msra.mxu0 %v7739_v48  ;;  %3795 = vmatpush1.bf16.msra.mxu1 %v7742_v49  ;;  %v7837_v48 = vld [vmem:[#allocation3 + $0x8d4] ss:$276 sps:$4 sm:$0xff]   ;;  %v7840_v49 = vld [vmem:[#allocation3 + $0x8dc] ss:$276 sps:$4 sm:$0xff]  }
  0x4c   :  { %3753 = vmatprep.subr.bf16.mxu0 %v7747_v50  ;;  %3796 = vmatprep.subr.bf16.mxu1 %v7750_v51  ;;  %v7835_v50 = vld [vmem:[#allocation3 + $0x8d0] ss:$276 sps:$4 sm:$0xff]   ;;  %v7838_v51 = vld [vmem:[#allocation3 + $0x8d8] ss:$276 sps:$4 sm:$0xff]  }
  0x4f   :  { %3754 = vmatpush1.bf16.msra.mxu0 %v7745_v52  ;;  %3797 = vmatpush1.bf16.msra.mxu1 %v7748_v53  ;;  %v7843_v52 = vld [vmem:[#allocation3 + $0x6ac] ss:$276 sps:$4 sm:$0xff]   ;;  %v7846_v53 = vld [vmem:[#allocation3 + $0x6b4] ss:$276 sps:$4 sm:$0xff]  }
  0x50   :  { %3755 = vmatprep.subr.bf16.mxu0 %v7753_v54  ;;  %3798 = vmatprep.subr.bf16.mxu1 %v7756_v55  ;;  %v7841_v54 = vld [vmem:[#allocation3 + $0x6a8] ss:$276 sps:$4 sm:$0xff]   ;;  %v7844_v55 = vld [vmem:[#allocation3 + $0x6b0] ss:$276 sps:$4 sm:$0xff]  }
  0x53   :  { %3756 = vmatpush1.bf16.msra.mxu0 %v7751_v56  ;;  %3799 = vmatpush1.bf16.msra.mxu1 %v7754_v57  ;;  %v7849_v56 = vld [vmem:[#allocation3 + $0x484] ss:$276 sps:$4 sm:$0xff]   ;;  %v7852_v57 = vld [vmem:[#allocation3 + $0x48c] ss:$276 sps:$4 sm:$0xff]  }
  0x54   :  { %3757 = vmatprep.subr.bf16.mxu0 %v7759_v58  ;;  %3800 = vmatprep.subr.bf16.mxu1 %v7762_v59  ;;  %v7847_v58 = vld [vmem:[#allocation3 + $0x480] ss:$276 sps:$4 sm:$0xff]   ;;  %v7850_v59 = vld [vmem:[#allocation3 + $0x488] ss:$276 sps:$4 sm:$0xff]  }
  0x57   :  { %3758 = vmatpush1.bf16.msra.mxu0 %v7757_v60  ;;  %3801 = vmatpush1.bf16.msra.mxu1 %v7760_v61  ;;  %v7855_v60 = vld [vmem:[#allocation3 + $0x25c] ss:$276 sps:$4 sm:$0xff]   ;;  %v7858_v61 = vld [vmem:[#allocation3 + $0x264] ss:$276 sps:$4 sm:$0xff]  }
  0x58   :  { %3759 = vmatprep.subr.bf16.mxu0 %v7765_v62  ;;  %3802 = vmatprep.subr.bf16.mxu1 %v7768_v63  ;;  %v7853_v62 = vld [vmem:[#allocation3 + $0x258] ss:$276 sps:$4 sm:$0xff]   ;;  %v7856_v63 = vld [vmem:[#allocation3 + $0x260] ss:$276 sps:$4 sm:$0xff]  }
  0x5b   :  { %3760 = vmatpush1.bf16.msra.mxu0 %v7763_v1  ;;  %3803 = vmatpush1.bf16.msra.mxu1 %v7766_v2  ;;  %v7861_v1 = vld [vmem:[#allocation3 + $0x34] ss:$276 sps:$4 sm:$0xff]   ;;  %v7864_v2 = vld [vmem:[#allocation3 + $0x3c] ss:$276 sps:$4 sm:$0xff]  }
  0x5c   :  { %3831 = vmatprep.subr.bf16.mxu0 %v7771_v3  ;;  %3874 = vmatprep.subr.bf16.mxu1 %v7774_v4  ;;  %v7859_v3 = vld [vmem:[#allocation3 + $0x30] ss:$276 sps:$4 sm:$0xff]   ;;  %v7862_v4 = vld [vmem:[#allocation3 + $0x38] ss:$276 sps:$4 sm:$0xff]  }
  0x5e   :  { %3778 = vmatmul.mubr.bf16.vlgmr.msra.gmra.mxu0 %v8871_v35  ;;  %3821 = vmatmul.mubr.bf16.vlgmr.msra.gmra.mxu1 %v8871_v35 }
  0x5f   :  { %3832 = vmatpush1.bf16.msra.mxu0 %v7769_v5  ;;  %3875 = vmatpush1.bf16.msra.mxu1 %v7772_v6  ;;  %v7867_v5 = vld [vmem:[#allocation3 + $0xf5c] ss:$276 sps:$4 sm:$0xff]   ;;  %v7870_v6 = vld [vmem:[#allocation3 + $0xf64] ss:$276 sps:$4 sm:$0xff]  }
  0x60   :  { %3833 = vmatprep.subr.bf16.mxu0 %v7777_v7  ;;  %3876 = vmatprep.subr.bf16.mxu1 %v7780_v8  ;;  %v7865_v7 = vld [vmem:[#allocation3 + $0xf58] ss:$276 sps:$4 sm:$0xff]   ;;  %v7868_v8 = vld [vmem:[#allocation3 + $0xf60] ss:$276 sps:$4 sm:$0xff]  }
  0x61   :  { %3863 = vmatprep.mubr.bf16.mxu0 %v8832_v0  ;;  %3906 = vmatprep.mubr.bf16.mxu1 %v8832_v0 }
  0x63   :  { %3834 = vmatpush1.bf16.msra.mxu0 %v7775_v9  ;;  %3877 = vmatpush1.bf16.msra.mxu1 %v7778_v10  ;;  %v7873_v9 = vld [vmem:[#allocation3 + $0xd34] ss:$276 sps:$4 sm:$0xff]   ;;  %v7876_v10 = vld [vmem:[#allocation3 + $0xd3c] ss:$276 sps:$4 sm:$0xff]  }
  0x64   :  { %3835 = vmatprep.subr.bf16.mxu0 %v7783_v11  ;;  %3878 = vmatprep.subr.bf16.mxu1 %v7786_v12  ;;  %v7871_v11 = vld [vmem:[#allocation3 + $0xd30] ss:$276 sps:$4 sm:$0xff]   ;;  %v7874_v12 = vld [vmem:[#allocation3 + $0xd38] ss:$276 sps:$4 sm:$0xff]  }
  0x67   :  { %3836 = vmatpush1.bf16.msra.mxu0 %v7781_v13  ;;  %3879 = vmatpush1.bf16.msra.mxu1 %v7784_v14  ;;  %v7879_v13 = vld [vmem:[#allocation3 + $0xb0c] ss:$276 sps:$4 sm:$0xff]   ;;  %v7882_v14 = vld [vmem:[#allocation3 + $0xb14] ss:$276 sps:$4 sm:$0xff]  }
  0x68   :  { %3837 = vmatprep.subr.bf16.mxu0 %v7789_v15  ;;  %3880 = vmatprep.subr.bf16.mxu1 %v7792_v16  ;;  %v7877_v15 = vld [vmem:[#allocation3 + $0xb08] ss:$276 sps:$4 sm:$0xff]   ;;  %v7880_v16 = vld [vmem:[#allocation3 + $0xb10] ss:$276 sps:$4 sm:$0xff]  }
  0x6b   :  { %3838 = vmatpush1.bf16.msra.mxu0 %v7787_v17  ;;  %3881 = vmatpush1.bf16.msra.mxu1 %v7790_v18  ;;  %v7885_v17 = vld [vmem:[#allocation3 + $0x8e4] ss:$276 sps:$4 sm:$0xff]   ;;  %v7888_v18 = vld [vmem:[#allocation3 + $0x8ec] ss:$276 sps:$4 sm:$0xff]  }
  0x6c   :  { %3839 = vmatprep.subr.bf16.mxu0 %v7795_v19  ;;  %3882 = vmatprep.subr.bf16.mxu1 %v7798_v20  ;;  %v7883_v19 = vld [vmem:[#allocation3 + $0x8e0] ss:$276 sps:$4 sm:$0xff]   ;;  %v7886_v20 = vld [vmem:[#allocation3 + $0x8e8] ss:$276 sps:$4 sm:$0xff]  }
  0x6f   :  { %3840 = vmatpush1.bf16.msra.mxu0 %v7793_v21  ;;  %3883 = vmatpush1.bf16.msra.mxu1 %v7796_v22  ;;  %v7891_v21 = vld [vmem:[#allocation3 + $0x6bc] ss:$276 sps:$4 sm:$0xff]   ;;  %v7894_v22 = vld [vmem:[#allocation3 + $0x6c4] ss:$276 sps:$4 sm:$0xff]  }
  0x70   :  { %3841 = vmatprep.subr.bf16.mxu0 %v7801_v23  ;;  %3884 = vmatprep.subr.bf16.mxu1 %v7804_v24  ;;  %v7889_v23 = vld [vmem:[#allocation3 + $0x6b8] ss:$276 sps:$4 sm:$0xff]   ;;  %v7892_v24 = vld [vmem:[#allocation3 + $0x6c0] ss:$276 sps:$4 sm:$0xff]  }
  0x73   :  { %3842 = vmatpush1.bf16.msra.mxu0 %v7799_v25  ;;  %3885 = vmatpush1.bf16.msra.mxu1 %v7802_v26  ;;  %v7897_v25 = vld [vmem:[#allocation3 + $0x494] ss:$276 sps:$4 sm:$0xff]   ;;  %v7900_v26 = vld [vmem:[#allocation3 + $0x49c] ss:$276 sps:$4 sm:$0xff]  }
  0x74   :  { %3843 = vmatprep.subr.bf16.mxu0 %v7807_v27  ;;  %3886 = vmatprep.subr.bf16.mxu1 %v7810_v28  ;;  %v7895_v27 = vld [vmem:[#allocation3 + $0x490] ss:$276 sps:$4 sm:$0xff]   ;;  %v7898_v28 = vld [vmem:[#allocation3 + $0x498] ss:$276 sps:$4 sm:$0xff]  }
  0x77   :  { %3844 = vmatpush1.bf16.msra.mxu0 %v7805_v29  ;;  %3887 = vmatpush1.bf16.msra.mxu1 %v7808_v30  ;;  %v7903_v29 = vld [vmem:[#allocation3 + $0x26c] ss:$276 sps:$4 sm:$0xff]   ;;  %v7906_v30 = vld [vmem:[#allocation3 + $0x274] ss:$276 sps:$4 sm:$0xff]  }
  0x78   :  { %3845 = vmatprep.subr.bf16.mxu0 %v7813_v31  ;;  %3888 = vmatprep.subr.bf16.mxu1 %v7816_v32  ;;  %v7901_v31 = vld [vmem:[#allocation3 + $0x268] ss:$276 sps:$4 sm:$0xff]   ;;  %v7904_v32 = vld [vmem:[#allocation3 + $0x270] ss:$276 sps:$4 sm:$0xff]  }
  0x7b   :  { %3846 = vmatpush1.bf16.msra.mxu0 %v7811_v33  ;;  %3889 = vmatpush1.bf16.msra.mxu1 %v7814_v34  ;;  %v7909_v33 = vld [vmem:[#allocation3 + $0x44] ss:$276 sps:$4 sm:$0xff]   ;;  %v7912_v34 = vld [vmem:[#allocation3 + $0x4c] ss:$276 sps:$4 sm:$0xff]  }
  0x7c   :  { %3917 = vmatprep.subr.bf16.mxu0 %v7819_v36  ;;  %3960 = vmatprep.subr.bf16.mxu1 %v7822_v37  ;;  %v7907_v36 = vld [vmem:[#allocation3 + $0x40] ss:$276 sps:$4 sm:$0xff]   ;;  %v7910_v37 = vld [vmem:[#allocation3 + $0x48] ss:$276 sps:$4 sm:$0xff]  }
  0x7e   :  { %3864 = vmatmul.mubr.bf16.vlgmr.msra.gmra.mxu0 %v8871_v35  ;;  %3907 = vmatmul.mubr.bf16.vlgmr.msra.gmra.mxu1 %v8871_v35 }
  0x7f   :  { %3918 = vmatpush1.bf16.msra.mxu0 %v7817_v38  ;;  %3961 = vmatpush1.bf16.msra.mxu1 %v7820_v39  ;;  %v7915_v38 = vld [vmem:[#allocation3 + $0xf6c] ss:$276 sps:$4 sm:$0xff]   ;;  %v7918_v39 = vld [vmem:[#allocation3 + $0xf74] ss:$276 sps:$4 sm:$0xff]  }
  0x80   :  { %3919 = vmatprep.subr.bf16.mxu0 %v7825_v40  ;;  %3962 = vmatprep.subr.bf16.mxu1 %v7828_v41  ;;  %v7913_v40 = vld [vmem:[#allocation3 + $0xf68] ss:$276 sps:$4 sm:$0xff]   ;;  %v7916_v41 = vld [vmem:[#allocation3 + $0xf70] ss:$276 sps:$4 sm:$0xff]  }
  0x81   :  { %3949 = vmatprep.mubr.bf16.mxu0 %v8832_v0  ;;  %3992 = vmatprep.mubr.bf16.mxu1 %v8832_v0 }
  0x83   :  { %3920 = vmatpush1.bf16.msra.mxu0 %v7823_v42  ;;  %3963 = vmatpush1.bf16.msra.mxu1 %v7826_v43  ;;  %v7921_v42 = vld [vmem:[#allocation3 + $0xd44] ss:$276 sps:$4 sm:$0xff]   ;;  %v7924_v43 = vld [vmem:[#allocation3 + $0xd4c] ss:$276 sps:$4 sm:$0xff]  }
  0x84   :  { %3921 = vmatprep.subr.bf16.mxu0 %v7831_v44  ;;  %3964 = vmatprep.subr.bf16.mxu1 %v7834_v45  ;;  %v7919_v44 = vld [vmem:[#allocation3 + $0xd40] ss:$276 sps:$4 sm:$0xff]   ;;  %v7922_v45 = vld [vmem:[#allocation3 + $0xd48] ss:$276 sps:$4 sm:$0xff]  }
  0x87   :  { %3922 = vmatpush1.bf16.msra.mxu0 %v7829_v46  ;;  %3965 = vmatpush1.bf16.msra.mxu1 %v7832_v47  ;;  %v7927_v46 = vld [vmem:[#allocation3 + $0xb1c] ss:$276 sps:$4 sm:$0xff]   ;;  %v7930_v47 = vld [vmem:[#allocation3 + $0xb24] ss:$276 sps:$4 sm:$0xff]  }
  0x88   :  { %3923 = vmatprep.subr.bf16.mxu0 %v7837_v48  ;;  %3966 = vmatprep.subr.bf16.mxu1 %v7840_v49  ;;  %v7925_v48 = vld [vmem:[#allocation3 + $0xb18] ss:$276 sps:$4 sm:$0xff]   ;;  %v7928_v49 = vld [vmem:[#allocation3 + $0xb20] ss:$276 sps:$4 sm:$0xff]  }
  0x8b   :  { %3924 = vmatpush1.bf16.msra.mxu0 %v7835_v50  ;;  %3967 = vmatpush1.bf16.msra.mxu1 %v7838_v51  ;;  %v7933_v50 = vld [vmem:[#allocation3 + $0x8f4] ss:$276 sps:$4 sm:$0xff]   ;;  %v7931_v51 = vld [vmem:[#allocation3 + $0x8f0] ss:$276 sps:$4 sm:$0xff]  }
  0x8c   :  { %3925 = vmatprep.subr.bf16.mxu0 %v7843_v52  ;;  %3968 = vmatprep.subr.bf16.mxu1 %v7846_v53  ;;  %v7934_v52 = vld [vmem:[#allocation3 + $0x8f8] ss:$276 sps:$4 sm:$0xff]  }
  0x8d   :  { %v7939_v53 = vld [vmem:[#allocation3 + $0x6cc] ss:$276 sps:$4 sm:$0xff]  }
  0x8f   :  { %3926 = vmatpush1.bf16.msra.mxu0 %v7841_v54  ;;  %3969 = vmatpush1.bf16.msra.mxu1 %v7844_v55  ;;  %v7942_v54 = vld [vmem:[#allocation3 + $0x6d4] ss:$276 sps:$4 sm:$0xff]  }
  0x90   :  { %3927 = vmatprep.subr.bf16.mxu0 %v7849_v56  ;;  %3970 = vmatprep.subr.bf16.mxu1 %v7852_v57  ;;  %v7937_v55 = vld [vmem:[#allocation3 + $0x6c8] ss:$276 sps:$4 sm:$0xff]   ;;  %v7940_v56 = vld [vmem:[#allocation3 + $0x6d0] ss:$276 sps:$4 sm:$0xff]  }
  0x91   :  { %v7945_v57 = vld [vmem:[#allocation3 + $0x4a4] ss:$276 sps:$4 sm:$0xff]  }
  0x93   :  { %3928 = vmatpush1.bf16.msra.mxu0 %v7847_v58  ;;  %3971 = vmatpush1.bf16.msra.mxu1 %v7850_v59  ;;  %v7948_v58 = vld [vmem:[#allocation3 + $0x4ac] ss:$276 sps:$4 sm:$0xff]  }
  0x94   :  { %3929 = vmatprep.subr.bf16.mxu0 %v7855_v60  ;;  %3972 = vmatprep.subr.bf16.mxu1 %v7858_v61  ;;  %v7943_v59 = vld [vmem:[#allocation3 + $0x4a0] ss:$276 sps:$4 sm:$0xff]   ;;  %v7946_v60 = vld [vmem:[#allocation3 + $0x4a8] ss:$276 sps:$4 sm:$0xff]  }
  0x95   :  { %v7951_v61 = vld [vmem:[#allocation3 + $0x27c] ss:$276 sps:$4 sm:$0xff]  }
  0x97   :  { %3930 = vmatpush1.bf16.msra.mxu0 %v7853_v62  ;;  %3973 = vmatpush1.bf16.msra.mxu1 %v7856_v63  ;;  %v7954_v62 = vld [vmem:[#allocation3 + $0x284] ss:$276 sps:$4 sm:$0xff]  }
  0x98   :  { %3931 = vmatprep.subr.bf16.mxu0 %v7861_v1  ;;  %3974 = vmatprep.subr.bf16.mxu1 %v7864_v2  ;;  %v7949_v63 = vld [vmem:[#allocation3 + $0x278] ss:$276 sps:$4 sm:$0xff]   ;;  %v7952_v1 = vld [vmem:[#allocation3 + $0x280] ss:$276 sps:$4 sm:$0xff]  }
  0x99   :  { %v7957_v2 = vld [vmem:[#allocation3 + $0x54] ss:$276 sps:$4 sm:$0xff]  }
  0x9b   :  { %3932 = vmatpush1.bf16.msra.mxu0 %v7859_v3  ;;  %3975 = vmatpush1.bf16.msra.mxu1 %v7862_v4  ;;  %v7960_v3 = vld [vmem:[#allocation3 + $0x5c] ss:$276 sps:$4 sm:$0xff]  }
  0x9c   :  { %4003 = vmatprep.subr.bf16.mxu0 %v7867_v5  ;;  %4046 = vmatprep.subr.bf16.mxu1 %v7870_v6  ;;  %v7955_v4 = vld [vmem:[#allocation3 + $0x50] ss:$276 sps:$4 sm:$0xff]   ;;  %v7958_v5 = vld [vmem:[#allocation3 + $0x58] ss:$276 sps:$4 sm:$0xff]  }
  0x9d   :  { %v7963_v6 = vld [vmem:[#allocation3 + $0xf7c] ss:$276 sps:$4 sm:$0xff]  }
  0x9e   :  { %3950 = vmatmul.mubr.bf16.vlgmr.msra.gmra.mxu0 %v8871_v35  ;;  %3993 = vmatmul.mubr.bf16.vlgmr.msra.gmra.mxu1 %v8871_v35 }
  0x9f   :  { %4004 = vmatpush1.bf16.msra.mxu0 %v7865_v7  ;;  %4047 = vmatpush1.bf16.msra.mxu1 %v7868_v8  ;;  %v7966_v7 = vld [vmem:[#allocation3 + $0xf84] ss:$276 sps:$4 sm:$0xff]  }
  0xa0   :  { %4005 = vmatprep.subr.bf16.mxu0 %v7873_v9  ;;  %4048 = vmatprep.subr.bf16.mxu1 %v7876_v10  ;;  %v7961_v8 = vld [vmem:[#allocation3 + $0xf78] ss:$276 sps:$4 sm:$0xff]   ;;  %v7964_v9 = vld [vmem:[#allocation3 + $0xf80] ss:$276 sps:$4 sm:$0xff]  }
  0xa1   :  { %4035 = vmatprep.mubr.bf16.mxu0 %v8832_v0  ;;  %4078 = vmatprep.mubr.bf16.mxu1 %v8832_v0  ;;  %v7969_v10 = vld [vmem:[#allocation3 + $0xd54] ss:$276 sps:$4 sm:$0xff]  }
  0xa3   :  { %4006 = vmatpush1.bf16.msra.mxu0 %v7871_v11  ;;  %4049 = vmatpush1.bf16.msra.mxu1 %v7874_v12  ;;  %v7972_v11 = vld [vmem:[#allocation3 + $0xd5c] ss:$276 sps:$4 sm:$0xff]   ;;  %v8896_v12 = vld [vmem:[%s10501_s0] sm:$0xff]  }
  0xa4   :  { %4007 = vmatprep.subr.bf16.mxu0 %v7879_v13  ;;  %4050 = vmatprep.subr.bf16.mxu1 %v7882_v14  ;;  %v7967_v13 = vld [vmem:[#allocation3 + $0xd50] ss:$276 sps:$4 sm:$0xff]   ;;  %v7970_v14 = vld [vmem:[#allocation3 + $0xd58] ss:$276 sps:$4 sm:$0xff]  }
  0xa7   :  { %4008 = vmatpush1.bf16.msra.mxu0 %v7877_v15  ;;  %4051 = vmatpush1.bf16.msra.mxu1 %v7880_v16  ;;  %v7975_v15 = vld [vmem:[#allocation3 + $0xb2c] ss:$276 sps:$4 sm:$0xff]   ;;  %v7978_v16 = vld [vmem:[#allocation3 + $0xb34] ss:$276 sps:$4 sm:$0xff]  }
  0xa8   :  { %4009 = vmatprep.subr.bf16.mxu0 %v7885_v17  ;;  %4052 = vmatprep.subr.bf16.mxu1 %v7888_v18  ;;  %v7973_v17 = vld [vmem:[#allocation3 + $0xb28] ss:$276 sps:$4 sm:$0xff]   ;;  %v7976_v18 = vld [vmem:[#allocation3 + $0xb30] ss:$276 sps:$4 sm:$0xff]  }
  0xab   :  { %4010 = vmatpush1.bf16.msra.mxu0 %v7883_v19  ;;  %4053 = vmatpush1.bf16.msra.mxu1 %v7886_v20  ;;  %v7981_v19 = vld [vmem:[#allocation3 + $0x904] ss:$276 sps:$4 sm:$0xff]   ;;  %v7984_v20 = vld [vmem:[#allocation3 + $0x90c] ss:$276 sps:$4 sm:$0xff]  }
  0xac   :  { %4011 = vmatprep.subr.bf16.mxu0 %v7891_v21  ;;  %4054 = vmatprep.subr.bf16.mxu1 %v7894_v22  ;;  %v7979_v21 = vld [vmem:[#allocation3 + $0x900] ss:$276 sps:$4 sm:$0xff]   ;;  %v7982_v22 = vld [vmem:[#allocation3 + $0x908] ss:$276 sps:$4 sm:$0xff]  }
  0xaf   :  { %4012 = vmatpush1.bf16.msra.mxu0 %v7889_v23  ;;  %4055 = vmatpush1.bf16.msra.mxu1 %v7892_v24  ;;  %v7987_v23 = vld [vmem:[#allocation3 + $0x6dc] ss:$276 sps:$4 sm:$0xff]   ;;  %v7990_v24 = vld [vmem:[#allocation3 + $0x6e4] ss:$276 sps:$4 sm:$0xff]  }
  0xb0   :  { %4013 = vmatprep.subr.bf16.mxu0 %v7897_v25  ;;  %4056 = vmatprep.subr.bf16.mxu1 %v7900_v26  ;;  %v7985_v25 = vld [vmem:[#allocation3 + $0x6d8] ss:$276 sps:$4 sm:$0xff]   ;;  %v7988_v26 = vld [vmem:[#allocation3 + $0x6e0] ss:$276 sps:$4 sm:$0xff]  }
  0xb3   :  { %4014 = vmatpush1.bf16.msra.mxu0 %v7895_v27  ;;  %4057 = vmatpush1.bf16.msra.mxu1 %v7898_v28  ;;  %v7993_v27 = vld [vmem:[#allocation3 + $0x4b4] ss:$276 sps:$4 sm:$0xff]   ;;  %v7996_v28 = vld [vmem:[#allocation3 + $0x4bc] ss:$276 sps:$4 sm:$0xff]  }
  0xb4   :  { %4015 = vmatprep.subr.bf16.mxu0 %v7903_v29  ;;  %4058 = vmatprep.subr.bf16.mxu1 %v7906_v30  ;;  %v7991_v29 = vld [vmem:[#allocation3 + $0x4b0] ss:$276 sps:$4 sm:$0xff]   ;;  %v7994_v30 = vld [vmem:[#allocation3 + $0x4b8] ss:$276 sps:$4 sm:$0xff]  }
  0xb7   :  { %4016 = vmatpush1.bf16.msra.mxu0 %v7901_v31  ;;  %4059 = vmatpush1.bf16.msra.mxu1 %v7904_v32  ;;  %v7999_v31 = vld [vmem:[#allocation3 + $0x28c] ss:$276 sps:$4 sm:$0xff]   ;;  %v8002_v32 = vld [vmem:[#allocation3 + $0x294] ss:$276 sps:$4 sm:$0xff]  }
  0xb8   :  { %4017 = vmatprep.subr.bf16.mxu0 %v7909_v33  ;;  %4060 = vmatprep.subr.bf16.mxu1 %v7912_v34  ;;  %v7997_v33 = vld [vmem:[#allocation3 + $0x288] ss:$276 sps:$4 sm:$0xff]   ;;  %v8000_v34 = vld [vmem:[#allocation3 + $0x290] ss:$276 sps:$4 sm:$0xff]  }
  0xbb   :  { %4018 = vmatpush1.bf16.msra.mxu0 %v7907_v36  ;;  %4061 = vmatpush1.bf16.msra.mxu1 %v7910_v37  ;;  %v8005_v36 = vld [vmem:[#allocation3 + $0x64] ss:$276 sps:$4 sm:$0xff]   ;;  %v8008_v37 = vld [vmem:[#allocation3 + $0x6c] ss:$276 sps:$4 sm:$0xff]  }
  0xbc   :  { %4089 = vmatprep.subr.bf16.mxu0 %v7915_v38  ;;  %4132 = vmatprep.subr.bf16.mxu1 %v7918_v39  ;;  %v8003_v38 = vld [vmem:[#allocation3 + $0x60] ss:$276 sps:$4 sm:$0xff]   ;;  %v8006_v39 = vld [vmem:[#allocation3 + $0x68] ss:$276 sps:$4 sm:$0xff]  }
  0xbe   :  { %4036 = vmatmul.mubr.bf16.vlgmr.msra.gmra.mxu0 %v8871_v35  ;;  %4079 = vmatmul.mubr.bf16.vlgmr.msra.gmra.mxu1 %v8871_v35  ;;  %v7936_v35 = vld [vmem:[#allocation3 + $0x8fc] ss:$276 sps:$4 sm:$0xff]  }
  0xbf   :  { %4090 = vmatpush1.bf16.msra.mxu0 %v7913_v40  ;;  %4133 = vmatpush1.bf16.msra.mxu1 %v7916_v41  ;;  %v8011_v40 = vld [vmem:[#allocation3 + $0xf8c] ss:$276 sps:$4 sm:$0xff]   ;;  %v8014_v41 = vld [vmem:[#allocation3 + $0xf94] ss:$276 sps:$4 sm:$0xff]  }
  0xc0   :  { %4091 = vmatprep.subr.bf16.mxu0 %v7921_v42  ;;  %4134 = vmatprep.subr.bf16.mxu1 %v7924_v43  ;;  %v8009_v42 = vld [vmem:[#allocation3 + $0xf88] ss:$276 sps:$4 sm:$0xff]   ;;  %v8012_v43 = vld [vmem:[#allocation3 + $0xf90] ss:$276 sps:$4 sm:$0xff]  }
  0xc1   :  { %4121 = vmatprep.mubr.bf16.mxu0 %v8832_v0  ;;  %4164 = vmatprep.mubr.bf16.mxu1 %v8832_v0 }
  0xc3   :  { %4092 = vmatpush1.bf16.msra.mxu0 %v7919_v44  ;;  %4135 = vmatpush1.bf16.msra.mxu1 %v7922_v45  ;;  %v8017_v44 = vld [vmem:[#allocation3 + $0xd64] ss:$276 sps:$4 sm:$0xff]   ;;  %v8020_v45 = vld [vmem:[#allocation3 + $0xd6c] ss:$276 sps:$4 sm:$0xff]  }
  0xc4   :  { %4093 = vmatprep.subr.bf16.mxu0 %v7927_v46  ;;  %4136 = vmatprep.subr.bf16.mxu1 %v7930_v47  ;;  %v8015_v46 = vld [vmem:[#allocation3 + $0xd60] ss:$276 sps:$4 sm:$0xff]   ;;  %v8018_v47 = vld [vmem:[#allocation3 + $0xd68] ss:$276 sps:$4 sm:$0xff]  }
  0xc7   :  { %4094 = vmatpush1.bf16.msra.mxu0 %v7925_v48  ;;  %4137 = vmatpush1.bf16.msra.mxu1 %v7928_v49  ;;  %v8023_v48 = vld [vmem:[#allocation3 + $0xb3c] ss:$276 sps:$4 sm:$0xff]   ;;  %v8026_v49 = vld [vmem:[#allocation3 + $0xb44] ss:$276 sps:$4 sm:$0xff]  }
  0xc8   :  { %4095 = vmatprep.subr.bf16.mxu0 %v7933_v50  ;;  %4138 = vmatprep.subr.bf16.mxu1 %v7936_v35  ;;  %v8021_v50 = vld [vmem:[#allocation3 + $0xb38] ss:$276 sps:$4 sm:$0xff]   ;;  %v8024_v35 = vld [vmem:[#allocation3 + $0xb40] ss:$276 sps:$4 sm:$0xff]  }
  0xcb   :  { %4096 = vmatpush1.bf16.msra.mxu0 %v7931_v51  ;;  %4139 = vmatpush1.bf16.msra.mxu1 %v7934_v52  ;;  %v8029_v51 = vld [vmem:[#allocation3 + $0x914] ss:$276 sps:$4 sm:$0xff]   ;;  %v8032_v52 = vld [vmem:[#allocation3 + $0x91c] ss:$276 sps:$4 sm:$0xff]  }
  0xcc   :  { %4097 = vmatprep.subr.bf16.mxu0 %v7939_v53  ;;  %4140 = vmatprep.subr.bf16.mxu1 %v7942_v54  ;;  %v8027_v53 = vld [vmem:[#allocation3 + $0x910] ss:$276 sps:$4 sm:$0xff]   ;;  %v8030_v54 = vld [vmem:[#allocation3 + $0x918] ss:$276 sps:$4 sm:$0xff]  }
  0xcf   :  { %4098 = vmatpush1.bf16.msra.mxu0 %v7937_v55  ;;  %4141 = vmatpush1.bf16.msra.mxu1 %v7940_v56  ;;  %v8035_v55 = vld [vmem:[#allocation3 + $0x6ec] ss:$276 sps:$4 sm:$0xff]   ;;  %v8038_v56 = vld [vmem:[#allocation3 + $0x6f4] ss:$276 sps:$4 sm:$0xff]  }
  0xd0   :  { %4099 = vmatprep.subr.bf16.mxu0 %v7945_v57  ;;  %4142 = vmatprep.subr.bf16.mxu1 %v7948_v58  ;;  %v8033_v57 = vld [vmem:[#allocation3 + $0x6e8] ss:$276 sps:$4 sm:$0xff]   ;;  %v8036_v58 = vld [vmem:[#allocation3 + $0x6f0] ss:$276 sps:$4 sm:$0xff]  }
  0xd3   :  { %4100 = vmatpush1.bf16.msra.mxu0 %v7943_v59  ;;  %4143 = vmatpush1.bf16.msra.mxu1 %v7946_v60  ;;  %v8041_v59 = vld [vmem:[#allocation3 + $0x4c4] ss:$276 sps:$4 sm:$0xff]   ;;  %v8044_v60 = vld [vmem:[#allocation3 + $0x4cc] ss:$276 sps:$4 sm:$0xff]  }
  0xd4   :  { %4101 = vmatprep.subr.bf16.mxu0 %v7951_v61  ;;  %4144 = vmatprep.subr.bf16.mxu1 %v7954_v62  ;;  %v8039_v61 = vld [vmem:[#allocation3 + $0x4c0] ss:$276 sps:$4 sm:$0xff]   ;;  %v8042_v62 = vld [vmem:[#allocation3 + $0x4c8] ss:$276 sps:$4 sm:$0xff]  }
  0xd7   :  { %4102 = vmatpush1.bf16.msra.mxu0 %v7949_v63  ;;  %4145 = vmatpush1.bf16.msra.mxu1 %v7952_v1  ;;  %v8047_v63 = vld [vmem:[#allocation3 + $0x29c] ss:$276 sps:$4 sm:$0xff]   ;;  %v8050_v1 = vld [vmem:[#allocation3 + $0x2a4] ss:$276 sps:$4 sm:$0xff]  }
  0xd8   :  { %4103 = vmatprep.subr.bf16.mxu0 %v7957_v2  ;;  %4146 = vmatprep.subr.bf16.mxu1 %v7960_v3  ;;  %v8045_v2 = vld [vmem:[#allocation3 + $0x298] ss:$276 sps:$4 sm:$0xff]   ;;  %v8048_v3 = vld [vmem:[#allocation3 + $0x2a0] ss:$276 sps:$4 sm:$0xff]  }
  0xdb   :  { %4104 = vmatpush1.bf16.msra.mxu0 %v7955_v4  ;;  %4147 = vmatpush1.bf16.msra.mxu1 %v7958_v5  ;;  %v8053_v4 = vld [vmem:[#allocation3 + $0x74] ss:$276 sps:$4 sm:$0xff]   ;;  %v8056_v5 = vld [vmem:[#allocation3 + $0x7c] ss:$276 sps:$4 sm:$0xff]  }
  0xdc   :  { %4175 = vmatprep.subr.bf16.mxu0 %v7963_v6  ;;  %4218 = vmatprep.subr.bf16.mxu1 %v7966_v7  ;;  %v8051_v6 = vld [vmem:[#allocation3 + $0x70] ss:$276 sps:$4 sm:$0xff]   ;;  %v8054_v7 = vld [vmem:[#allocation3 + $0x78] ss:$276 sps:$4 sm:$0xff]  }
  0xde   :  { %4122 = vmatmul.mubr.bf16.vlgmr.msra.gmra.mxu0 %v8896_v12  ;;  %4165 = vmatmul.mubr.bf16.vlgmr.msra.gmra.mxu1 %v8896_v12 }
  0xdf   :  { %4176 = vmatpush1.bf16.msra.mxu0 %v7961_v8  ;;  %4219 = vmatpush1.bf16.msra.mxu1 %v7964_v9  ;;  %v8059_v8 = vld [vmem:[#allocation3 + $0xf9c] ss:$276 sps:$4 sm:$0xff]   ;;  %v8062_v9 = vld [vmem:[#allocation3 + $0xfa4] ss:$276 sps:$4 sm:$0xff]  }
  0xe0   :  { %4177 = vmatprep.subr.bf16.mxu0 %v7969_v10  ;;  %4220 = vmatprep.subr.bf16.mxu1 %v7972_v11  ;;  %v8057_v10 = vld [vmem:[#allocation3 + $0xf98] ss:$276 sps:$4 sm:$0xff]   ;;  %v8060_v11 = vld [vmem:[#allocation3 + $0xfa0] ss:$276 sps:$4 sm:$0xff]  }
  0xe1   :  { %4207 = vmatprep.mubr.bf16.mxu0 %v8832_v0  ;;  %4250 = vmatprep.mubr.bf16.mxu1 %v8832_v0 }
  0xe3   :  { %4178 = vmatpush1.bf16.msra.mxu0 %v7967_v13  ;;  %4221 = vmatpush1.bf16.msra.mxu1 %v7970_v14  ;;  %v8065_v13 = vld [vmem:[#allocation3 + $0xd74] ss:$276 sps:$4 sm:$0xff]   ;;  %v8068_v14 = vld [vmem:[#allocation3 + $0xd7c] ss:$276 sps:$4 sm:$0xff]  }
  0xe4   :  { %4179 = vmatprep.subr.bf16.mxu0 %v7975_v15  ;;  %4222 = vmatprep.subr.bf16.mxu1 %v7978_v16  ;;  %v8063_v15 = vld [vmem:[#allocation3 + $0xd70] ss:$276 sps:$4 sm:$0xff]   ;;  %v8066_v16 = vld [vmem:[#allocation3 + $0xd78] ss:$276 sps:$4 sm:$0xff]  }
  0xe7   :  { %4180 = vmatpush1.bf16.msra.mxu0 %v7973_v17  ;;  %4223 = vmatpush1.bf16.msra.mxu1 %v7976_v18  ;;  %v8071_v17 = vld [vmem:[#allocation3 + $0xb4c] ss:$276 sps:$4 sm:$0xff]   ;;  %v8074_v18 = vld [vmem:[#allocation3 + $0xb54] ss:$276 sps:$4 sm:$0xff]  }
  0xe8   :  { %4181 = vmatprep.subr.bf16.mxu0 %v7981_v19  ;;  %4224 = vmatprep.subr.bf16.mxu1 %v7984_v20  ;;  %v8069_v19 = vld [vmem:[#allocation3 + $0xb48] ss:$276 sps:$4 sm:$0xff]   ;;  %v8072_v20 = vld [vmem:[#allocation3 + $0xb50] ss:$276 sps:$4 sm:$0xff]  }
  0xeb   :  { %4182 = vmatpush1.bf16.msra.mxu0 %v7979_v21  ;;  %4225 = vmatpush1.bf16.msra.mxu1 %v7982_v22  ;;  %v8077_v21 = vld [vmem:[#allocation3 + $0x924] ss:$276 sps:$4 sm:$0xff]   ;;  %v8080_v22 = vld [vmem:[#allocation3 + $0x92c] ss:$276 sps:$4 sm:$0xff]  }
  0xec   :  { %4183 = vmatprep.subr.bf16.mxu0 %v7987_v23  ;;  %4226 = vmatprep.subr.bf16.mxu1 %v7990_v24  ;;  %v8075_v23 = vld [vmem:[#allocation3 + $0x920] ss:$276 sps:$4 sm:$0xff]   ;;  %v8078_v24 = vld [vmem:[#allocation3 + $0x928] ss:$276 sps:$4 sm:$0xff]  }
  0xef   :  { %4184 = vmatpush1.bf16.msra.mxu0 %v7985_v25  ;;  %4227 = vmatpush1.bf16.msra.mxu1 %v7988_v26  ;;  %v8083_v25 = vld [vmem:[#allocation3 + $0x6fc] ss:$276 sps:$4 sm:$0xff]   ;;  %v8086_v26 = vld [vmem:[#allocation3 + $0x704] ss:$276 sps:$4 sm:$0xff]  }
  0xf0   :  { %4185 = vmatprep.subr.bf16.mxu0 %v7993_v27  ;;  %4228 = vmatprep.subr.bf16.mxu1 %v7996_v28  ;;  %v8081_v27 = vld [vmem:[#allocation3 + $0x6f8] ss:$276 sps:$4 sm:$0xff]   ;;  %v8084_v28 = vld [vmem:[#allocation3 + $0x700] ss:$276 sps:$4 sm:$0xff]  }
  0xf3   :  { %4186 = vmatpush1.bf16.msra.mxu0 %v7991_v29  ;;  %4229 = vmatpush1.bf16.msra.mxu1 %v7994_v30  ;;  %v8089_v29 = vld [vmem:[#allocation3 + $0x4d4] ss:$276 sps:$4 sm:$0xff]   ;;  %v8092_v30 = vld [vmem:[#allocation3 + $0x4dc] ss:$276 sps:$4 sm:$0xff]  }
  0xf4   :  { %4187 = vmatprep.subr.bf16.mxu0 %v7999_v31  ;;  %4230 = vmatprep.subr.bf16.mxu1 %v8002_v32  ;;  %v8087_v31 = vld [vmem:[#allocation3 + $0x4d0] ss:$276 sps:$4 sm:$0xff]   ;;  %v8090_v32 = vld [vmem:[#allocation3 + $0x4d8] ss:$276 sps:$4 sm:$0xff]  }
  0xf7   :  { %4188 = vmatpush1.bf16.msra.mxu0 %v7997_v33  ;;  %4231 = vmatpush1.bf16.msra.mxu1 %v8000_v34  ;;  %v8095_v33 = vld [vmem:[#allocation3 + $0x2ac] ss:$276 sps:$4 sm:$0xff]   ;;  %v8098_v34 = vld [vmem:[#allocation3 + $0x2b4] ss:$276 sps:$4 sm:$0xff]  }
  0xf8   :  { %4189 = vmatprep.subr.bf16.mxu0 %v8005_v36  ;;  %4232 = vmatprep.subr.bf16.mxu1 %v8008_v37  ;;  %v8093_v36 = vld [vmem:[#allocation3 + $0x2a8] ss:$276 sps:$4 sm:$0xff]   ;;  %v8096_v37 = vld [vmem:[#allocation3 + $0x2b0] ss:$276 sps:$4 sm:$0xff]  }
  0xfb   :  { %4190 = vmatpush1.bf16.msra.mxu0 %v8003_v38  ;;  %4233 = vmatpush1.bf16.msra.mxu1 %v8006_v39  ;;  %v8101_v38 = vld [vmem:[#allocation3 + $0x84] ss:$276 sps:$4 sm:$0xff]   ;;  %v8104_v39 = vld [vmem:[#allocation3 + $0x8c] ss:$276 sps:$4 sm:$0xff]  }
  0xfc   :  { %4261 = vmatprep.subr.bf16.mxu0 %v8011_v40  ;;  %4304 = vmatprep.subr.bf16.mxu1 %v8014_v41  ;;  %v8099_v40 = vld [vmem:[#allocation3 + $0x80] ss:$276 sps:$4 sm:$0xff]   ;;  %v8102_v41 = vld [vmem:[#allocation3 + $0x88] ss:$276 sps:$4 sm:$0xff]  }
  0xfe   :  { %4208 = vmatmul.mubr.bf16.vlgmr.msra.gmra.mxu0 %v8896_v12  ;;  %4251 = vmatmul.mubr.bf16.vlgmr.msra.gmra.mxu1 %v8896_v12 }
  0xff   :  { %4262 = vmatpush1.bf16.msra.mxu0 %v8009_v42  ;;  %4305 = vmatpush1.bf16.msra.mxu1 %v8012_v43  ;;  %v8107_v42 = vld [vmem:[#allocation3 + $0xfac] ss:$276 sps:$4 sm:$0xff]   ;;  %v8110_v43 = vld [vmem:[#allocation3 + $0xfb4] ss:$276 sps:$4 sm:$0xff]  }
 0x100   :  { %4263 = vmatprep.subr.bf16.mxu0 %v8017_v44  ;;  %4306 = vmatprep.subr.bf16.mxu1 %v8020_v45  ;;  %v8105_v44 = vld [vmem:[#allocation3 + $0xfa8] ss:$276 sps:$4 sm:$0xff]   ;;  %v8108_v45 = vld [vmem:[#allocation3 + $0xfb0] ss:$276 sps:$4 sm:$0xff]  }
 0x101   :  { %4293 = vmatprep.mubr.bf16.mxu0 %v8832_v0  ;;  %4336 = vmatprep.mubr.bf16.mxu1 %v8832_v0 }
 0x103   :  { %4264 = vmatpush1.bf16.msra.mxu0 %v8015_v46  ;;  %4307 = vmatpush1.bf16.msra.mxu1 %v8018_v47  ;;  %v8113_v46 = vld [vmem:[#allocation3 + $0xd84] ss:$276 sps:$4 sm:$0xff]   ;;  %v8116_v47 = vld [vmem:[#allocation3 + $0xd8c] ss:$276 sps:$4 sm:$0xff]  }
 0x104   :  { %4265 = vmatprep.subr.bf16.mxu0 %v8023_v48  ;;  %4308 = vmatprep.subr.bf16.mxu1 %v8026_v49  ;;  %v8111_v48 = vld [vmem:[#allocation3 + $0xd80] ss:$276 sps:$4 sm:$0xff]   ;;  %v8114_v49 = vld [vmem:[#allocation3 + $0xd88] ss:$276 sps:$4 sm:$0xff]  }
 0x107   :  { %4266 = vmatpush1.bf16.msra.mxu0 %v8021_v50  ;;  %4309 = vmatpush1.bf16.msra.mxu1 %v8024_v35  ;;  %v8119_v50 = vld [vmem:[#allocation3 + $0xb5c] ss:$276 sps:$4 sm:$0xff]   ;;  %v8122_v35 = vld [vmem:[#allocation3 + $0xb64] ss:$276 sps:$4 sm:$0xff]  }
 0x108   :  { %4267 = vmatprep.subr.bf16.mxu0 %v8029_v51  ;;  %4310 = vmatprep.subr.bf16.mxu1 %v8032_v52  ;;  %v8117_v51 = vld [vmem:[#allocation3 + $0xb58] ss:$276 sps:$4 sm:$0xff]   ;;  %v8120_v52 = vld [vmem:[#allocation3 + $0xb60] ss:$276 sps:$4 sm:$0xff]  }
 0x10b   :  { %4268 = vmatpush1.bf16.msra.mxu0 %v8027_v53  ;;  %4311 = vmatpush1.bf16.msra.mxu1 %v8030_v54  ;;  %v8125_v53 = vld [vmem:[#allocation3 + $0x934] ss:$276 sps:$4 sm:$0xff]   ;;  %v8128_v54 = vld [vmem:[#allocation3 + $0x93c] ss:$276 sps:$4 sm:$0xff]  }
 0x10c   :  { %4269 = vmatprep.subr.bf16.mxu0 %v8035_v55  ;;  %4312 = vmatprep.subr.bf16.mxu1 %v8038_v56  ;;  %v8123_v55 = vld [vmem:[#allocation3 + $0x930] ss:$276 sps:$4 sm:$0xff]   ;;  %v8126_v56 = vld [vmem:[#allocation3 + $0x938] ss:$276 sps:$4 sm:$0xff]  }
 0x10f   :  { %4270 = vmatpush1.bf16.msra.mxu0 %v8033_v57  ;;  %4313 = vmatpush1.bf16.msra.mxu1 %v8036_v58  ;;  %v8131_v57 = vld [vmem:[#allocation3 + $0x70c] ss:$276 sps:$4 sm:$0xff]   ;;  %v8134_v58 = vld [vmem:[#allocation3 + $0x714] ss:$276 sps:$4 sm:$0xff]  }
 0x110   :  { %4271 = vmatprep.subr.bf16.mxu0 %v8041_v59  ;;  %4314 = vmatprep.subr.bf16.mxu1 %v8044_v60  ;;  %v8129_v59 = vld [vmem:[#allocation3 + $0x708] ss:$276 sps:$4 sm:$0xff]   ;;  %v8132_v60 = vld [vmem:[#allocation3 + $0x710] ss:$276 sps:$4 sm:$0xff]  }
 0x113   :  { %4272 = vmatpush1.bf16.msra.mxu0 %v8039_v61  ;;  %4315 = vmatpush1.bf16.msra.mxu1 %v8042_v62  ;;  %v8137_v61 = vld [vmem:[#allocation3 + $0x4e4] ss:$276 sps:$4 sm:$0xff]   ;;  %v8140_v62 = vld [vmem:[#allocation3 + $0x4ec] ss:$276 sps:$4 sm:$0xff]  }
 0x114   :  { %4273 = vmatprep.subr.bf16.mxu0 %v8047_v63  ;;  %4316 = vmatprep.subr.bf16.mxu1 %v8050_v1  ;;  %v8135_v63 = vld [vmem:[#allocation3 + $0x4e0] ss:$276 sps:$4 sm:$0xff]   ;;  %v8138_v1 = vld [vmem:[#allocation3 + $0x4e8] ss:$276 sps:$4 sm:$0xff]  }
 0x117   :  { %4274 = vmatpush1.bf16.msra.mxu0 %v8045_v2  ;;  %4317 = vmatpush1.bf16.msra.mxu1 %v8048_v3  ;;  %v8143_v2 = vld [vmem:[#allocation3 + $0x2bc] ss:$276 sps:$4 sm:$0xff]   ;;  %v8146_v3 = vld [vmem:[#allocation3 + $0x2c4] ss:$276 sps:$4 sm:$0xff]  }
 0x118   :  { %4275 = vmatprep.subr.bf16.mxu0 %v8053_v4  ;;  %4318 = vmatprep.subr.bf16.mxu1 %v8056_v5  ;;  %v8141_v4 = vld [vmem:[#allocation3 + $0x2b8] ss:$276 sps:$4 sm:$0xff]   ;;  %v8144_v5 = vld [vmem:[#allocation3 + $0x2c0] ss:$276 sps:$4 sm:$0xff]  }
 0x11b   :  { %4276 = vmatpush1.bf16.msra.mxu0 %v8051_v6  ;;  %4319 = vmatpush1.bf16.msra.mxu1 %v8054_v7  ;;  %v8149_v6 = vld [vmem:[#allocation3 + $0x94] ss:$276 sps:$4 sm:$0xff]   ;;  %v8152_v7 = vld [vmem:[#allocation3 + $0x9c] ss:$276 sps:$4 sm:$0xff]  }
 0x11c   :  { %4347 = vmatprep.subr.bf16.mxu0 %v8059_v8  ;;  %4390 = vmatprep.subr.bf16.mxu1 %v8062_v9  ;;  %v8147_v8 = vld [vmem:[#allocation3 + $0x90] ss:$276 sps:$4 sm:$0xff]   ;;  %v8150_v9 = vld [vmem:[#allocation3 + $0x98] ss:$276 sps:$4 sm:$0xff]  }
 0x11e   :  { %4294 = vmatmul.mubr.bf16.vlgmr.msra.gmra.mxu0 %v8896_v12  ;;  %4337 = vmatmul.mubr.bf16.vlgmr.msra.gmra.mxu1 %v8896_v12 }
 0x11f   :  { %4348 = vmatpush1.bf16.msra.mxu0 %v8057_v10  ;;  %4391 = vmatpush1.bf16.msra.mxu1 %v8060_v11  ;;  %v8155_v10 = vld [vmem:[#allocation3 + $0xfbc] ss:$276 sps:$4 sm:$0xff]   ;;  %v8158_v11 = vld [vmem:[#allocation3 + $0xfc4] ss:$276 sps:$4 sm:$0xff]  }
 0x120   :  { %4349 = vmatprep.subr.bf16.mxu0 %v8065_v13  ;;  %4392 = vmatprep.subr.bf16.mxu1 %v8068_v14  ;;  %v8153_v13 = vld [vmem:[#allocation3 + $0xfb8] ss:$276 sps:$4 sm:$0xff]   ;;  %v8156_v14 = vld [vmem:[#allocation3 + $0xfc0] ss:$276 sps:$4 sm:$0xff]  }
 0x121   :  { %4379 = vmatprep.mubr.bf16.mxu0 %v8832_v0  ;;  %4422 = vmatprep.mubr.bf16.mxu1 %v8832_v0 }
 0x123   :  { %4350 = vmatpush1.bf16.msra.mxu0 %v8063_v15  ;;  %4393 = vmatpush1.bf16.msra.mxu1 %v8066_v16  ;;  %v8161_v15 = vld [vmem:[#allocation3 + $0xd94] ss:$276 sps:$4 sm:$0xff]   ;;  %v8164_v16 = vld [vmem:[#allocation3 + $0xd9c] ss:$276 sps:$4 sm:$0xff]  }
 0x124   :  { %4351 = vmatprep.subr.bf16.mxu0 %v8071_v17  ;;  %4394 = vmatprep.subr.bf16.mxu1 %v8074_v18  ;;  %v8159_v17 = vld [vmem:[#allocation3 + $0xd90] ss:$276 sps:$4 sm:$0xff]   ;;  %v8162_v18 = vld [vmem:[#allocation3 + $0xd98] ss:$276 sps:$4 sm:$0xff]  }
 0x127   :  { %4352 = vmatpush1.bf16.msra.mxu0 %v8069_v19  ;;  %4395 = vmatpush1.bf16.msra.mxu1 %v8072_v20  ;;  %v8167_v19 = vld [vmem:[#allocation3 + $0xb6c] ss:$276 sps:$4 sm:$0xff]   ;;  %v8170_v20 = vld [vmem:[#allocation3 + $0xb74] ss:$276 sps:$4 sm:$0xff]  }
 0x128   :  { %4353 = vmatprep.subr.bf16.mxu0 %v8077_v21  ;;  %4396 = vmatprep.subr.bf16.mxu1 %v8080_v22  ;;  %v8165_v21 = vld [vmem:[#allocation3 + $0xb68] ss:$276 sps:$4 sm:$0xff]   ;;  %v8168_v22 = vld [vmem:[#allocation3 + $0xb70] ss:$276 sps:$4 sm:$0xff]  }
 0x12b   :  { %4354 = vmatpush1.bf16.msra.mxu0 %v8075_v23  ;;  %4397 = vmatpush1.bf16.msra.mxu1 %v8078_v24  ;;  %v8173_v23 = vld [vmem:[#allocation3 + $0x944] ss:$276 sps:$4 sm:$0xff]   ;;  %v8176_v24 = vld [vmem:[#allocation3 + $0x94c] ss:$276 sps:$4 sm:$0xff]  }
 0x12c   :  { %4355 = vmatprep.subr.bf16.mxu0 %v8083_v25  ;;  %4398 = vmatprep.subr.bf16.mxu1 %v8086_v26  ;;  %v8171_v25 = vld [vmem:[#allocation3 + $0x940] ss:$276 sps:$4 sm:$0xff]   ;;  %v8179_v26 = vld [vmem:[#allocation3 + $0x71c] ss:$276 sps:$4 sm:$0xff]  }
 0x12f   :  { %4356 = vmatpush1.bf16.msra.mxu0 %v8081_v27  ;;  %4399 = vmatpush1.bf16.msra.mxu1 %v8084_v28  ;;  %v8182_v27 = vld [vmem:[#allocation3 + $0x724] ss:$276 sps:$4 sm:$0xff]  }
 0x130   :  { %4357 = vmatprep.subr.bf16.mxu0 %v8089_v29  ;;  %4400 = vmatprep.subr.bf16.mxu1 %v8092_v30  ;;  %v8177_v28 = vld [vmem:[#allocation3 + $0x718] ss:$276 sps:$4 sm:$0xff]   ;;  %v8180_v29 = vld [vmem:[#allocation3 + $0x720] ss:$276 sps:$4 sm:$0xff]  }
 0x131   :  { %v8185_v30 = vld [vmem:[#allocation3 + $0x4f4] ss:$276 sps:$4 sm:$0xff]  }
 0x133   :  { %4358 = vmatpush1.bf16.msra.mxu0 %v8087_v31  ;;  %4401 = vmatpush1.bf16.msra.mxu1 %v8090_v32  ;;  %v8188_v31 = vld [vmem:[#allocation3 + $0x4fc] ss:$276 sps:$4 sm:$0xff]  }
 0x134   :  { %4359 = vmatprep.subr.bf16.mxu0 %v8095_v33  ;;  %4402 = vmatprep.subr.bf16.mxu1 %v8098_v34  ;;  %v8183_v32 = vld [vmem:[#allocation3 + $0x4f0] ss:$276 sps:$4 sm:$0xff]   ;;  %v8186_v33 = vld [vmem:[#allocation3 + $0x4f8] ss:$276 sps:$4 sm:$0xff]  }
 0x135   :  { %v8191_v34 = vld [vmem:[#allocation3 + $0x2cc] ss:$276 sps:$4 sm:$0xff]  }
 0x137   :  { %4360 = vmatpush1.bf16.msra.mxu0 %v8093_v36  ;;  %4403 = vmatpush1.bf16.msra.mxu1 %v8096_v37  ;;  %v8194_v36 = vld [vmem:[#allocation3 + $0x2d4] ss:$276 sps:$4 sm:$0xff]  }
 0x138   :  { %4361 = vmatprep.subr.bf16.mxu0 %v8101_v38  ;;  %4404 = vmatprep.subr.bf16.mxu1 %v8104_v39  ;;  %v8189_v37 = vld [vmem:[#allocation3 + $0x2c8] ss:$276 sps:$4 sm:$0xff]   ;;  %v8192_v38 = vld [vmem:[#allocation3 + $0x2d0] ss:$276 sps:$4 sm:$0xff]  }
 0x139   :  { %v8197_v39 = vld [vmem:[#allocation3 + $0xa4] ss:$276 sps:$4 sm:$0xff]  }
 0x13b   :  { %4362 = vmatpush1.bf16.msra.mxu0 %v8099_v40  ;;  %4405 = vmatpush1.bf16.msra.mxu1 %v8102_v41  ;;  %v8200_v40 = vld [vmem:[#allocation3 + $0xac] ss:$276 sps:$4 sm:$0xff]  }
 0x13c   :  { %4433 = vmatprep.subr.bf16.mxu0 %v8107_v42  ;;  %4476 = vmatprep.subr.bf16.mxu1 %v8110_v43  ;;  %v8195_v41 = vld [vmem:[#allocation3 + $0xa0] ss:$276 sps:$4 sm:$0xff]   ;;  %v8198_v42 = vld [vmem:[#allocation3 + $0xa8] ss:$276 sps:$4 sm:$0xff]  }
 0x13d   :  { %v8203_v43 = vld [vmem:[#allocation3 + $0xfcc] ss:$276 sps:$4 sm:$0xff]  }
 0x13e   :  { %4380 = vmatmul.mubr.bf16.vlgmr.msra.gmra.mxu0 %v8896_v12  ;;  %4423 = vmatmul.mubr.bf16.vlgmr.msra.gmra.mxu1 %v8896_v12 }
 0x13f   :  { %4434 = vmatpush1.bf16.msra.mxu0 %v8105_v44  ;;  %4477 = vmatpush1.bf16.msra.mxu1 %v8108_v45  ;;  %v8206_v44 = vld [vmem:[#allocation3 + $0xfd4] ss:$276 sps:$4 sm:$0xff]  }
 0x140   :  { %4435 = vmatprep.subr.bf16.mxu0 %v8113_v46  ;;  %4478 = vmatprep.subr.bf16.mxu1 %v8116_v47  ;;  %v8201_v45 = vld [vmem:[#allocation3 + $0xfc8] ss:$276 sps:$4 sm:$0xff]   ;;  %v8204_v46 = vld [vmem:[#allocation3 + $0xfd0] ss:$276 sps:$4 sm:$0xff]  }
 0x141   :  { %4465 = vmatprep.mubr.bf16.mxu0 %v8832_v0  ;;  %4508 = vmatprep.mubr.bf16.mxu1 %v8832_v0  ;;  %v8209_v47 = vld [vmem:[#allocation3 + $0xda4] ss:$276 sps:$4 sm:$0xff]  }
 0x143   :  { %4436 = vmatpush1.bf16.msra.mxu0 %v8111_v48  ;;  %4479 = vmatpush1.bf16.msra.mxu1 %v8114_v49  ;;  %v8212_v48 = vld [vmem:[#allocation3 + $0xdac] ss:$276 sps:$4 sm:$0xff]  }
 0x144   :  { %4437 = vmatprep.subr.bf16.mxu0 %v8119_v50  ;;  %4480 = vmatprep.subr.bf16.mxu1 %v8122_v35  ;;  %v8921_v49 = vld [vmem:[%s10501_s0] sm:$0xff]   ;;  %v8210_v35 = vld [vmem:[#allocation3 + $0xda8] ss:$276 sps:$4 sm:$0xff]  }
 0x145   :  { %v8207_v50 = vld [vmem:[#allocation3 + $0xda0] ss:$276 sps:$4 sm:$0xff]  }
 0x147   :  { %4438 = vmatpush1.bf16.msra.mxu0 %v8117_v51  ;;  %4481 = vmatpush1.bf16.msra.mxu1 %v8120_v52  ;;  %v8215_v51 = vld [vmem:[#allocation3 + $0xb7c] ss:$276 sps:$4 sm:$0xff]   ;;  %v8218_v52 = vld [vmem:[#allocation3 + $0xb84] ss:$276 sps:$4 sm:$0xff]  }
 0x148   :  { %4439 = vmatprep.subr.bf16.mxu0 %v8125_v53  ;;  %4482 = vmatprep.subr.bf16.mxu1 %v8128_v54  ;;  %v8213_v53 = vld [vmem:[#allocation3 + $0xb78] ss:$276 sps:$4 sm:$0xff]   ;;  %v8216_v54 = vld [vmem:[#allocation3 + $0xb80] ss:$276 sps:$4 sm:$0xff]  }
 0x14b   :  { %4440 = vmatpush1.bf16.msra.mxu0 %v8123_v55  ;;  %4483 = vmatpush1.bf16.msra.mxu1 %v8126_v56  ;;  %v8221_v55 = vld [vmem:[#allocation3 + $0x954] ss:$276 sps:$4 sm:$0xff]   ;;  %v8224_v56 = vld [vmem:[#allocation3 + $0x95c] ss:$276 sps:$4 sm:$0xff]  }
 0x14c   :  { %4441 = vmatprep.subr.bf16.mxu0 %v8131_v57  ;;  %4484 = vmatprep.subr.bf16.mxu1 %v8134_v58  ;;  %v8219_v57 = vld [vmem:[#allocation3 + $0x950] ss:$276 sps:$4 sm:$0xff]   ;;  %v8222_v58 = vld [vmem:[#allocation3 + $0x958] ss:$276 sps:$4 sm:$0xff]  }
 0x14f   :  { %4442 = vmatpush1.bf16.msra.mxu0 %v8129_v59  ;;  %4485 = vmatpush1.bf16.msra.mxu1 %v8132_v60  ;;  %v8227_v59 = vld [vmem:[#allocation3 + $0x72c] ss:$276 sps:$4 sm:$0xff]   ;;  %v8230_v60 = vld [vmem:[#allocation3 + $0x734] ss:$276 sps:$4 sm:$0xff]  }
 0x150   :  { %4443 = vmatprep.subr.bf16.mxu0 %v8137_v61  ;;  %4486 = vmatprep.subr.bf16.mxu1 %v8140_v62  ;;  %v8225_v61 = vld [vmem:[#allocation3 + $0x728] ss:$276 sps:$4 sm:$0xff]   ;;  %v8228_v62 = vld [vmem:[#allocation3 + $0x730] ss:$276 sps:$4 sm:$0xff]  }
 0x153   :  { %4444 = vmatpush1.bf16.msra.mxu0 %v8135_v63  ;;  %4487 = vmatpush1.bf16.msra.mxu1 %v8138_v1  ;;  %v8233_v63 = vld [vmem:[#allocation3 + $0x504] ss:$276 sps:$4 sm:$0xff]   ;;  %v8236_v1 = vld [vmem:[#allocation3 + $0x50c] ss:$276 sps:$4 sm:$0xff]  }
 0x154   :  { %4445 = vmatprep.subr.bf16.mxu0 %v8143_v2  ;;  %4488 = vmatprep.subr.bf16.mxu1 %v8146_v3  ;;  %v8231_v2 = vld [vmem:[#allocation3 + $0x500] ss:$276 sps:$4 sm:$0xff]   ;;  %v8234_v3 = vld [vmem:[#allocation3 + $0x508] ss:$276 sps:$4 sm:$0xff]  }
 0x157   :  { %4446 = vmatpush1.bf16.msra.mxu0 %v8141_v4  ;;  %4489 = vmatpush1.bf16.msra.mxu1 %v8144_v5  ;;  %v8239_v4 = vld [vmem:[#allocation3 + $0x2dc] ss:$276 sps:$4 sm:$0xff]   ;;  %v8242_v5 = vld [vmem:[#allocation3 + $0x2e4] ss:$276 sps:$4 sm:$0xff]  }
 0x158   :  { %4447 = vmatprep.subr.bf16.mxu0 %v8149_v6  ;;  %4490 = vmatprep.subr.bf16.mxu1 %v8152_v7  ;;  %v8237_v6 = vld [vmem:[#allocation3 + $0x2d8] ss:$276 sps:$4 sm:$0xff]   ;;  %v8240_v7 = vld [vmem:[#allocation3 + $0x2e0] ss:$276 sps:$4 sm:$0xff]  }
 0x15b   :  { %4448 = vmatpush1.bf16.msra.mxu0 %v8147_v8  ;;  %4491 = vmatpush1.bf16.msra.mxu1 %v8150_v9  ;;  %v8245_v8 = vld [vmem:[#allocation3 + $0xb4] ss:$276 sps:$4 sm:$0xff]   ;;  %v8248_v9 = vld [vmem:[#allocation3 + $0xbc] ss:$276 sps:$4 sm:$0xff]  }
 0x15c   :  { %4519 = vmatprep.subr.bf16.mxu0 %v8155_v10  ;;  %4562 = vmatprep.subr.bf16.mxu1 %v8158_v11  ;;  %v8243_v10 = vld [vmem:[#allocation3 + $0xb0] ss:$276 sps:$4 sm:$0xff]   ;;  %v8246_v11 = vld [vmem:[#allocation3 + $0xb8] ss:$276 sps:$4 sm:$0xff]  }
 0x15e   :  { %4466 = vmatmul.mubr.bf16.vlgmr.msra.gmra.mxu0 %v8896_v12  ;;  %4509 = vmatmul.mubr.bf16.vlgmr.msra.gmra.mxu1 %v8896_v12  ;;  %v8174_v12 = vld [vmem:[#allocation3 + $0x948] ss:$276 sps:$4 sm:$0xff]  }
 0x15f   :  { %4520 = vmatpush1.bf16.msra.mxu0 %v8153_v13  ;;  %4563 = vmatpush1.bf16.msra.mxu1 %v8156_v14  ;;  %v8251_v13 = vld [vmem:[#allocation3 + $0xfdc] ss:$276 sps:$4 sm:$0xff]   ;;  %v8254_v14 = vld [vmem:[#allocation3 + $0xfe4] ss:$276 sps:$4 sm:$0xff]  }
 0x160   :  { %4521 = vmatprep.subr.bf16.mxu0 %v8161_v15  ;;  %4564 = vmatprep.subr.bf16.mxu1 %v8164_v16  ;;  %v8249_v15 = vld [vmem:[#allocation3 + $0xfd8] ss:$276 sps:$4 sm:$0xff]   ;;  %v8252_v16 = vld [vmem:[#allocation3 + $0xfe0] ss:$276 sps:$4 sm:$0xff]  }
 0x161   :  { %4551 = vmatprep.mubr.bf16.mxu0 %v8832_v0  ;;  %4594 = vmatprep.mubr.bf16.mxu1 %v8832_v0 }
 0x163   :  { %4522 = vmatpush1.bf16.msra.mxu0 %v8159_v17  ;;  %4565 = vmatpush1.bf16.msra.mxu1 %v8162_v18  ;;  %v8257_v17 = vld [vmem:[#allocation3 + $0xdb4] ss:$276 sps:$4 sm:$0xff]   ;;  %v8260_v18 = vld [vmem:[#allocation3 + $0xdbc] ss:$276 sps:$4 sm:$0xff]  }
 0x164   :  { %4523 = vmatprep.subr.bf16.mxu0 %v8167_v19  ;;  %4566 = vmatprep.subr.bf16.mxu1 %v8170_v20  ;;  %v8255_v19 = vld [vmem:[#allocation3 + $0xdb0] ss:$276 sps:$4 sm:$0xff]   ;;  %v8258_v20 = vld [vmem:[#allocation3 + $0xdb8] ss:$276 sps:$4 sm:$0xff]  }
 0x167   :  { %4524 = vmatpush1.bf16.msra.mxu0 %v8165_v21  ;;  %4567 = vmatpush1.bf16.msra.mxu1 %v8168_v22  ;;  %v8263_v21 = vld [vmem:[#allocation3 + $0xb8c] ss:$276 sps:$4 sm:$0xff]   ;;  %v8266_v22 = vld [vmem:[#allocation3 + $0xb94] ss:$276 sps:$4 sm:$0xff]  }
 0x168   :  { %4525 = vmatprep.subr.bf16.mxu0 %v8173_v23  ;;  %4568 = vmatprep.subr.bf16.mxu1 %v8176_v24  ;;  %v8261_v23 = vld [vmem:[#allocation3 + $0xb88] ss:$276 sps:$4 sm:$0xff]   ;;  %v8264_v24 = vld [vmem:[#allocation3 + $0xb90] ss:$276 sps:$4 sm:$0xff]  }
 0x16b   :  { %4526 = vmatpush1.bf16.msra.mxu0 %v8171_v25  ;;  %4569 = vmatpush1.bf16.msra.mxu1 %v8174_v12  ;;  %v8269_v25 = vld [vmem:[#allocation3 + $0x964] ss:$276 sps:$4 sm:$0xff]   ;;  %v8272_v12 = vld [vmem:[#allocation3 + $0x96c] ss:$276 sps:$4 sm:$0xff]  }
 0x16c   :  { %4527 = vmatprep.subr.bf16.mxu0 %v8179_v26  ;;  %4570 = vmatprep.subr.bf16.mxu1 %v8182_v27  ;;  %v8267_v26 = vld [vmem:[#allocation3 + $0x960] ss:$276 sps:$4 sm:$0xff]   ;;  %v8270_v27 = vld [vmem:[#allocation3 + $0x968] ss:$276 sps:$4 sm:$0xff]  }
 0x16f   :  { %4528 = vmatpush1.bf16.msra.mxu0 %v8177_v28  ;;  %4571 = vmatpush1.bf16.msra.mxu1 %v8180_v29  ;;  %v8275_v28 = vld [vmem:[#allocation3 + $0x73c] ss:$276 sps:$4 sm:$0xff]   ;;  %v8278_v29 = vld [vmem:[#allocation3 + $0x744] ss:$276 sps:$4 sm:$0xff]  }
 0x170   :  { %4529 = vmatprep.subr.bf16.mxu0 %v8185_v30  ;;  %4572 = vmatprep.subr.bf16.mxu1 %v8188_v31  ;;  %v8273_v30 = vld [vmem:[#allocation3 + $0x738] ss:$276 sps:$4 sm:$0xff]   ;;  %v8276_v31 = vld [vmem:[#allocation3 + $0x740] ss:$276 sps:$4 sm:$0xff]  }
 0x173   :  { %4530 = vmatpush1.bf16.msra.mxu0 %v8183_v32  ;;  %4573 = vmatpush1.bf16.msra.mxu1 %v8186_v33  ;;  %v8281_v32 = vld [vmem:[#allocation3 + $0x514] ss:$276 sps:$4 sm:$0xff]   ;;  %v8284_v33 = vld [vmem:[#allocation3 + $0x51c] ss:$276 sps:$4 sm:$0xff]  }
 0x174   :  { %4531 = vmatprep.subr.bf16.mxu0 %v8191_v34  ;;  %4574 = vmatprep.subr.bf16.mxu1 %v8194_v36  ;;  %v8279_v34 = vld [vmem:[#allocation3 + $0x510] ss:$276 sps:$4 sm:$0xff]   ;;  %v8282_v36 = vld [vmem:[#allocation3 + $0x518] ss:$276 sps:$4 sm:$0xff]  }
 0x177   :  { %4532 = vmatpush1.bf16.msra.mxu0 %v8189_v37  ;;  %4575 = vmatpush1.bf16.msra.mxu1 %v8192_v38  ;;  %v8287_v37 = vld [vmem:[#allocation3 + $0x2ec] ss:$276 sps:$4 sm:$0xff]   ;;  %v8290_v38 = vld [vmem:[#allocation3 + $0x2f4] ss:$276 sps:$4 sm:$0xff]  }
 0x178   :  { %4533 = vmatprep.subr.bf16.mxu0 %v8197_v39  ;;  %4576 = vmatprep.subr.bf16.mxu1 %v8200_v40  ;;  %v8285_v39 = vld [vmem:[#allocation3 + $0x2e8] ss:$276 sps:$4 sm:$0xff]   ;;  %v8288_v40 = vld [vmem:[#allocation3 + $0x2f0] ss:$276 sps:$4 sm:$0xff]  }
 0x17b   :  { %4534 = vmatpush1.bf16.msra.mxu0 %v8195_v41  ;;  %4577 = vmatpush1.bf16.msra.mxu1 %v8198_v42  ;;  %v8293_v41 = vld [vmem:[#allocation3 + $0xc4] ss:$276 sps:$4 sm:$0xff]   ;;  %v8296_v42 = vld [vmem:[#allocation3 + $0xcc] ss:$276 sps:$4 sm:$0xff]  }
 0x17c   :  { %4605 = vmatprep.subr.bf16.mxu0 %v8203_v43  ;;  %4648 = vmatprep.subr.bf16.mxu1 %v8206_v44  ;;  %v8291_v43 = vld [vmem:[#allocation3 + $0xc0] ss:$276 sps:$4 sm:$0xff]   ;;  %v8294_v44 = vld [vmem:[#allocation3 + $0xc8] ss:$276 sps:$4 sm:$0xff]  }
 0x17e   :  { %4552 = vmatmul.mubr.bf16.vlgmr.msra.gmra.mxu0 %v8921_v49  ;;  %4595 = vmatmul.mubr.bf16.vlgmr.msra.gmra.mxu1 %v8921_v49 }
 0x17f   :  { %4606 = vmatpush1.bf16.msra.mxu0 %v8201_v45  ;;  %4649 = vmatpush1.bf16.msra.mxu1 %v8204_v46  ;;  %v8299_v45 = vld [vmem:[#allocation3 + $0xfec] ss:$276 sps:$4 sm:$0xff]   ;;  %v8302_v46 = vld [vmem:[#allocation3 + $0xff4] ss:$276 sps:$4 sm:$0xff]  }
 0x180   :  { %4607 = vmatprep.subr.bf16.mxu0 %v8209_v47  ;;  %4650 = vmatprep.subr.bf16.mxu1 %v8212_v48  ;;  %v8297_v47 = vld [vmem:[#allocation3 + $0xfe8] ss:$276 sps:$4 sm:$0xff]   ;;  %v8300_v48 = vld [vmem:[#allocation3 + $0xff0] ss:$276 sps:$4 sm:$0xff]  }
 0x181   :  { %4637 = vmatprep.mubr.bf16.mxu0 %v8832_v0  ;;  %4680 = vmatprep.mubr.bf16.mxu1 %v8832_v0 }
 0x183   :  { %4608 = vmatpush1.bf16.msra.mxu0 %v8207_v50  ;;  %4651 = vmatpush1.bf16.msra.mxu1 %v8210_v35  ;;  %v8305_v50 = vld [vmem:[#allocation3 + $0xdc4] ss:$276 sps:$4 sm:$0xff]   ;;  %v8308_v35 = vld [vmem:[#allocation3 + $0xdcc] ss:$276 sps:$4 sm:$0xff]  }
 0x184   :  { %4609 = vmatprep.subr.bf16.mxu0 %v8215_v51  ;;  %4652 = vmatprep.subr.bf16.mxu1 %v8218_v52  ;;  %v8303_v51 = vld [vmem:[#allocation3 + $0xdc0] ss:$276 sps:$4 sm:$0xff]   ;;  %v8306_v52 = vld [vmem:[#allocation3 + $0xdc8] ss:$276 sps:$4 sm:$0xff]  }
 0x187   :  { %4610 = vmatpush1.bf16.msra.mxu0 %v8213_v53  ;;  %4653 = vmatpush1.bf16.msra.mxu1 %v8216_v54  ;;  %v8311_v53 = vld [vmem:[#allocation3 + $0xb9c] ss:$276 sps:$4 sm:$0xff]   ;;  %v8314_v54 = vld [vmem:[#allocation3 + $0xba4] ss:$276 sps:$4 sm:$0xff]  }
 0x188   :  { %4611 = vmatprep.subr.bf16.mxu0 %v8221_v55  ;;  %4654 = vmatprep.subr.bf16.mxu1 %v8224_v56  ;;  %v8309_v55 = vld [vmem:[#allocation3 + $0xb98] ss:$276 sps:$4 sm:$0xff]   ;;  %v8312_v56 = vld [vmem:[#allocation3 + $0xba0] ss:$276 sps:$4 sm:$0xff]  }
 0x18b   :  { %4612 = vmatpush1.bf16.msra.mxu0 %v8219_v57  ;;  %4655 = vmatpush1.bf16.msra.mxu1 %v8222_v58  ;;  %v8317_v57 = vld [vmem:[#allocation3 + $0x974] ss:$276 sps:$4 sm:$0xff]   ;;  %v8320_v58 = vld [vmem:[#allocation3 + $0x97c] ss:$276 sps:$4 sm:$0xff]  }
 0x18c   :  { %4613 = vmatprep.subr.bf16.mxu0 %v8227_v59  ;;  %4656 = vmatprep.subr.bf16.mxu1 %v8230_v60  ;;  %v8315_v59 = vld [vmem:[#allocation3 + $0x970] ss:$276 sps:$4 sm:$0xff]   ;;  %v8318_v60 = vld [vmem:[#allocation3 + $0x978] ss:$276 sps:$4 sm:$0xff]  }
 0x18f   :  { %4614 = vmatpush1.bf16.msra.mxu0 %v8225_v61  ;;  %4657 = vmatpush1.bf16.msra.mxu1 %v8228_v62  ;;  %v8323_v61 = vld [vmem:[#allocation3 + $0x74c] ss:$276 sps:$4 sm:$0xff]   ;;  %v8326_v62 = vld [vmem:[#allocation3 + $0x754] ss:$276 sps:$4 sm:$0xff]  }
 0x190   :  { %4615 = vmatprep.subr.bf16.mxu0 %v8233_v63  ;;  %4658 = vmatprep.subr.bf16.mxu1 %v8236_v1  ;;  %v8321_v63 = vld [vmem:[#allocation3 + $0x748] ss:$276 sps:$4 sm:$0xff]   ;;  %v8324_v1 = vld [vmem:[#allocation3 + $0x750] ss:$276 sps:$4 sm:$0xff]  }
 0x193   :  { %4616 = vmatpush1.bf16.msra.mxu0 %v8231_v2  ;;  %4659 = vmatpush1.bf16.msra.mxu1 %v8234_v3  ;;  %v8329_v2 = vld [vmem:[#allocation3 + $0x524] ss:$276 sps:$4 sm:$0xff]   ;;  %v8332_v3 = vld [vmem:[#allocation3 + $0x52c] ss:$276 sps:$4 sm:$0xff]  }
 0x194   :  { %4617 = vmatprep.subr.bf16.mxu0 %v8239_v4  ;;  %4660 = vmatprep.subr.bf16.mxu1 %v8242_v5  ;;  %v8327_v4 = vld [vmem:[#allocation3 + $0x520] ss:$276 sps:$4 sm:$0xff]   ;;  %v8330_v5 = vld [vmem:[#allocation3 + $0x528] ss:$276 sps:$4 sm:$0xff]  }
 0x197   :  { %4618 = vmatpush1.bf16.msra.mxu0 %v8237_v6  ;;  %4661 = vmatpush1.bf16.msra.mxu1 %v8240_v7  ;;  %v8335_v6 = vld [vmem:[#allocation3 + $0x2fc] ss:$276 sps:$4 sm:$0xff]   ;;  %v8338_v7 = vld [vmem:[#allocation3 + $0x304] ss:$276 sps:$4 sm:$0xff]  }
 0x198   :  { %4619 = vmatprep.subr.bf16.mxu0 %v8245_v8  ;;  %4662 = vmatprep.subr.bf16.mxu1 %v8248_v9  ;;  %v8333_v8 = vld [vmem:[#allocation3 + $0x2f8] ss:$276 sps:$4 sm:$0xff]   ;;  %v8336_v9 = vld [vmem:[#allocation3 + $0x300] ss:$276 sps:$4 sm:$0xff]  }
 0x19b   :  { %4620 = vmatpush1.bf16.msra.mxu0 %v8243_v10  ;;  %4663 = vmatpush1.bf16.msra.mxu1 %v8246_v11  ;;  %v8341_v10 = vld [vmem:[#allocation3 + $0xd4] ss:$276 sps:$4 sm:$0xff]   ;;  %v8344_v11 = vld [vmem:[#allocation3 + $0xdc] ss:$276 sps:$4 sm:$0xff]  }
 0x19c   :  { %4691 = vmatprep.subr.bf16.mxu0 %v8251_v13  ;;  %4734 = vmatprep.subr.bf16.mxu1 %v8254_v14  ;;  %v8339_v13 = vld [vmem:[#allocation3 + $0xd0] ss:$276 sps:$4 sm:$0xff]   ;;  %v8342_v14 = vld [vmem:[#allocation3 + $0xd8] ss:$276 sps:$4 sm:$0xff]  }
 0x19e   :  { %4638 = vmatmul.mubr.bf16.vlgmr.msra.gmra.mxu0 %v8921_v49  ;;  %4681 = vmatmul.mubr.bf16.vlgmr.msra.gmra.mxu1 %v8921_v49 }
 0x19f   :  { %4692 = vmatpush1.bf16.msra.mxu0 %v8249_v15  ;;  %4735 = vmatpush1.bf16.msra.mxu1 %v8252_v16  ;;  %v8347_v15 = vld [vmem:[#allocation3 + $0xffc] ss:$276 sps:$4 sm:$0xff]   ;;  %v8350_v16 = vld [vmem:[#allocation3 + $0x1004] ss:$276 sps:$4 sm:$0xff]  }
 0x1a0   :  { %4693 = vmatprep.subr.bf16.mxu0 %v8257_v17  ;;  %4736 = vmatprep.subr.bf16.mxu1 %v8260_v18  ;;  %v8345_v17 = vld [vmem:[#allocation3 + $0xff8] ss:$276 sps:$4 sm:$0xff]   ;;  %v8348_v18 = vld [vmem:[#allocation3 + $0x1000] ss:$276 sps:$4 sm:$0xff]  }
 0x1a1   :  { %4723 = vmatprep.mubr.bf16.mxu0 %v8832_v0  ;;  %4766 = vmatprep.mubr.bf16.mxu1 %v8832_v0 }
 0x1a3   :  { %4694 = vmatpush1.bf16.msra.mxu0 %v8255_v19  ;;  %4737 = vmatpush1.bf16.msra.mxu1 %v8258_v20  ;;  %v8353_v19 = vld [vmem:[#allocation3 + $0xdd4] ss:$276 sps:$4 sm:$0xff]   ;;  %v8356_v20 = vld [vmem:[#allocation3 + $0xddc] ss:$276 sps:$4 sm:$0xff]  }
 0x1a4   :  { %4695 = vmatprep.subr.bf16.mxu0 %v8263_v21  ;;  %4738 = vmatprep.subr.bf16.mxu1 %v8266_v22  ;;  %v8351_v21 = vld [vmem:[#allocation3 + $0xdd0] ss:$276 sps:$4 sm:$0xff]   ;;  %v8354_v22 = vld [vmem:[#allocation3 + $0xdd8] ss:$276 sps:$4 sm:$0xff]  }
 0x1a7   :  { %4696 = vmatpush1.bf16.msra.mxu0 %v8261_v23  ;;  %4739 = vmatpush1.bf16.msra.mxu1 %v8264_v24  ;;  %v8359_v23 = vld [vmem:[#allocation3 + $0xbac] ss:$276 sps:$4 sm:$0xff]   ;;  %v8362_v24 = vld [vmem:[#allocation3 + $0xbb4] ss:$276 sps:$4 sm:$0xff]  }
 0x1a8   :  { %4697 = vmatprep.subr.bf16.mxu0 %v8269_v25  ;;  %4740 = vmatprep.subr.bf16.mxu1 %v8272_v12  ;;  %v8357_v25 = vld [vmem:[#allocation3 + $0xba8] ss:$276 sps:$4 sm:$0xff]   ;;  %v8360_v12 = vld [vmem:[#allocation3 + $0xbb0] ss:$276 sps:$4 sm:$0xff]  }
 0x1ab   :  { %4698 = vmatpush1.bf16.msra.mxu0 %v8267_v26  ;;  %4741 = vmatpush1.bf16.msra.mxu1 %v8270_v27  ;;  %v8365_v26 = vld [vmem:[#allocation3 + $0x984] ss:$276 sps:$4 sm:$0xff]   ;;  %v8368_v27 = vld [vmem:[#allocation3 + $0x98c] ss:$276 sps:$4 sm:$0xff]  }
 0x1ac   :  { %4699 = vmatprep.subr.bf16.mxu0 %v8275_v28  ;;  %4742 = vmatprep.subr.bf16.mxu1 %v8278_v29  ;;  %v8363_v28 = vld [vmem:[#allocation3 + $0x980] ss:$276 sps:$4 sm:$0xff]   ;;  %v8366_v29 = vld [vmem:[#allocation3 + $0x988] ss:$276 sps:$4 sm:$0xff]  }
 0x1af   :  { %4700 = vmatpush1.bf16.msra.mxu0 %v8273_v30  ;;  %4743 = vmatpush1.bf16.msra.mxu1 %v8276_v31  ;;  %v8371_v30 = vld [vmem:[#allocation3 + $0x75c] ss:$276 sps:$4 sm:$0xff]   ;;  %v8374_v31 = vld [vmem:[#allocation3 + $0x764] ss:$276 sps:$4 sm:$0xff]  }
 0x1b0   :  { %4701 = vmatprep.subr.bf16.mxu0 %v8281_v32  ;;  %4744 = vmatprep.subr.bf16.mxu1 %v8284_v33  ;;  %v8369_v32 = vld [vmem:[#allocation3 + $0x758] ss:$276 sps:$4 sm:$0xff]   ;;  %v8372_v33 = vld [vmem:[#allocation3 + $0x760] ss:$276 sps:$4 sm:$0xff]  }
 0x1b3   :  { %4702 = vmatpush1.bf16.msra.mxu0 %v8279_v34  ;;  %4745 = vmatpush1.bf16.msra.mxu1 %v8282_v36  ;;  %v8377_v34 = vld [vmem:[#allocation3 + $0x534] ss:$276 sps:$4 sm:$0xff]   ;;  %v8380_v36 = vld [vmem:[#allocation3 + $0x53c] ss:$276 sps:$4 sm:$0xff]  }
 0x1b4   :  { %4703 = vmatprep.subr.bf16.mxu0 %v8287_v37  ;;  %4746 = vmatprep.subr.bf16.mxu1 %v8290_v38  ;;  %v8375_v37 = vld [vmem:[#allocation3 + $0x530] ss:$276 sps:$4 sm:$0xff]   ;;  %v8378_v38 = vld [vmem:[#allocation3 + $0x538] ss:$276 sps:$4 sm:$0xff]  }
 0x1b7   :  { %4704 = vmatpush1.bf16.msra.mxu0 %v8285_v39  ;;  %4747 = vmatpush1.bf16.msra.mxu1 %v8288_v40  ;;  %v8383_v39 = vld [vmem:[#allocation3 + $0x30c] ss:$276 sps:$4 sm:$0xff]   ;;  %v8386_v40 = vld [vmem:[#allocation3 + $0x314] ss:$276 sps:$4 sm:$0xff]  }
 0x1b8   :  { %4705 = vmatprep.subr.bf16.mxu0 %v8293_v41  ;;  %4748 = vmatprep.subr.bf16.mxu1 %v8296_v42  ;;  %v8381_v41 = vld [vmem:[#allocation3 + $0x308] ss:$276 sps:$4 sm:$0xff]   ;;  %v8384_v42 = vld [vmem:[#allocation3 + $0x310] ss:$276 sps:$4 sm:$0xff]  }
 0x1bb   :  { %4706 = vmatpush1.bf16.msra.mxu0 %v8291_v43  ;;  %4749 = vmatpush1.bf16.msra.mxu1 %v8294_v44  ;;  %v8389_v43 = vld [vmem:[#allocation3 + $0xe4] ss:$276 sps:$4 sm:$0xff]   ;;  %v8392_v44 = vld [vmem:[#allocation3 + $0xec] ss:$276 sps:$4 sm:$0xff]  }
 0x1bc   :  { %4777 = vmatprep.subr.bf16.mxu0 %v8299_v45  ;;  %4820 = vmatprep.subr.bf16.mxu1 %v8302_v46  ;;  %v8387_v45 = vld [vmem:[#allocation3 + $0xe0] ss:$276 sps:$4 sm:$0xff]   ;;  %v8390_v46 = vld [vmem:[#allocation3 + $0xe8] ss:$276 sps:$4 sm:$0xff]  }
 0x1be   :  { %4724 = vmatmul.mubr.bf16.vlgmr.msra.gmra.mxu0 %v8921_v49  ;;  %4767 = vmatmul.mubr.bf16.vlgmr.msra.gmra.mxu1 %v8921_v49 }
 0x1bf   :  { %4778 = vmatpush1.bf16.msra.mxu0 %v8297_v47  ;;  %4821 = vmatpush1.bf16.msra.mxu1 %v8300_v48  ;;  %v8395_v47 = vld [vmem:[#allocation3 + $0x100c] ss:$276 sps:$4 sm:$0xff]   ;;  %v8398_v48 = vld [vmem:[#allocation3 + $0x1014] ss:$276 sps:$4 sm:$0xff]  }
 0x1c0   :  { %4779 = vmatprep.subr.bf16.mxu0 %v8305_v50  ;;  %4822 = vmatprep.subr.bf16.mxu1 %v8308_v35  ;;  %v8393_v50 = vld [vmem:[#allocation3 + $0x1008] ss:$276 sps:$4 sm:$0xff]   ;;  %v8396_v35 = vld [vmem:[#allocation3 + $0x1010] ss:$276 sps:$4 sm:$0xff]  }
 0x1c1   :  { %4809 = vmatprep.mubr.bf16.mxu0 %v8832_v0  ;;  %4852 = vmatprep.mubr.bf16.mxu1 %v8832_v0 }
 0x1c3   :  { %4780 = vmatpush1.bf16.msra.mxu0 %v8303_v51  ;;  %4823 = vmatpush1.bf16.msra.mxu1 %v8306_v52  ;;  %v8401_v51 = vld [vmem:[#allocation3 + $0xde4] ss:$276 sps:$4 sm:$0xff]   ;;  %v8404_v52 = vld [vmem:[#allocation3 + $0xdec] ss:$276 sps:$4 sm:$0xff]  }
 0x1c4   :  { %4781 = vmatprep.subr.bf16.mxu0 %v8311_v53  ;;  %4824 = vmatprep.subr.bf16.mxu1 %v8314_v54  ;;  %v8399_v53 = vld [vmem:[#allocation3 + $0xde0] ss:$276 sps:$4 sm:$0xff]   ;;  %v8402_v54 = vld [vmem:[#allocation3 + $0xde8] ss:$276 sps:$4 sm:$0xff]  }
 0x1c7   :  { %4782 = vmatpush1.bf16.msra.mxu0 %v8309_v55  ;;  %4825 = vmatpush1.bf16.msra.mxu1 %v8312_v56  ;;  %v8407_v55 = vld [vmem:[#allocation3 + $0xbbc] ss:$276 sps:$4 sm:$0xff]   ;;  %v8410_v56 = vld [vmem:[#allocation3 + $0xbc4] ss:$276 sps:$4 sm:$0xff]  }
 0x1c8   :  { %4783 = vmatprep.subr.bf16.mxu0 %v8317_v57  ;;  %4826 = vmatprep.subr.bf16.mxu1 %v8320_v58  ;;  %v8405_v57 = vld [vmem:[#allocation3 + $0xbb8] ss:$276 sps:$4 sm:$0xff]   ;;  %v8408_v58 = vld [vmem:[#allocation3 + $0xbc0] ss:$276 sps:$4 sm:$0xff]  }
 0x1cb   :  { %4784 = vmatpush1.bf16.msra.mxu0 %v8315_v59  ;;  %4827 = vmatpush1.bf16.msra.mxu1 %v8318_v60  ;;  %v8413_v59 = vld [vmem:[#allocation3 + $0x994] ss:$276 sps:$4 sm:$0xff]   ;;  %v8416_v60 = vld [vmem:[#allocation3 + $0x99c] ss:$276 sps:$4 sm:$0xff]  }
 0x1cc   :  { %4785 = vmatprep.subr.bf16.mxu0 %v8323_v61  ;;  %4828 = vmatprep.subr.bf16.mxu1 %v8326_v62  ;;  %v8411_v61 = vld [vmem:[#allocation3 + $0x990] ss:$276 sps:$4 sm:$0xff]   ;;  %v8414_v62 = vld [vmem:[#allocation3 + $0x998] ss:$276 sps:$4 sm:$0xff]  }
 0x1cf   :  { %4786 = vmatpush1.bf16.msra.mxu0 %v8321_v63  ;;  %4829 = vmatpush1.bf16.msra.mxu1 %v8324_v1  ;;  %v8419_v63 = vld [vmem:[#allocation3 + $0x76c] ss:$276 sps:$4 sm:$0xff]   ;;  %v8422_v1 = vld [vmem:[#allocation3 + $0x774] ss:$276 sps:$4 sm:$0xff]  }
 0x1d0   :  { %4787 = vmatprep.subr.bf16.mxu0 %v8329_v2  ;;  %4830 = vmatprep.subr.bf16.mxu1 %v8332_v3  ;;  %v8417_v2 = vld [vmem:[#allocation3 + $0x768] ss:$276 sps:$4 sm:$0xff]   ;;  %v8420_v3 = vld [vmem:[#allocation3 + $0x770] ss:$276 sps:$4 sm:$0xff]  }
 0x1d3   :  { %4788 = vmatpush1.bf16.msra.mxu0 %v8327_v4  ;;  %4831 = vmatpush1.bf16.msra.mxu1 %v8330_v5  ;;  %v8425_v4 = vld [vmem:[#allocation3 + $0x544] ss:$276 sps:$4 sm:$0xff]   ;;  %v8428_v5 = vld [vmem:[#allocation3 + $0x54c] ss:$276 sps:$4 sm:$0xff]  }
 0x1d4   :  { %4789 = vmatprep.subr.bf16.mxu0 %v8335_v6  ;;  %4832 = vmatprep.subr.bf16.mxu1 %v8338_v7  ;;  %v8423_v6 = vld [vmem:[#allocation3 + $0x540] ss:$276 sps:$4 sm:$0xff]   ;;  %v8426_v7 = vld [vmem:[#allocation3 + $0x548] ss:$276 sps:$4 sm:$0xff]  }
 0x1d7   :  { %4790 = vmatpush1.bf16.msra.mxu0 %v8333_v8  ;;  %4833 = vmatpush1.bf16.msra.mxu1 %v8336_v9  ;;  %v8431_v8 = vld [vmem:[#allocation3 + $0x31c] ss:$276 sps:$4 sm:$0xff]   ;;  %v8434_v9 = vld [vmem:[#allocation3 + $0x324] ss:$276 sps:$4 sm:$0xff]  }
 0x1d8   :  { %4791 = vmatprep.subr.bf16.mxu0 %v8341_v10  ;;  %4834 = vmatprep.subr.bf16.mxu1 %v8344_v11  ;;  %v8429_v10 = vld [vmem:[#allocation3 + $0x318] ss:$276 sps:$4 sm:$0xff]   ;;  %v8432_v11 = vld [vmem:[#allocation3 + $0x320] ss:$276 sps:$4 sm:$0xff]  }
 0x1db   :  { %4792 = vmatpush1.bf16.msra.mxu0 %v8339_v13  ;;  %4835 = vmatpush1.bf16.msra.mxu1 %v8342_v14  ;;  %v10506_v13 = vlaneseq  ;;  %v8437_v14 = vld [vmem:[#allocation3 + $0xf4] ss:$276 sps:$4 sm:$0xff]  }
 0x1dc   :  { %4863 = vmatprep.subr.bf16.mxu0 %v8347_v15  ;;  %4906 = vmatprep.subr.bf16.mxu1 %v8350_v16  ;;  %v8440_v15 = vld [vmem:[#allocation3 + $0xfc] ss:$276 sps:$4 sm:$0xff]   ;;  %v3693_v16 = vpop.f32.mrf.mxu0 }
 0x1de   :  { %4810 = vmatmul.mubr.bf16.vlgmr.msra.gmra.mxu0 %v8921_v49  ;;  %4853 = vmatmul.mubr.bf16.vlgmr.msra.gmra.mxu1 %v8921_v49 }
 0x1df   :  { %4864 = vmatpush1.bf16.msra.mxu0 %v8345_v17  ;;  %4907 = vmatpush1.bf16.msra.mxu1 %v8348_v18  ;;  %v8435_v17 = vld [vmem:[#allocation3 + $0xf0] ss:$276 sps:$4 sm:$0xff]   ;;  %v8438_v18 = vld [vmem:[#allocation3 + $0xf8] ss:$276 sps:$4 sm:$0xff]  }
 0x1e0   :  { %4865 = vmatprep.subr.bf16.mxu0 %v8353_v19  ;;  %4908 = vmatprep.subr.bf16.mxu1 %v8356_v20  ;;  %v8944_v19 = vshrl.u32 %v10506_v13, 7  ;;  %v8443_v20 = vld [vmem:[#allocation3 + $0x101c] ss:$276 sps:$4 sm:$0xff]  }
 0x1e1   :  { %4895 = vmatprep.mubr.bf16.mxu0 %v8832_v0  ;;  %4938 = vmatprep.mubr.bf16.mxu1 %v8832_v0 }
 0x1e3   :  { %4866 = vmatpush1.bf16.msra.mxu0 %v8351_v21  ;;  %4909 = vmatpush1.bf16.msra.mxu1 %v8354_v22  ;;  %v8446_v21 = vld [vmem:[#allocation3 + $0x1024] ss:$276 sps:$4 sm:$0xff]   ;;  %v3736_v22 = vpop.f32.mrf.mxu1 }
 0x1e4   :  { %4867 = vmatprep.subr.bf16.mxu0 %v8359_v23  ;;  %4910 = vmatprep.subr.bf16.mxu1 %v8362_v24  ;;  %v3695_v23 = vpop.f32.mrf.mxu0  ;;  %v8441_v24 = vld [vmem:[#allocation3 + $0x1018] ss:$276 sps:$4 sm:$0xff]  }
 0x1e7   :  { %4868 = vmatpush1.bf16.msra.mxu0 %v8357_v25  ;;  %4911 = vmatpush1.bf16.msra.mxu1 %v8360_v12  ;;  %v8444_v25 = vld [vmem:[#allocation3 + $0x1020] ss:$276 sps:$4 sm:$0xff]   ;;  %v8947_v12 = vsub.s32 0, %v8944_v19 }
 0x1e8   :  { %4869 = vmatprep.subr.bf16.mxu0 %v8365_v26  ;;  %4912 = vmatprep.subr.bf16.mxu1 %v8368_v27  ;;  %v8449_v26 = vld [vmem:[#allocation3 + $0xdf4] ss:$276 sps:$4 sm:$0xff]   ;;  %v8452_v27 = vld [vmem:[#allocation3 + $0xdfc] ss:$276 sps:$4 sm:$0xff]  }
 0x1eb   :  { %4870 = vmatpush1.bf16.msra.mxu0 %v8363_v28  ;;  %4913 = vmatpush1.bf16.msra.mxu1 %v8366_v29  ;;  %v8949_v28 = vld [vmem:[#allocation5] sm:$0xff]  ;;  %v8952_v29 = vsub.s32 2, %v8944_v19 }
 0x1ec   :  { %4871 = vmatprep.subr.bf16.mxu0 %v8371_v30  ;;  %4914 = vmatprep.subr.bf16.mxu1 %v8374_v31  ;;  %v8955_v30 = vsub.s32 1, %v8944_v19  ;;  %v8958_v31 = vsub.s32 3, %v8944_v19 }
 0x1ef   :  { %4872 = vmatpush1.bf16.msra.mxu0 %v8369_v32  ;;  %4915 = vmatpush1.bf16.msra.mxu1 %v8372_v33  ;;  %v3738_v32 = vpop.f32.mrf.mxu1  ;;  %v3697_v33 = vpop.f32.mrf.mxu0 }
 0x1f0   :  { %4873 = vmatprep.subr.bf16.mxu0 %v8377_v34  ;;  %4916 = vmatprep.subr.bf16.mxu1 %v8380_v36  ;;  %v8447_v34 = vld [vmem:[#allocation3 + $0xdf0] ss:$276 sps:$4 sm:$0xff]   ;;  %v8450_v36 = vld [vmem:[#allocation3 + $0xdf8] ss:$276 sps:$4 sm:$0xff]  }
 0x1f3   :  { %4874 = vmatpush1.bf16.msra.mxu0 %v8375_v37  ;;  %4917 = vmatpush1.bf16.msra.mxu1 %v8378_v38  ;;  %v5600_v37 = vrot.slane %v8949_v28, %v8947_v12  ;;  %v8455_v38 = vld [vmem:[#allocation3 + $0xbcc] ss:$276 sps:$4 sm:$0xff]  }
 0x1f4   :  { %4875 = vmatprep.subr.bf16.mxu0 %v8383_v39  ;;  %4918 = vmatprep.subr.bf16.mxu1 %v8386_v40  ;;  %v8458_v39 = vld [vmem:[#allocation3 + $0xbd4] ss:$276 sps:$4 sm:$0xff]   ;;  %v5608_v40 = vrot.slane %v8949_v28, %v8952_v29 }
 0x1f7   :  { %4876 = vmatpush1.bf16.msra.mxu0 %v8381_v41  ;;  %4919 = vmatpush1.bf16.msra.mxu1 %v8384_v42  ;;  %v5604_v41 = vrot.slane %v8949_v28, %v8955_v30  ;;  %v5612_v42 = vrot.slane %v8949_v28, %v8958_v31 }
 0x1f8   :  { %4877 = vmatprep.subr.bf16.mxu0 %v8389_v43  ;;  %4920 = vmatprep.subr.bf16.mxu1 %v8392_v44  ;;  %v3740_v43 = vpop.f32.mrf.mxu1  ;;  %v3699_v44 = vpop.f32.mrf.mxu0 }
 0x1fb   :  { %4878 = vmatpush1.bf16.msra.mxu0 %v8387_v45  ;;  %4921 = vmatpush1.bf16.msra.mxu1 %v8390_v46  ;;  %v8973_v45 = vsub.s32 4, %v8944_v19  ;;  %v8453_v46 = vld [vmem:[#allocation3 + $0xbc8] ss:$276 sps:$4 sm:$0xff]  }
 0x1fc   :  { %4949 = vmatprep.subr.bf16.mxu0 %v8395_v47  ;;  %4992 = vmatprep.subr.bf16.mxu1 %v8398_v48  ;;  %v8456_v47 = vld [vmem:[#allocation3 + $0xbd0] ss:$276 sps:$4 sm:$0xff]   ;;  %v3779_v48 = vpop.f32.mrf.mxu0 }
 0x1fe   :  { %4896 = vmatmul.mubr.bf16.vlgmr.msra.gmra.mxu0 %v8921_v49  ;;  %4939 = vmatmul.mubr.bf16.vlgmr.msra.gmra.mxu1 %v8921_v49 }
 0x1ff   :  { %4950 = vmatpush1.bf16.msra.mxu0 %v8393_v50  ;;  %4993 = vmatpush1.bf16.msra.mxu1 %v8396_v35  ;;  %v8461_v50 = vld [vmem:[#allocation3 + $0x9a4] ss:$276 sps:$4 sm:$0xff]   ;;  %v8464_v35 = vld [vmem:[#allocation3 + $0x9ac] ss:$276 sps:$4 sm:$0xff]  }
 0x200   :  { %4951 = vmatprep.subr.bf16.mxu0 %v8401_v51  ;;  %4994 = vmatprep.subr.bf16.mxu1 %v8404_v52  ;;  %v8975_v51 = vadd.f32 %v5600_v37, %v3693_v16  ;;  %v8977_v52 = vadd.f32 %v5608_v40, %v3736_v22 }
 0x201   :  { %4981 = vmatprep.mubr.bf16.mxu0 %v8832_v0  ;;  %5024 = vmatprep.mubr.bf16.mxu1 %v8832_v0 }
 0x202   :  { %10710 = vst [vmem:[#allocation9_spill] sm:$0xff] %v8977_v52 }
 0x203   :  { %4952 = vmatpush1.bf16.msra.mxu0 %v8399_v53  ;;  %4995 = vmatpush1.bf16.msra.mxu1 %v8402_v54  ;;  %v8979_v53 = vadd.f32 %v5604_v41, %v3695_v23  ;;  %v3742_v54 = vpop.f32.mrf.mxu1 }
 0x204   :  { %4953 = vmatprep.subr.bf16.mxu0 %v8407_v55  ;;  %4996 = vmatprep.subr.bf16.mxu1 %v8410_v56  ;;  %v5616_v55 = vrot.slane %v8949_v28, %v8973_v45  ;;  %v8986_v56 = vsub.s32 6, %v8944_v19 }
 0x207   :  { %4954 = vmatpush1.bf16.msra.mxu0 %v8405_v57  ;;  %4997 = vmatpush1.bf16.msra.mxu1 %v8408_v58  ;;  %v8459_v57 = vld [vmem:[#allocation3 + $0x9a0] ss:$276 sps:$4 sm:$0xff]   ;;  %v8462_v58 = vld [vmem:[#allocation3 + $0x9a8] ss:$276 sps:$4 sm:$0xff]  }
 0x208   :  { %4955 = vmatprep.subr.bf16.mxu0 %v8413_v59  ;;  %4998 = vmatprep.subr.bf16.mxu1 %v8416_v60  ;;  %v3781_v59 = vpop.f32.mrf.mxu0  ;;  %v8467_v60 = vld [vmem:[#allocation3 + $0x77c] ss:$276 sps:$4 sm:$0xff]  }
 0x20b   :  { %4956 = vmatpush1.bf16.msra.mxu0 %v8411_v61  ;;  %4999 = vmatpush1.bf16.msra.mxu1 %v8414_v62  ;;  %v8470_v61 = vld [vmem:[#allocation3 + $0x784] ss:$276 sps:$4 sm:$0xff]   ;;  %v6080_v62 = vmax.f32 %v8975_v51, %v8977_v52 }
 0x20c   :  { %4957 = vmatprep.subr.bf16.mxu0 %v8419_v63  ;;  %5000 = vmatprep.subr.bf16.mxu1 %v8422_v1  ;;  %v8992_v1 = vadd.f32 %v5604_v41, %v3699_v44  ;;  %v8485_v44 = vld [vmem:[#allocation3 + $0x104] ss:$276 sps:$4 sm:$0xff]  }
 0x20e   :  { %10712 = vst [vmem:[#allocation11_spill] sm:$0xff] %v8992_v1 }
 0x20f   :  { %4958 = vmatpush1.bf16.msra.mxu0 %v8417_v2  ;;  %5001 = vmatpush1.bf16.msra.mxu1 %v8420_v3  ;;  %v8994_v2 = vadd.f32 %v5612_v42, %v3742_v54  ;;  %v8996_v3 = vadd.f32 %v5600_v37, %v3697_v33 }
 0x210   :  { %4959 = vmatprep.subr.bf16.mxu0 %v8425_v4  ;;  %5002 = vmatprep.subr.bf16.mxu1 %v8428_v5  ;;  %v8998_v4 = vadd.f32 %v5608_v40, %v3740_v43  ;;  %v3822_v5 = vpop.f32.mrf.mxu1  ;;  %v8480_v43 = vld [vmem:[#allocation3 + $0x330] ss:$276 sps:$4 sm:$0xff]  }
 0x211   :  { %10713 = vst [vmem:[#allocation12_spill] sm:$0xff] %v8994_v2  ;;  %10714 = vst [vmem:[#allocation13_spill] sm:$0xff] %v8996_v3  ;;  %v6150_v16 = vmax.f32 %v8992_v1, %v8994_v2  ;;  %v5583_v2 = vld [vmem:[#allocation5 + $0x20] sm:$0xff] }
 0x212   :  { %10715 = vst [vmem:[#allocation14_spill] sm:$0xff] %v8998_v4 }
 0x213   :  { %4960 = vmatpush1.bf16.msra.mxu0 %v8423_v6  ;;  %5003 = vmatpush1.bf16.msra.mxu1 %v8426_v7  ;;  %v9000_v6 = vadd.f32 %v5616_v55, %v3779_v48  ;;  %v5624_v7 = vrot.slane %v8949_v28, %v8986_v56 }
 0x214   :  { %4961 = vmatprep.subr.bf16.mxu0 %v8431_v8  ;;  %5004 = vmatprep.subr.bf16.mxu1 %v8434_v9  ;;  %v8465_v8 = vld [vmem:[#allocation3 + $0x778] ss:$276 sps:$4 sm:$0xff]   ;;  %v8468_v9 = vld [vmem:[#allocation3 + $0x780] ss:$276 sps:$4 sm:$0xff]  }
 0x215   :  { %v9012_v22 = vadd.f32 %v5624_v7, %v3822_v5 }
 0x217   :  { %4962 = vmatpush1.bf16.msra.mxu0 %v8429_v10  ;;  %5005 = vmatpush1.bf16.msra.mxu1 %v8432_v11  ;;  %v3783_v10 = vpop.f32.mrf.mxu0  ;;  %v8473_v11 = vld [vmem:[#allocation3 + $0x554] ss:$276 sps:$4 sm:$0xff]   ;;  %10716 = vst [vmem:[#allocation15_spill] sm:$0xff] %v9012_v22 }
 0x218   :  { %4963 = vmatprep.subr.bf16.mxu0 %v8437_v14  ;;  %5006 = vmatprep.subr.bf16.mxu1 %v8440_v15  ;;  %v8476_v14 = vld [vmem:[#allocation3 + $0x55c] ss:$276 sps:$4 sm:$0xff]   ;;  %v9014_v23 = vadd.f32 %v5616_v55, %v3783_v10 }
 0x21a   :  { %10717 = vst [vmem:[#allocation16_spill] sm:$0xff] %v9014_v23 }
 0x21b   :  { %4964 = vmatpush1.bf16.msra.mxu0 %v8435_v17  ;;  %5007 = vmatpush1.bf16.msra.mxu1 %v8438_v18  ;;  %v9007_v17 = vsub.s32 5, %v8944_v19  ;;  %v6149_v18 = vmax.f32 %v8996_v3, %v8998_v4 }
 0x21c   :  { %5035 = vmatprep.subr.bf16.mxu0 %v8443_v20  ;;  %5078 = vmatprep.subr.bf16.mxu1 %v8446_v21  ;;  %v3824_v20 = vpop.f32.mrf.mxu1 }
 0x21d   :  { %v6151_v33 = vmax.f32 %v6149_v18, %v6150_v16 }
 0x21e   :  { %4982 = vmatmul.mubr.bf16.vlgmr.msra.gmra.mxu0 %v8921_v49  ;;  %5025 = vmatmul.mubr.bf16.vlgmr.msra.gmra.mxu1 %v8921_v49  ;;  %v3826_v37 = vpop.f32.mrf.mxu1 }
 0x21f   :  { %5036 = vmatpush1.bf16.msra.mxu0 %v8441_v24  ;;  %5079 = vmatpush1.bf16.msra.mxu1 %v8444_v25  ;;  %v8471_v24 = vld [vmem:[#allocation3 + $0x550] ss:$276 sps:$4 sm:$0xff]   ;;  %v8474_v25 = vld [vmem:[#allocation3 + $0x558] ss:$276 sps:$4 sm:$0xff]   ;;  %v6153_v41 = vmax.f32 %v6151_v33, %v9014_v23  ;;  %v9029_v48 = vadd.f32 %v5624_v7, %v3826_v37 }
 0x220   :  { %5037 = vmatprep.subr.bf16.mxu0 %v8449_v26  ;;  %5080 = vmatprep.subr.bf16.mxu1 %v8452_v27  ;;  %v3785_v26 = vpop.f32.mrf.mxu0  ;;  %v8479_v27 = vld [vmem:[#allocation3 + $0x32c] ss:$276 sps:$4 sm:$0xff]  }
 0x221   :  { %5067 = vmatprep.mubr.bf16.mxu0 %v8832_v0  ;;  %5110 = vmatprep.mubr.bf16.mxu1 %v8832_v0  ;;  %v8981_v0 = vadd.f32 %v5612_v42, %v3738_v32  ;;  %v8482_v32 = vld [vmem:[#allocation3 + $0x334] ss:$276 sps:$4 sm:$0xff]   ;;  %10719 = vst [vmem:[#allocation18_spill] sm:$0xff] %v9029_v48 }
 0x222   :  { %v8477_v42 = vld [vmem:[#allocation3 + $0x328] ss:$276 sps:$4 sm:$0xff]  }
 0x223   :  { %5038 = vmatpush1.bf16.msra.mxu0 %v8447_v34  ;;  %5081 = vmatpush1.bf16.msra.mxu1 %v8450_v36  ;;  %10711 = vst [vmem:[#allocation10_spill] sm:$0xff] %v8981_v0  ;;  %v6081_v63 = vmax.f32 %v8979_v53, %v8981_v0  ;;  %v5620_v34 = vrot.slane %v8949_v28, %v9007_v17  ;;  %v9019_v36 = vsub.s32 7, %v8944_v19 }
 0x224   :  { %5039 = vmatprep.subr.bf16.mxu0 %v8455_v38  ;;  %5082 = vmatprep.subr.bf16.mxu1 %v8458_v39  ;;  %v3865_v38 = vpop.f32.mrf.mxu0  ;;  %v9021_v39 = vld [vmem:[#allocation5 + $0x8] sm:$0xff] }
 0x225   :  { %v6082_v15 = vmax.f32 %v6080_v62, %v6081_v63  ;;  %v5628_v19 = vrot.slane %v8949_v28, %v9019_v36  ;;  %v9039_v62 = vadd.f32 %v5620_v34, %v3785_v26 }
 0x226   :  { %v3867_v54 = vpop.f32.mrf.mxu0 }
 0x227   :  { %5040 = vmatpush1.bf16.msra.mxu0 %v8453_v46  ;;  %5083 = vmatpush1.bf16.msra.mxu1 %v8456_v47  ;;  %v6084_v21 = vmax.f32 %v6082_v15, %v9000_v6  ;;  %v8488_v46 = vld [vmem:[#allocation3 + $0x10c] ss:$276 sps:$4 sm:$0xff]   ;;  %v9025_v47 = vadd.f32 %v5620_v34, %v3781_v59  ;;  %v9037_v28 = vadd.f32 %v5628_v19, %v3824_v20 }
 0x228   :  { %5041 = vmatprep.subr.bf16.mxu0 %v8461_v50  ;;  %5084 = vmatprep.subr.bf16.mxu1 %v8464_v35  ;;  %v5632_v50 = vrot.slane %v9021_v39, %v8947_v12  ;;  %v3828_v35 = vpop.f32.mrf.mxu1  ;;  %10721 = vst [vmem:[#allocation20_spill] sm:$0xff] %v9039_v62  ;;  %v3869_v5 = vpop.f32.mrf.mxu0 }
 0x229   :  { %v6083_v40 = vmax.f32 %v9012_v22, %v6084_v21  ;;  %10718 = vst [vmem:[#allocation17_spill] sm:$0xff] %v9025_v47  ;;  %10720 = vst [vmem:[#allocation19_spill] sm:$0xff] %v9037_v28 }
 0x22a   :  { %v3908_v59 = vpop.f32.mrf.mxu1  ;;  %v9041_v63 = vadd.f32 %v5632_v50, %v3865_v38  ;;  %v9051_v18 = vadd.f32 %v5632_v50, %v3869_v5  ;;  %v3871_v20 = vpop.f32.mrf.mxu0  ;;  %v5648_v38 = vrot.slane %v9021_v39, %v8973_v45 }
 0x22b   :  { %5042 = vmatpush1.bf16.msra.mxu0 %v8459_v57  ;;  %5085 = vmatpush1.bf16.msra.mxu1 %v8462_v58  ;;  %v6085_v55 = vmax.f32 %v6083_v40, %v9025_v47  ;;  %v6152_v57 = vmax.f32 %v9029_v48, %v6153_v41  ;;  %v8483_v58 = vld [vmem:[#allocation3 + $0x100] ss:$276 sps:$4 sm:$0xff]   ;;  %v8491_v40 = vld [vmem:[#allocation3 + $0xbd8] ss:$276 sps:$4 sm:$0xff]  }
 0x22c   :  { %5043 = vmatprep.subr.bf16.mxu0 %v8467_v60  ;;  %5086 = vmatprep.subr.bf16.mxu1 %v8470_v61  ;;  %v8486_v60 = vld [vmem:[#allocation3 + $0x108] ss:$276 sps:$4 sm:$0xff]   ;;  %v5640_v61 = vrot.slane %v9021_v39, %v8952_v29  ;;  %10722 = vst [vmem:[#allocation21_spill] sm:$0xff] %v9041_v63  ;;  %v3910_v10 = vpop.f32.mrf.mxu1  ;;  %10725 = vst [vmem:[#allocation24_spill] sm:$0xff] %v9051_v18 }
 0x22d   :  { %v6086_v7 = vmax.f32 %v9037_v28, %v6085_v55  ;;  %v8492_v55 = vld [vmem:[#allocation3 + $0x9b0] ss:$276 sps:$4 sm:$0xff]  }
 0x22e   :  { %v9049_v16 = vadd.f32 %v5640_v61, %v3908_v59  ;;  %v3912_v26 = vpop.f32.mrf.mxu1 }
 0x22f   :  { %5044 = vmatpush1.bf16.msra.mxu0 %v8465_v8  ;;  %5087 = vmatpush1.bf16.msra.mxu1 %v8468_v9  ;;  %v6154_v8 = vmax.f32 %v6152_v57, %v9039_v62  ;;  %v8489_v9 = vld [vmem:[#allocation3 + $0x1028] ss:$276 sps:$4 sm:$0xff]   ;;  %v6088_v15 = vmax.f32 %v6086_v7, %v9041_v63  ;;  %v9066_v37 = vadd.f32 %v5640_v61, %v3912_v26 }
 0x230   :  { %5045 = vmatprep.subr.bf16.mxu0 %v8473_v11  ;;  %5088 = vmatprep.subr.bf16.mxu1 %v8476_v14  ;;  %v8833_v11 = vmov 0.0   ;;  %v9046_v14 = vadd.f32 %v5628_v19, %v3828_v35  ;;  %10724 = vst [vmem:[#allocation23_spill] sm:$0xff] %v9049_v16  ;;  %v3914_v41 = vpop.f32.mrf.mxu1 }
 0x231   :  { %10727 = vst [vmem:[#allocation26_spill] sm:$0xff] %v9066_v37 }
 0x232   :  { %10723 = vst [vmem:[#allocation22_spill] sm:$0xff] %v9046_v14  ;;  %v6155_v21 = vmax.f32 %v9046_v14, %v6154_v8 }
 0x233   :  { %5046 = vmatpush1.bf16.msra.mxu0 %v8471_v24  ;;  %5089 = vmatpush1.bf16.msra.mxu1 %v8474_v25  ;;  %v5636_v24 = vrot.slane %v9021_v39, %v8955_v30  ;;  %v8490_v25 = vld [vmem:[#allocation3 + $0xe00] ss:$276 sps:$4 sm:$0xff]  }
 0x234   :  { %5047 = vmatprep.subr.bf16.mxu0 %v8479_v27  ;;  %5090 = vmatprep.subr.bf16.mxu1 %v8482_v32  ;;  %v3951_v27 = vpop.f32.mrf.mxu0  ;;  %v6087_v32 = vmax.f32 %v9049_v16, %v6088_v15  ;;  %v6157_v33 = vmax.f32 %v6155_v21, %v9051_v18 }
 0x235   :  { %v9062_v34 = vadd.f32 %v5636_v24, %v3867_v54  ;;  %v9075_v50 = vadd.f32 %v5636_v24, %v3871_v20  ;;  %v9077_v35 = vadd.f32 %v5648_v38, %v3951_v27  ;;  %v5656_v54 = vrot.slane %v9021_v39, %v8986_v56 }
 0x236   :  { %v5652_v20 = vrot.slane %v9021_v39, %v9007_v17 }
 0x237   :  { %5048 = vmatpush1.bf16.msra.mxu0 %v8477_v42  ;;  %5091 = vmatpush1.bf16.msra.mxu1 %v8480_v43  ;;  %10726 = vst [vmem:[#allocation25_spill] sm:$0xff] %v9062_v34  ;;  %v3953_v42 = vpop.f32.mrf.mxu0  ;;  %v6089_v43 = vmax.f32 %v6087_v32, %v9062_v34  ;;  %10729 = vst [vmem:[#allocation28_spill] sm:$0xff] %v9075_v50  ;;  %v8494_v32 = vld [vmem:[#allocation3 + $0x560] ss:$276 sps:$4 sm:$0xff]  }
 0x238   :  { %5049 = vmatprep.subr.bf16.mxu0 %v8485_v44  ;;  %5092 = vmatprep.subr.bf16.mxu1 %v8488_v46  ;;  %v6156_v44 = vmax.f32 %v9066_v37, %v6157_v33  ;;  %v3994_v46 = vpop.f32.mrf.mxu1  ;;  %10730 = vst [vmem:[#allocation29_spill] sm:$0xff] %v9077_v35  ;;  %v9100_v33 = vadd.f32 %v5652_v20, %v3953_v42 }
 0x239   :  { %v3955_v57 = vpop.f32.mrf.mxu0  ;;  %v9087_v7 = vadd.f32 %v5656_v54, %v3994_v46 }
 0x23a   :  { %v3996_v59 = vpop.f32.mrf.mxu1  ;;  %v9089_v8 = vadd.f32 %v5648_v38, %v3955_v57 }
 0x23b   :  { %5050 = vmatpush1.bf16.msra.mxu0 %v8483_v58  ;;  %5093 = vmatpush1.bf16.msra.mxu1 %v8486_v60  ;;  %v6158_v60 = vmax.f32 %v6156_v44, %v9075_v50 }
 0x23c   :  { %7645 = vmatprep.subr.bf16.mxu0 %v8833_v11  ;;  %10732 = vst [vmem:[#allocation31_spill] sm:$0xff] %v9089_v8  ;;  %v3998_v21 = vpop.f32.mrf.mxu1 }
 0x23d   :  { %v9104_v38 = vadd.f32 %v5656_v54, %v3998_v21 }
 0x23e   :  { %5068 = vmatmul.mubr.bf16.vlgmr.msra.gmra.mxu0 %v8921_v49  ;;  %5111 = vmatmul.mubr.bf16.vlgmr.msra.gmra.mxu1 %v8921_v49  ;;  %v5644_v49 = vrot.slane %v9021_v39, %v8958_v31 }
 0x23f   :  { %7646 = vmatpush3.bf16.msra.mxu0 %v8489_v9  ;;  %7661 = vmatprep.mubr.msk.bf16.mxu0 %vm8834_vm0, %v8833_v11  ;;  %v8493_v9 = vld [vmem:[#allocation3 + $0x788] ss:$276 sps:$4 sm:$0xff]   ;;  %10733 = vst [vmem:[#allocation32_spill] sm:$0xff] %v9104_v38 }
 0x240   :  { %7647 = vmatprep.subr.bf16.mxu0 %v8833_v11  ;;  %v9073_v19 = vadd.f32 %v5644_v49, %v3910_v10  ;;  %v9084_v61 = vadd.f32 %v5644_v49, %v3914_v41  ;;  %v3957_v10 = vpop.f32.mrf.mxu0  ;;  %v5660_v49 = vrot.slane %v9021_v39, %v9019_v36  ;;  %v4000_v41 = vpop.f32.mrf.mxu1 }
 0x242   :  { %10728 = vst [vmem:[#allocation27_spill] sm:$0xff] %v9073_v19  ;;  %v6090_v58 = vmax.f32 %v9073_v19, %v6089_v43  ;;  %10731 = vst [vmem:[#allocation30_spill] sm:$0xff] %v9084_v61  ;;  %v6159_v15 = vmax.f32 %v9084_v61, %v6158_v60  ;;  %v4037_v24 = vpop.f32.mrf.mxu0  ;;  %v4080_v57 = vpop.f32.mrf.mxu1  ;;  %v9111_v42 = vadd.f32 %v5660_v49, %v3996_v59 }
 0x243   :  { %7648 = vmatpush3.bf16.msra.mxu0 %v8490_v25  ;;  %v9095_v25 = vld [vmem:[#allocation5 + $0x10] sm:$0xff] }
 0x244   :  { %7649 = vmatprep.subr.bf16.mxu0 %v8833_v11  ;;  %v6092_v5 = vmax.f32 %v6090_v58, %v9077_v35  ;;  %v6161_v27 = vmax.f32 %v6159_v15, %v9089_v8  ;;  %v4039_v43 = vpop.f32.mrf.mxu0  ;;  %v9113_v58 = vadd.f32 %v5652_v20, %v3957_v10  ;;  %v5672_v54 = vrot.slane %v9095_v25, %v8952_v29  ;;  %v8496_v15 = vld [vmem:[#allocation3 + $0x110] ss:$276 sps:$4 sm:$0xff]   ;;  %v4082_v21 = vpop.f32.mrf.mxu1 }
 0x246   :  { %v6091_v26 = vmax.f32 %v9087_v7, %v6092_v5  ;;  %v6160_v46 = vmax.f32 %v9104_v38, %v6161_v27  ;;  %10734 = vst [vmem:[#allocation33_spill] sm:$0xff] %v9113_v58  ;;  %v4041_v60 = vpop.f32.mrf.mxu0  ;;  %v9125_v10 = vadd.f32 %v5672_v54, %v4080_v57 }
 0x247   :  { %7650 = vmatpush3.bf16.msra.mxu0 %v8491_v40  ;;  %v5664_v40 = vrot.slane %v9095_v25, %v8947_v12 }
 0x248   :  { %7651 = vmatprep.subr.bf16.mxu0 %v8833_v11  ;;  %v6093_v44 = vmax.f32 %v6091_v26, %v9100_v33  ;;  %v9122_v26 = vadd.f32 %v5660_v49, %v4000_v41  ;;  %v8783_v49 = vld [vmem:[%s10501_s0] sm:$0xff]   ;;  %v5676_v41 = vrot.slane %v9095_v25, %v8958_v31 }
 0x249   :  { %v9115_v39 = vadd.f32 %v5664_v40, %v4037_v24  ;;  %v9127_v20 = vadd.f32 %v5664_v40, %v4041_v60  ;;  %v4043_v24 = vpop.f32.mrf.mxu0  ;;  %v5680_v60 = vrot.slane %v9095_v25, %v8973_v45 }
 0x24a   :  { %v6094_v5 = vmax.f32 %v9111_v42, %v6093_v44  ;;  %10735 = vst [vmem:[#allocation34_spill] sm:$0xff] %v9122_v26  ;;  %v4084_v44 = vpop.f32.mrf.mxu1  ;;  %v9147_v13 = vadd.f32 %v5676_v41, %v4082_v21 }
 0x24b   :  { %7652 = vmatpush3.bf16.msra.mxu0 %v8492_v55  ;;  %v8495_v55 = vld [vmem:[#allocation3 + $0x338] ss:$276 sps:$4 sm:$0xff]   ;;  %10736 = vst [vmem:[#allocation35_spill] sm:$0xff] %v9127_v20  ;;  %v9141_v57 = vadd.f32 %v5672_v54, %v4084_v44  ;;  %v5688_v54 = vrot.slane %v9095_v25, %v8986_v56 }
 0x24c   :  { %7653 = vmatprep.subr.bf16.mxu0 %v8833_v11  ;;  %v6096_v59 = vmax.f32 %v6094_v5, %v9115_v39  ;;  %v4086_v5 = vpop.f32.mrf.mxu1 }
 0x24d   :  { %10737 = vst [vmem:[#allocation36_spill] sm:$0xff] %v9141_v57 }
 0x24f   :  { %7654 = vmatpush3.bf16.msra.mxu0 %v8493_v9  ;;  %v6162_v9 = vmax.f32 %v6160_v46, %v9113_v58  ;;  %v4123_v46 = vpop.f32.mrf.mxu0  ;;  %v9157_v58 = vadd.f32 %v5676_v41, %v4086_v5 }
 0x250   :  { %7655 = vmatprep.subr.bf16.mxu0 %v8833_v11 }
 0x251   :  { %v6163_v27 = vmax.f32 %v9122_v26, %v6162_v9  ;;  %v4125_v9 = vpop.f32.mrf.mxu0  ;;  %10739 = vst [vmem:[#allocation38_spill] sm:$0xff] %v9157_v58 }
 0x253   :  { %7656 = vmatpush3.bf16.msra.mxu0 %v8494_v32  ;;  %v5668_v32 = vrot.slane %v9095_v25, %v8955_v30  ;;  %v4127_v44 = vpop.f32.mrf.mxu0 }
 0x254   :  { %7657 = vmatprep.subr.bf16.mxu0 %v8833_v11  ;;  %v9162_v21 = vadd.f32 %v5680_v60, %v4127_v44 }
 0x255   :  { %v9137_v40 = vadd.f32 %v5668_v32, %v4039_v43  ;;  %v9151_v43 = vadd.f32 %v5680_v60, %v4123_v46  ;;  %v5684_v46 = vrot.slane %v9095_v25, %v9007_v17 }
 0x256   :  { %10741 = vst [vmem:[#allocation40_spill] sm:$0xff] %v9162_v21 }
 0x257   :  { %7658 = vmatpush3.bf16.msra.mxu0 %v8495_v55  ;;  %v6095_v55 = vmax.f32 %v9125_v10, %v6096_v59  ;;  %v9169_v5 = vadd.f32 %v5684_v46, %v4125_v9 }
 0x258   :  { %7659 = vmatprep.subr.bf16.mxu0 %v8833_v11  ;;  %v6165_v11 = vmax.f32 %v6163_v27, %v9127_v20  ;;  %v4166_v27 = vpop.f32.mrf.mxu1 }
 0x25a   :  { %v6164_v59 = vmax.f32 %v9141_v57, %v6165_v11  ;;  %v4168_v38 = vpop.f32.mrf.mxu1  ;;  %v9160_v11 = vadd.f32 %v5688_v54, %v4166_v27 }
 0x25b   :  { %7660 = vmatpush3.bf16.msra.mxu0 %v8496_v15  ;;  %v6097_v15 = vmax.f32 %v6095_v55, %v9137_v40 }
 0x25c   :  { %10740 = vst [vmem:[#allocation39_spill] sm:$0xff] %v9160_v11  ;;  %v4170_v57 = vpop.f32.mrf.mxu1 }
 0x25d   :  { %v6098_v20 = vmax.f32 %v9147_v13, %v6097_v15  ;;  %v5582_v15 = vld [vmem:[#allocation5 + $0x18] sm:$0xff]  ;;  %v9173_v60 = vadd.f32 %v5688_v54, %v4170_v57 }
 0x25e   :  { %7662 = vmatmul.mubr.bf16.vlgmr.msra.gmra.mxu0 %v8783_v49  ;;  %v9149_v49 = vadd.f32 %v5668_v32, %v4043_v24  ;;  %v4129_v24 = vpop.f32.mrf.mxu0  ;;  %v5696_v27 = vrot.slane %v5582_v15, %v8947_v12 }
 0x25f   :  { %v6100_v55 = vmax.f32 %v6098_v20, %v9151_v43  ;;  %v5692_v20 = vrot.slane %v9095_v25, %v9019_v36  ;;  %10742 = vst [vmem:[#allocation41_spill] sm:$0xff] %v9173_v60 }
 0x260   :  { %10738 = vst [vmem:[#allocation37_spill] sm:$0xff] %v9149_v49  ;;  %v6166_v26 = vmax.f32 %v6164_v59, %v9149_v49  ;;  %v4209_v8 = vpop.f32.mrf.mxu0 }
 0x261   :  { %v6099_v59 = vmax.f32 %v9160_v11, %v6100_v55  ;;  %v9178_v37 = vadd.f32 %v5692_v20, %v4168_v38  ;;  %v9180_v55 = vadd.f32 %v5684_v46, %v4129_v24  ;;  %v9182_v9 = vadd.f32 %v5696_v27, %v4209_v8 }
 0x262   :  { %v6167_v32 = vmax.f32 %v9157_v58, %v6166_v26  ;;  %v4172_v26 = vpop.f32.mrf.mxu1  ;;  %v4211_v44 = vpop.f32.mrf.mxu0  ;;  %v5700_v46 = vrot.slane %v5582_v15, %v8955_v30 }
 0x263   :  { %v6101_v58 = vmax.f32 %v6099_v59, %v9169_v5  ;;  %10743 = vst [vmem:[#allocation42_spill] sm:$0xff] %v9178_v37  ;;  %10744 = vst [vmem:[#allocation43_spill] sm:$0xff] %v9180_v55  ;;  %v9187_v50 = vadd.f32 %v5692_v20, %v4172_v26  ;;  %v5708_v20 = vrot.slane %v5582_v15, %v8958_v31 }
 0x264   :  { %v6169_v41 = vmax.f32 %v6167_v32, %v9162_v21  ;;  %v4252_v61 = vpop.f32.mrf.mxu1  ;;  %10745 = vst [vmem:[#allocation44_spill] sm:$0xff] %v9182_v9  ;;  %v5704_v32 = vrot.slane %v5582_v15, %v8952_v29  ;;  %v4213_v25 = vpop.f32.mrf.mxu0 }
 0x265   :  { %v6102_v57 = vmax.f32 %v9178_v37, %v6101_v58  ;;  %10746 = vst [vmem:[#allocation45_spill] sm:$0xff] %v9187_v50  ;;  %v9192_v38 = vadd.f32 %v5696_v27, %v4213_v25 }
 0x266   :  { %v6168_v49 = vmax.f32 %v9173_v60, %v6169_v41  ;;  %v4254_v21 = vpop.f32.mrf.mxu1  ;;  %v9190_v41 = vadd.f32 %v5704_v32, %v4252_v61  ;;  %v4215_v24 = vpop.f32.mrf.mxu0  ;;  %v5712_v61 = vrot.slane %v5582_v15, %v8973_v45 }
 0x267   :  { %v6104_v59 = vmax.f32 %v6102_v57, %v9182_v9  ;;  %10748 = vst [vmem:[#allocation47_spill] sm:$0xff] %v9192_v38  ;;  %v9206_v14 = vadd.f32 %v5708_v20, %v4254_v21 }
 0x268   :  { %v6170_v54 = vmax.f32 %v6168_v49, %v9180_v55  ;;  %10747 = vst [vmem:[#allocation46_spill] sm:$0xff] %v9190_v41  ;;  %v4256_v60 = vpop.f32.mrf.mxu1  ;;  %v4295_v18 = vpop.f32.mrf.mxu0  ;;  %v9198_v55 = vadd.f32 %v5700_v46, %v4211_v44  ;;  %v5720_v44 = vrot.slane %v5582_v15, %v8986_v56 }
 0x269   :  { %v6103_v58 = vmax.f32 %v9190_v41, %v6104_v59  ;;  %v9201_v26 = vadd.f32 %v5704_v32, %v4256_v60  ;;  %10751 = vst [vmem:[#allocation50_spill] sm:$0xff] %v9206_v14  ;;  %v9208_v59 = vadd.f32 %v5700_v46, %v4215_v24  ;;  %v5716_v46 = vrot.slane %v5582_v15, %v9007_v17 }
 0x26a   :  { %v6171_v8 = vmax.f32 %v9187_v50, %v6170_v54  ;;  %10749 = vst [vmem:[#allocation48_spill] sm:$0xff] %v9198_v55  ;;  %v4258_v27 = vpop.f32.mrf.mxu1  ;;  %v4297_v25 = vpop.f32.mrf.mxu0 }
 0x26b   :  { %10750 = vst [vmem:[#allocation49_spill] sm:$0xff] %v9201_v26  ;;  %v6105_v57 = vmax.f32 %v6103_v58, %v9198_v55  ;;  %10752 = vst [vmem:[#allocation51_spill] sm:$0xff] %v9208_v59  ;;  %v9215_v62 = vadd.f32 %v5708_v20, %v4258_v27  ;;  %v9226_v20 = vadd.f32 %v5716_v46, %v4297_v25 }
 0x26c   :  { %v6173_v49 = vmax.f32 %v6171_v8, %v9192_v38  ;;  %v4338_v50 = vpop.f32.mrf.mxu1  ;;  %v9210_v8 = vadd.f32 %v5712_v61, %v4295_v18  ;;  %v4299_v38 = vpop.f32.mrf.mxu0  ;;  %v5724_v27 = vrot.slane %v5582_v15, %v9019_v36  ;;  %v5736_v25 = vrot.slane %v5583_v2, %v8952_v29 }
 0x26d   :  { %v6106_v60 = vmax.f32 %v9206_v14, %v6105_v57  ;;  %10754 = vst [vmem:[#allocation53_spill] sm:$0xff] %v9215_v62  ;;  %v9220_v21 = vadd.f32 %v5712_v61, %v4299_v38  ;;  %10757 = vst [vmem:[#allocation56_spill] sm:$0xff] %v9226_v20  ;;  %v5728_v38 = vrot.slane %v5583_v2, %v8947_v12 }
 0x26e   :  { %v6172_v54 = vmax.f32 %v9201_v26, %v6173_v49  ;;  %10753 = vst [vmem:[#allocation52_spill] sm:$0xff] %v9210_v8  ;;  %v4340_v48 = vpop.f32.mrf.mxu1  ;;  %v9218_v49 = vadd.f32 %v5720_v44, %v4338_v50  ;;  %v4301_v24 = vpop.f32.mrf.mxu0 }
 0x26f   :  { %v6108_v58 = vmax.f32 %v6106_v60, %v9210_v8  ;;  %10756 = vst [vmem:[#allocation55_spill] sm:$0xff] %v9220_v21  ;;  %v9234_v4 = vadd.f32 %v5724_v27, %v4340_v48 }
 0x270   :  { %v6174_v32 = vmax.f32 %v6172_v54, %v9208_v59  ;;  %10755 = vst [vmem:[#allocation54_spill] sm:$0xff] %v9218_v49  ;;  %v4342_v26 = vpop.f32.mrf.mxu1  ;;  %v4381_v23 = vpop.f32.mrf.mxu0 }
 0x271   :  { %v6107_v57 = vmax.f32 %v9218_v49, %v6108_v58  ;;  %v9229_v50 = vadd.f32 %v5720_v44, %v4342_v26  ;;  %10759 = vst [vmem:[#allocation58_spill] sm:$0xff] %v9234_v4  ;;  %v9236_v58 = vadd.f32 %v5716_v46, %v4301_v24  ;;  %v5732_v46 = vrot.slane %v5583_v2, %v8955_v30  ;;  %v5584_v49 = vld [vmem:[#allocation5 + $0x28] sm:$0xff] }
 0x272   :  { %v6175_v18 = vmax.f32 %v9215_v62, %v6174_v32  ;;  %v4344_v61 = vpop.f32.mrf.mxu1  ;;  %v4383_v60 = vpop.f32.mrf.mxu0 }
 0x273   :  { %10758 = vst [vmem:[#allocation57_spill] sm:$0xff] %v9229_v50  ;;  %v6109_v32 = vmax.f32 %v6107_v57, %v9226_v20  ;;  %10760 = vst [vmem:[#allocation59_spill] sm:$0xff] %v9236_v58  ;;  %v9243_v1 = vadd.f32 %v5724_v27, %v4344_v61  ;;  %v5740_v27 = vrot.slane %v5583_v2, %v8958_v31 }
 0x274   :  { %v6177_v54 = vmax.f32 %v6175_v18, %v9220_v21  ;;  %v4424_v59 = vpop.f32.mrf.mxu1  ;;  %v9238_v18 = vadd.f32 %v5728_v38, %v4381_v23  ;;  %v4385_v15 = vpop.f32.mrf.mxu0 }
 0x275   :  { %v6110_v26 = vmax.f32 %v9234_v4, %v6109_v32  ;;  %10762 = vst [vmem:[#allocation61_spill] sm:$0xff] %v9243_v1  ;;  %v9248_v48 = vadd.f32 %v5728_v38, %v4385_v15 }
 0x276   :  { %v6176_v62 = vmax.f32 %v9229_v50, %v6177_v54  ;;  %10761 = vst [vmem:[#allocation60_spill] sm:$0xff] %v9238_v18  ;;  %v4426_v21 = vpop.f32.mrf.mxu1  ;;  %v9246_v54 = vadd.f32 %v5736_v25, %v4424_v59  ;;  %v4387_v24 = vpop.f32.mrf.mxu0  ;;  %v5744_v59 = vrot.slane %v5583_v2, %v8973_v45 }
 0x277   :  { %v6112_v57 = vmax.f32 %v6110_v26, %v9238_v18  ;;  %10764 = vst [vmem:[#allocation63_spill] sm:$0xff] %v9248_v48  ;;  %v9262_v18 = vadd.f32 %v5740_v27, %v4426_v21 }
 0x278   :  { %v6178_v44 = vmax.f32 %v6176_v62, %v9236_v58  ;;  %10763 = vst [vmem:[#allocation62_spill] sm:$0xff] %v9246_v54  ;;  %v4428_v50 = vpop.f32.mrf.mxu1  ;;  %v4467_v3 = vpop.f32.mrf.mxu0  ;;  %v9254_v58 = vadd.f32 %v5732_v46, %v4383_v60  ;;  %v5752_v60 = vrot.slane %v5583_v2, %v8986_v56 }
 0x279   :  { %v6111_v32 = vmax.f32 %v9246_v54, %v6112_v57  ;;  %v9257_v61 = vadd.f32 %v5736_v25, %v4428_v50  ;;  %10767 = vst [vmem:[#allocation66_spill] sm:$0xff] %v9262_v18  ;;  %v9264_v57 = vadd.f32 %v5732_v46, %v4387_v24  ;;  %v5748_v46 = vrot.slane %v5583_v2, %v9007_v17 }
 0x27a   :  { %v6179_v23 = vmax.f32 %v9243_v1, %v6178_v44  ;;  %10765 = vst [vmem:[#allocation64_spill] sm:$0xff] %v9254_v58  ;;  %v4430_v38 = vpop.f32.mrf.mxu1  ;;  %v4469_v15 = vpop.f32.mrf.mxu0 }
 0x27b   :  { %10766 = vst [vmem:[#allocation65_spill] sm:$0xff] %v9257_v61  ;;  %v6113_v26 = vmax.f32 %v6111_v32, %v9254_v58  ;;  %10768 = vst [vmem:[#allocation67_spill] sm:$0xff] %v9264_v57  ;;  %v9271_v4 = vadd.f32 %v5740_v27, %v4430_v38  ;;  %v9282_v27 = vadd.f32 %v5748_v46, %v4469_v15 }
 0x27c   :  { %v6181_v62 = vmax.f32 %v6179_v23, %v9248_v48  ;;  %v4510_v1 = vpop.f32.mrf.mxu1  ;;  %v9266_v23 = vadd.f32 %v5744_v59, %v4467_v3  ;;  %v4471_v48 = vpop.f32.mrf.mxu0  ;;  %v5756_v38 = vrot.slane %v5583_v2, %v9019_v36  ;;  %v5768_v15 = vrot.slane %v5584_v49, %v8952_v29 }
 0x27d   :  { %v6114_v50 = vmax.f32 %v9262_v18, %v6113_v26  ;;  %10770 = vst [vmem:[#allocation69_spill] sm:$0xff] %v9271_v4  ;;  %v9276_v21 = vadd.f32 %v5744_v59, %v4471_v48  ;;  %10773 = vst [vmem:[#allocation72_spill] sm:$0xff] %v9282_v27  ;;  %v5760_v48 = vrot.slane %v5584_v49, %v8947_v12  ;;  %v5585_v18 = vld [vmem:[#allocation5 + $0x30] sm:$0xff] }
 0x27e   :  { %v6180_v44 = vmax.f32 %v9257_v61, %v6181_v62  ;;  %10769 = vst [vmem:[#allocation68_spill] sm:$0xff] %v9266_v23  ;;  %v4512_v54 = vpop.f32.mrf.mxu1  ;;  %v9274_v62 = vadd.f32 %v5752_v60, %v4510_v1  ;;  %v4473_v24 = vpop.f32.mrf.mxu0 }
 0x27f   :  { %v6116_v32 = vmax.f32 %v6114_v50, %v9266_v23  ;;  %10772 = vst [vmem:[#allocation71_spill] sm:$0xff] %v9276_v21  ;;  %v9290_v23 = vadd.f32 %v5756_v38, %v4512_v54 }
 0x280   :  { %v6182_v25 = vmax.f32 %v6180_v44, %v9264_v57  ;;  %10771 = vst [vmem:[#allocation70_spill] sm:$0xff] %v9274_v62  ;;  %v4514_v61 = vpop.f32.mrf.mxu1  ;;  %v4553_v58 = vpop.f32.mrf.mxu0 }
 0x281   :  { %v6115_v26 = vmax.f32 %v9274_v62, %v6116_v32  ;;  %v9285_v1 = vadd.f32 %v5752_v60, %v4514_v61  ;;  %10775 = vst [vmem:[#allocation74_spill] sm:$0xff] %v9290_v23  ;;  %v9292_v32 = vadd.f32 %v5748_v46, %v4473_v24  ;;  %v5764_v46 = vrot.slane %v5584_v49, %v8955_v30 }
 0x282   :  { %v6183_v3 = vmax.f32 %v9271_v4, %v6182_v25  ;;  %v4516_v59 = vpop.f32.mrf.mxu1  ;;  %v4555_v50 = vpop.f32.mrf.mxu0 }
 0x283   :  { %10774 = vst [vmem:[#allocation73_spill] sm:$0xff] %v9285_v1  ;;  %v6117_v25 = vmax.f32 %v6115_v26, %v9282_v27  ;;  %10776 = vst [vmem:[#allocation75_spill] sm:$0xff] %v9292_v32  ;;  %v9299_v62 = vadd.f32 %v5756_v38, %v4516_v59  ;;  %v5772_v38 = vrot.slane %v5584_v49, %v8958_v31 }
 0x284   :  { %v6185_v44 = vmax.f32 %v6183_v3, %v9276_v21  ;;  %v4596_v57 = vpop.f32.mrf.mxu1  ;;  %v9294_v3 = vadd.f32 %v5760_v48, %v4553_v58  ;;  %v4557_v2 = vpop.f32.mrf.mxu0 }
 0x285   :  { %v6118_v61 = vmax.f32 %v9290_v23, %v6117_v25  ;;  %10778 = vst [vmem:[#allocation77_spill] sm:$0xff] %v9299_v62  ;;  %v9304_v54 = vadd.f32 %v5760_v48, %v4557_v2 }
 0x286   :  { %v6184_v4 = vmax.f32 %v9285_v1, %v6185_v44  ;;  %10777 = vst [vmem:[#allocation76_spill] sm:$0xff] %v9294_v3  ;;  %v4598_v21 = vpop.f32.mrf.mxu1  ;;  %v9302_v44 = vadd.f32 %v5768_v15, %v4596_v57  ;;  %v4559_v24 = vpop.f32.mrf.mxu0  ;;  %v5776_v57 = vrot.slane %v5584_v49, %v8973_v45 }
 0x287   :  { %v6120_v26 = vmax.f32 %v6118_v61, %v9294_v3  ;;  %10780 = vst [vmem:[#allocation79_spill] sm:$0xff] %v9304_v54  ;;  %v9318_v3 = vadd.f32 %v5772_v38, %v4598_v21 }
 0x288   :  { %v6186_v60 = vmax.f32 %v6184_v4, %v9292_v32  ;;  %10779 = vst [vmem:[#allocation78_spill] sm:$0xff] %v9302_v44  ;;  %v4600_v1 = vpop.f32.mrf.mxu1  ;;  %v4639_v27 = vpop.f32.mrf.mxu0  ;;  %v9310_v32 = vadd.f32 %v5764_v46, %v4555_v50  ;;  %v5784_v50 = vrot.slane %v5584_v49, %v8986_v56 }
 0x289   :  { %v6119_v25 = vmax.f32 %v9302_v44, %v6120_v26  ;;  %v9313_v59 = vadd.f32 %v5768_v15, %v4600_v1  ;;  %10783 = vst [vmem:[#allocation82_spill] sm:$0xff] %v9318_v3  ;;  %v9320_v26 = vadd.f32 %v5764_v46, %v4559_v24  ;;  %v5780_v46 = vrot.slane %v5584_v49, %v9007_v17 }
 0x28a   :  { %v6187_v58 = vmax.f32 %v9299_v62, %v6186_v60  ;;  %10781 = vst [vmem:[#allocation80_spill] sm:$0xff] %v9310_v32  ;;  %v4602_v48 = vpop.f32.mrf.mxu1  ;;  %v4641_v2 = vpop.f32.mrf.mxu0 }
 0x28b   :  { %10782 = vst [vmem:[#allocation81_spill] sm:$0xff] %v9313_v59  ;;  %v6121_v61 = vmax.f32 %v6119_v25, %v9310_v32  ;;  %10784 = vst [vmem:[#allocation83_spill] sm:$0xff] %v9320_v26  ;;  %v9327_v23 = vadd.f32 %v5772_v38, %v4602_v48  ;;  %v9338_v38 = vadd.f32 %v5780_v46, %v4641_v2 }
 0x28c   :  { %v6189_v4 = vmax.f32 %v6187_v58, %v9304_v54  ;;  %v4682_v62 = vpop.f32.mrf.mxu1  ;;  %v9322_v58 = vadd.f32 %v5776_v57, %v4639_v27  ;;  %v4643_v54 = vpop.f32.mrf.mxu0  ;;  %v5788_v48 = vrot.slane %v5584_v49, %v9019_v36  ;;  %v5800_v2 = vrot.slane %v5585_v18, %v8952_v29 }
 0x28d   :  { %v6122_v1 = vmax.f32 %v9318_v3, %v6121_v61  ;;  %10786 = vst [vmem:[#allocation85_spill] sm:$0xff] %v9327_v23  ;;  %v9332_v21 = vadd.f32 %v5776_v57, %v4643_v54  ;;  %10789 = vst [vmem:[#allocation88_spill] sm:$0xff] %v9338_v38  ;;  %v5792_v54 = vrot.slane %v5585_v18, %v8947_v12  ;;  %v5586_v3 = vld [vmem:[#allocation5 + $0x38] sm:$0xff] }
 0x28e   :  { %v6188_v60 = vmax.f32 %v9313_v59, %v6189_v4  ;;  %10785 = vst [vmem:[#allocation84_spill] sm:$0xff] %v9322_v58  ;;  %v4684_v44 = vpop.f32.mrf.mxu1  ;;  %v9330_v4 = vadd.f32 %v5784_v50, %v4682_v62  ;;  %v4645_v24 = vpop.f32.mrf.mxu0 }
 0x28f   :  { %v6124_v25 = vmax.f32 %v6122_v1, %v9322_v58  ;;  %10788 = vst [vmem:[#allocation87_spill] sm:$0xff] %v9332_v21  ;;  %v9346_v58 = vadd.f32 %v5788_v48, %v4684_v44 }
 0x290   :  { %v6190_v15 = vmax.f32 %v6188_v60, %v9320_v26  ;;  %10787 = vst [vmem:[#allocation86_spill] sm:$0xff] %v9330_v4  ;;  %v4686_v59 = vpop.f32.mrf.mxu1  ;;  %v4725_v32 = vpop.f32.mrf.mxu0 }
 0x291   :  { %v6123_v61 = vmax.f32 %v9330_v4, %v6124_v25  ;;  %v9341_v62 = vadd.f32 %v5784_v50, %v4686_v59  ;;  %10791 = vst [vmem:[#allocation90_spill] sm:$0xff] %v9346_v58  ;;  %v9348_v25 = vadd.f32 %v5780_v46, %v4645_v24  ;;  %v5796_v46 = vrot.slane %v5585_v18, %v8955_v30 }
 0x292   :  { %v6191_v27 = vmax.f32 %v9327_v23, %v6190_v15  ;;  %v4688_v57 = vpop.f32.mrf.mxu1  ;;  %v4727_v1 = vpop.f32.mrf.mxu0 }
 0x293   :  { %10790 = vst [vmem:[#allocation89_spill] sm:$0xff] %v9341_v62  ;;  %v6125_v15 = vmax.f32 %v6123_v61, %v9338_v38  ;;  %10792 = vst [vmem:[#allocation91_spill] sm:$0xff] %v9348_v25  ;;  %v9355_v4 = vadd.f32 %v5788_v48, %v4688_v57  ;;  %v5804_v48 = vrot.slane %v5585_v18, %v8958_v31 }
 0x294   :  { %v6193_v60 = vmax.f32 %v6191_v27, %v9332_v21  ;;  %v4768_v26 = vpop.f32.mrf.mxu1  ;;  %v9350_v27 = vadd.f32 %v5792_v54, %v4725_v32  ;;  %v4729_v49 = vpop.f32.mrf.mxu0 }
 0x295   :  { %v6126_v59 = vmax.f32 %v9346_v58, %v6125_v15  ;;  %10794 = vst [vmem:[#allocation93_spill] sm:$0xff] %v9355_v4  ;;  %v9360_v44 = vadd.f32 %v5792_v54, %v4729_v49 }
 0x296   :  { %v6192_v23 = vmax.f32 %v9341_v62, %v6193_v60  ;;  %10793 = vst [vmem:[#allocation92_spill] sm:$0xff] %v9350_v27  ;;  %v4770_v21 = vpop.f32.mrf.mxu1  ;;  %v9358_v60 = vadd.f32 %v5800_v2, %v4768_v26  ;;  %v4731_v24 = vpop.f32.mrf.mxu0  ;;  %v5808_v26 = vrot.slane %v5585_v18, %v8973_v45 }
 0x297   :  { %v6128_v61 = vmax.f32 %v6126_v59, %v9350_v27  ;;  %10796 = vst [vmem:[#allocation95_spill] sm:$0xff] %v9360_v44  ;;  %v9374_v27 = vadd.f32 %v5804_v48, %v4770_v21 }
 0x298   :  { %v6194_v50 = vmax.f32 %v6192_v23, %v9348_v25  ;;  %10795 = vst [vmem:[#allocation94_spill] sm:$0xff] %v9358_v60  ;;  %v4772_v62 = vpop.f32.mrf.mxu1  ;;  %v9366_v25 = vadd.f32 %v5796_v46, %v4727_v1  ;;  %v5816_v1 = vrot.slane %v5585_v18, %v8986_v56 }
 0x299   :  { %v6127_v15 = vmax.f32 %v9358_v60, %v6128_v61  ;;  %v9369_v57 = vadd.f32 %v5800_v2, %v4772_v62  ;;  %10799 = vst [vmem:[#allocation98_spill] sm:$0xff] %v9374_v27  ;;  %v9376_v61 = vadd.f32 %v5796_v46, %v4731_v24  ;;  %v5812_v46 = vrot.slane %v5585_v18, %v9007_v17 }
 0x29a   :  { %v6195_v32 = vmax.f32 %v9355_v4, %v6194_v50  ;;  %10797 = vst [vmem:[#allocation96_spill] sm:$0xff] %v9366_v25  ;;  %v4774_v54 = vpop.f32.mrf.mxu1 }
 0x29b   :  { %10798 = vst [vmem:[#allocation97_spill] sm:$0xff] %v9369_v57  ;;  %v6129_v59 = vmax.f32 %v6127_v15, %v9366_v25  ;;  %10800 = vst [vmem:[#allocation99_spill] sm:$0xff] %v9376_v61  ;;  %v9383_v58 = vadd.f32 %v5804_v48, %v4774_v54  ;;  %v5820_v54 = vrot.slane %v5585_v18, %v9019_v36 }
 0x29c   :  { %v6197_v23 = vmax.f32 %v6195_v32, %v9360_v44 }
 0x29d   :  { %v6130_v62 = vmax.f32 %v9374_v27, %v6129_v59  ;;  %10802 = vst [vmem:[#allocation101_spill] sm:$0xff] %v9383_v58 }
 0x29e   :  { %v4811_v38 = vpop.f32.mrf.mxu0  ;;  %v6196_v50 = vmax.f32 %v9369_v57, %v6197_v23  ;;  %v4854_v4 = vpop.f32.mrf.mxu1 }
 0x29f   :  { %v9378_v32 = vadd.f32 %v5808_v26, %v4811_v38  ;;  %v9386_v23 = vadd.f32 %v5816_v1, %v4854_v4 }
 0x2a0   :  { %v4813_v49 = vpop.f32.mrf.mxu0  ;;  %v6198_v2 = vmax.f32 %v6196_v50, %v9376_v61  ;;  %v4856_v60 = vpop.f32.mrf.mxu1 }
 0x2a1   :  { %10801 = vst [vmem:[#allocation100_spill] sm:$0xff] %v9378_v32  ;;  %v6132_v15 = vmax.f32 %v6130_v62, %v9378_v32  ;;  %10803 = vst [vmem:[#allocation102_spill] sm:$0xff] %v9386_v23  ;;  %v9394_v48 = vadd.f32 %v5812_v46, %v4813_v49  ;;  %v9402_v32 = vadd.f32 %v5820_v54, %v4856_v60 }
 0x2a2   :  { %v4815_v44 = vpop.f32.mrf.mxu0  ;;  %v6199_v38 = vmax.f32 %v9383_v58, %v6198_v2  ;;  %v4858_v57 = vpop.f32.mrf.mxu1  ;;  %v5832_v49 = vrot.slane %v5586_v3, %v8952_v29 }
 0x2a3   :  { %v9388_v21 = vadd.f32 %v5808_v26, %v4815_v44  ;;  %v6131_v59 = vmax.f32 %v9386_v23, %v6132_v15  ;;  %10805 = vst [vmem:[#allocation104_spill] sm:$0xff] %v9394_v48  ;;  %v9397_v4 = vadd.f32 %v5816_v1, %v4858_v57  ;;  %v5824_v44 = vrot.slane %v5586_v3, %v8947_v12 }
 0x2a4   :  { %v4817_v24 = vpop.f32.mrf.mxu0  ;;  %v4860_v26 = vpop.f32.mrf.mxu1  ;;  %10807 = vst [vmem:[#allocation106_spill] sm:$0xff] %v9402_v32 }
 0x2a5   :  { %10804 = vst [vmem:[#allocation103_spill] sm:$0xff] %v9388_v21  ;;  %v6201_v50 = vmax.f32 %v6199_v38, %v9388_v21  ;;  %10806 = vst [vmem:[#allocation105_spill] sm:$0xff] %v9397_v4  ;;  %v6133_v2 = vmax.f32 %v6131_v59, %v9394_v48  ;;  %v9404_v15 = vadd.f32 %v5812_v46, %v4817_v24 }
 0x2a6   :  { %v9411_v23 = vadd.f32 %v5820_v54, %v4860_v26  ;;  %v5828_v46 = vrot.slane %v5586_v3, %v8955_v30  ;;  %v5836_v54 = vrot.slane %v5586_v3, %v8958_v31 }
 0x2a7   :  { %v6200_v58 = vmax.f32 %v9397_v4, %v6201_v50  ;;  %10808 = vst [vmem:[#allocation107_spill] sm:$0xff] %v9404_v15  ;;  %v6134_v57 = vmax.f32 %v9402_v32, %v6133_v2 }
 0x2a8   :  { %10810 = vst [vmem:[#allocation109_spill] sm:$0xff] %v9411_v23 }
 0x2a9   :  { %v6202_v1 = vmax.f32 %v6200_v58, %v9404_v15 }
 0x2be   :  { %v4897_v25 = vpop.f32.mrf.mxu0  ;;  %v4940_v61 = vpop.f32.mrf.mxu1 }
 0x2bf   :  { %v9406_v38 = vadd.f32 %v5824_v44, %v4897_v25  ;;  %v9414_v50 = vadd.f32 %v5832_v49, %v4940_v61  ;;  %v6203_v25 = vmax.f32 %v9411_v23, %v6202_v1  ;;  %v5840_v61 = vrot.slane %v5586_v3, %v8973_v45 }
 0x2c0   :  { %v4899_v62 = vpop.f32.mrf.mxu0  ;;  %v4942_v21 = vpop.f32.mrf.mxu1 }
 0x2c1   :  { %10809 = vst [vmem:[#allocation108_spill] sm:$0xff] %v9406_v38  ;;  %v6136_v59 = vmax.f32 %v6134_v57, %v9406_v38  ;;  %10811 = vst [vmem:[#allocation110_spill] sm:$0xff] %v9414_v50  ;;  %v9422_v15 = vadd.f32 %v5828_v46, %v4899_v62  ;;  %v9430_v38 = vadd.f32 %v5836_v54, %v4942_v21 }
 0x2c2   :  { %v4901_v18 = vpop.f32.mrf.mxu0  ;;  %v4944_v4 = vpop.f32.mrf.mxu1  ;;  %v5848_v62 = vrot.slane %v5586_v3, %v8986_v56 }
 0x2c3   :  { %v9416_v60 = vadd.f32 %v5824_v44, %v4901_v18  ;;  %v6135_v2 = vmax.f32 %v9414_v50, %v6136_v59  ;;  %10813 = vst [vmem:[#allocation112_spill] sm:$0xff] %v9422_v15  ;;  %v9425_v26 = vadd.f32 %v5832_v49, %v4944_v4 }
 0x2c4   :  { %v4903_v24 = vpop.f32.mrf.mxu0  ;;  %v4946_v44 = vpop.f32.mrf.mxu1 }
 0x2c5   :  { %10812 = vst [vmem:[#allocation111_spill] sm:$0xff] %v9416_v60  ;;  %v6205_v58 = vmax.f32 %v6203_v25, %v9416_v60  ;;  %10814 = vst [vmem:[#allocation113_spill] sm:$0xff] %v9425_v26  ;;  %v6137_v57 = vmax.f32 %v6135_v2, %v9422_v15  ;;  %v9432_v59 = vadd.f32 %v5828_v46, %v4903_v24 }
 0x2c6   :  { %v9439_v32 = vadd.f32 %v5836_v54, %v4946_v44  ;;  %v5852_v54 = vrot.slane %v5586_v3, %v9019_v36 }
 0x2c7   :  { %v6204_v1 = vmax.f32 %v9425_v26, %v6205_v58  ;;  %10815 = vst [vmem:[#allocation114_spill] sm:$0xff] %v9432_v59  ;;  %v6138_v4 = vmax.f32 %v9430_v38, %v6137_v57  ;;  %v5587_v26 = vld [vmem:[#allocation5 + $0x40] sm:$0x1f] }
 0x2c8   :  { %10816 = vst [vmem:[#allocation115_spill] sm:$0xff] %v9439_v32  ;;  %v5860_v36 = vrot.slane %v5587_v26, %v8955_v30 }
 0x2c9   :  { %v6206_v49 = vmax.f32 %v6204_v1, %v9432_v59 }
 0x2cb   :  { %v6207_v24 = vmax.f32 %v9439_v32, %v6206_v49 }
 0x2de   :  { %v4983_v48 = vpop.f32.mrf.mxu0  ;;  %v5026_v23 = vpop.f32.mrf.mxu1 }
 0x2df   :  { %v9434_v25 = vadd.f32 %v5840_v61, %v4983_v48  ;;  %v9442_v58 = vadd.f32 %v5848_v62, %v5026_v23  ;;  %v5844_v48 = vrot.slane %v5586_v3, %v9007_v17  ;;  %v5864_v17 = vrot.slane %v5587_v26, %v8952_v29 }
 0x2e0   :  { %v4985_v18 = vpop.f32.mrf.mxu0  ;;  %v5028_v50 = vpop.f32.mrf.mxu1 }
 0x2e1   :  { %v6140_v2 = vmax.f32 %v6138_v4, %v9434_v25  ;;  %v9450_v1 = vadd.f32 %v5844_v48, %v4985_v18  ;;  %v5856_v4 = vrot.slane %v5587_v26, %v8947_v12 }
 0x2e2   :  { %v4987_v60 = vpop.f32.mrf.mxu0  ;;  %v5030_v46 = vpop.f32.mrf.mxu1 }
 0x2e3   :  { %v9444_v21 = vadd.f32 %v5840_v61, %v4987_v60  ;;  %v6139_v56 = vmax.f32 %v9442_v58, %v6140_v2  ;;  %v9453_v44 = vadd.f32 %v5848_v62, %v5030_v46  ;;  %v9459_v2 = vadd.f32 %v5852_v54, %v5028_v50 }
 0x2e4   :  { %v4989_v23 = vpop.f32.mrf.mxu0  ;;  %v5032_v49 = vpop.f32.mrf.mxu1 }
 0x2e5   :  { %10817 = vst [vmem:[#allocation116_spill] sm:$0xff] %v9444_v21  ;;  %v6209_v57 = vmax.f32 %v6207_v24, %v9444_v21  ;;  %10818 = vst [vmem:[#allocation117_spill] sm:$0xff] %v9453_v44  ;;  %v6141_v60 = vmax.f32 %v6139_v56, %v9450_v1  ;;  %v9461_v24 = vadd.f32 %v5844_v48, %v4989_v23 }
 0x2e6   :  { %v9470_v29 = vadd.f32 %v5852_v54, %v5032_v49  ;;  %v5868_v48 = vrot.slane %v5587_v26, %v8958_v31 }
 0x2e7   :  { %v6208_v61 = vmax.f32 %v9453_v44, %v6209_v57  ;;  %10819 = vst [vmem:[#allocation118_spill] sm:$0xff] %v9461_v24  ;;  %v6142_v3 = vmax.f32 %v9459_v2, %v6141_v60 }
 0x2e8   :  { %10821 = vst [vmem:[#allocation120_spill] sm:$0xff] %v9470_v29 }
 0x2e9   :  { %v6210_v62 = vmax.f32 %v6208_v61, %v9461_v24 }
 0x2eb   :  { %v6211_v30 = vmax.f32 %v9470_v29, %v6210_v62 }
 0x2fe   :  { %v5069_v18 = vpop.f32.mrf.mxu0  ;;  %v5112_v21 = vpop.f32.mrf.mxu1 }
 0x2ff   :  { %v9466_v46 = vadd.f32 %v5856_v4, %v5069_v18  ;;  %v9468_v56 = vadd.f32 %v5864_v17, %v5112_v21 }
 0x300   :  { %v5071_v12 = vpop.f32.mrf.mxu0  ;;  %v5114_v57 = vpop.f32.mrf.mxu1 }
 0x301   :  { %10820 = vst [vmem:[#allocation119_spill] sm:$0xff] %v9468_v56  ;;  %v6143_v50 = vmax.f32 %v9466_v46, %v6142_v3  ;;  %v9476_v32 = vadd.f32 %v5860_v36, %v5071_v12  ;;  %v9481_v24 = vadd.f32 %v5868_v48, %v5114_v57  ;;  %v10823_v57 = vlaneseq }
 0x302   :  { %v5073_v23 = vpop.f32.mrf.mxu0  ;;  %v5116_v44 = vpop.f32.mrf.mxu1 }
 0x303   :  { %v6144_v60 = vmax.f32 %v6143_v50, %v9468_v56  ;;  %v9478_v61 = vadd.f32 %v5856_v4, %v5073_v23  ;;  %10822 = vst [vmem:[#allocation121_spill] sm:$0xff] %v9481_v24  ;;  %v9484_v49 = vadd.f32 %v5864_v17, %v5116_v44  ;;  %v9495_v23 = vand.u32 127, %v10823_v57 }
 0x304   :  { %v5075_v21 = vpop.f32.mrf.mxu0  ;;  %v5118_v31 = vpop.f32.mrf.mxu1  ;;  %v5872_v44 = vrot.slane %v5587_v26, %v8973_v45 }
 0x305   :  { %v6145_v18 = vmax.f32 %v9476_v32, %v6144_v60  ;;  %v6212_v54 = vmax.f32 %v9478_v61, %v6211_v30  ;;  %v9488_v29 = vadd.f32 %v5860_v36, %v5075_v21  ;;  %v9491_v4 = vadd.f32 %v5868_v48, %v5118_v31 }
 0x306   :  { %vm7044_vm1 = vcmp.lt.s32.totalorder %v9495_v23, 121 }
 0x307   :  { %v6146_v3 = vmax.f32 %v9481_v24, %v6145_v18  ;;  %v6213_v62 = vmax.f32 %v6212_v54, %v9484_v49 }
 0x309   :  { %v6214_v12 = vmax.f32 %v9488_v29, %v6213_v62  ;;  %6147 = vmax.xlane.f32.xlu0 %v6146_v3 }
 0x30b   :  { %v6215_v50 = vmax.f32 %v9491_v4, %v6214_v12 }
 0x30d   :  { %6216 = vmax.xlane.f32.xlu0 %v6215_v50 }
 0x31e   :  { %v5155_v17 = vpop.f32.mrf.mxu0 }
 0x31f   :  { %v9499_v30 = vadd.f32 %v5872_v44, %v5155_v17 }
 0x320   :  { %v7663_v36 = vpop.f32.mrf.mxu0 }
 0x321   :  { %v9504_v48 = vsel %vm7044_vm1, %v9499_v30, -1e+09 }
 0x322   :  { %7047 = vmax.xlane.f32.xlu1 %v9504_v48  ;;  %v5158_v60 = vpop.f32.mrf.mxu0 }
 0x323   :  { %v9507_v21 = vadd.f32 %v5872_v44, %v5158_v60 }
 0x324   :  { %v7664_v18 = vpop.f32.mrf.mxu0 }
 0x325   :  { %v9512_v45 = vsel %vm7044_vm1, %v9507_v21, -1e+09 }
 0x326   :  { %7049 = vmax.xlane.f32.xlu1 %v9512_v45 }
 0x392   :  { %v9515_v26 = vpop.xlane.xlu0 %6147 }
 0x393   :  { %v6218_v54 = vsub.f32 %v8975_v51, %v9515_v26  ;;  %v6219_v31 = vsub.f32 %v8979_v53, %v9515_v26  ;;  %v6220_v3 = vsub.f32 %v8977_v52, %v9515_v26  ;;  %v6221_v50 = vsub.f32 %v8981_v0, %v9515_v26 }
 0x394   :  { %v6222_v44 = vsub.f32 %v9000_v6, %v9515_v26  ;;  %v6223_v18 = vsub.f32 %v9025_v47, %v9515_v26 }
 0x395   :  { %v6354_v62 = vmul.f32 1.442695, %v6218_v54  ;;  %v6356_v12 = vmul.f32 1.442695, %v6219_v31  ;;  %v6358_v17 = vmul.f32 1.442695, %v6220_v3  ;;  %v6224_v3 = vsub.f32 %v9012_v22, %v9515_v26 }
 0x396   :  { %v6360_v54 = vmul.f32 1.442695, %v6221_v50  ;;  %v6362_v0 = vmul.f32 1.442695, %v6222_v44  ;;  %v6226_v50 = vsub.f32 %v9041_v63, %v9515_v26  ;;  %v6227_v44 = vsub.f32 %v9062_v34, %v9515_v26 }
 0x397   :  { %8497 = vpow2.f32 %v6354_v62 }
 0x398   :  { %8499 = vpow2.f32 %v6356_v12  ;;  %v6225_v12 = vsub.f32 %v9037_v28, %v9515_v26  ;;  %v6370_v22 = vmul.f32 1.442695, %v6226_v50 }
 0x399   :  { %8501 = vpow2.f32 %v6358_v17  ;;  %v6366_v17 = vmul.f32 1.442695, %v6224_v3  ;;  %v6230_v3 = vsub.f32 %v9077_v35, %v9515_v26 }
 0x3a4   :  { %v8498_v47 = vpop.eup %8497 }
 0x3a5   :  { %v8500_v28 = vpop.eup %8499 }
 0x3ab   :  { %v9525_v57 = vpop.xlane.xlu1 %7047 }
 0x3ac   :  { %v7051_v36 = vsub.f32 %v9504_v48, %v9525_v57 }
 0x3ae   :  { %v7053_v60 = vmul.f32 1.442695, %v7051_v36  ;;  %v6364_v36 = vmul.f32 1.442695, %v6223_v18  ;;  %v6372_v18 = vmul.f32 1.442695, %v6227_v44  ;;  %v6232_v44 = vsub.f32 %v9087_v7, %v9515_v26 }
 0x3af   :  { %v9533_v31 = vpop.xlane.xlu1 %7049 }
 0x3b0   :  { %8503 = vpow2.f32 %v7053_v60  ;;  %v7052_v52 = vsub.f32 %v9512_v45, %v9533_v31  ;;  %v6368_v60 = vmul.f32 1.442695, %v6225_v12 }
 0x3b1   :  { %8505 = vpow2.f32 %v6360_v54  ;;  %v8502_v54 = vpop.eup %8501 }
 0x3b2   :  { %v7055_v62 = vmul.f32 1.442695, %v7052_v52  ;;  %8507 = vpow2.f32 %v6362_v0  ;;  %v6228_v52 = vsub.f32 %v9049_v16, %v9515_v26  ;;  %v6229_v0 = vsub.f32 %v9073_v19, %v9515_v26 }
 0x3b3   :  { %v6231_v16 = vsub.f32 %v9100_v33, %v9515_v26 }
 0x3b4   :  { %8509 = vpow2.f32 %v7055_v62  ;;  %v6374_v62 = vmul.f32 1.442695, %v6228_v52  ;;  %v6376_v50 = vmul.f32 1.442695, %v6229_v0  ;;  %v6234_v0 = vsub.f32 %v9115_v39, %v9515_v26 }
 0x3b5   :  { %8511 = vpow2.f32 %v6364_v36  ;;  %v6626_v36 = vadd.f32 %v8500_v28, %v8498_v47  ;;  %v6380_v47 = vmul.f32 1.442695, %v6231_v16 }
 0x3b6   :  { %8513 = vpow2.f32 %v6366_v17 }
 0x3b7   :  { %8515 = vpow2.f32 %v6368_v60  ;;  %v6627_v17 = vadd.f32 %v8502_v54, %v6626_v36  ;;  %v6378_v60 = vmul.f32 1.442695, %v6230_v3  ;;  %v6235_v3 = vsub.f32 %v9137_v40, %v9515_v26 }
 0x3b8   :  { %8517 = vpow2.f32 %v6370_v22  ;;  %v6233_v22 = vsub.f32 %v9111_v42, %v9515_v26 }
 0x3b9   :  { %8519 = vpow2.f32 %v6372_v18  ;;  %v6382_v18 = vmul.f32 1.442695, %v6232_v44 }
 0x3ba   :  { %8521 = vpow2.f32 %v6374_v62 }
 0x3bb   :  { %8523 = vpow2.f32 %v6376_v50  ;;  %v6237_v50 = vsub.f32 %v9147_v13, %v9515_v26 }
 0x3bc   :  { %8525 = vpow2.f32 %v6378_v60 }
 0x3bd   :  { %v8504_v12 = vpop.eup %8503  ;;  %8527 = vpow2.f32 %v6380_v47  ;;  %v6238_v47 = vsub.f32 %v9151_v43, %v9515_v26 }
 0x3be   :  { %7057 = vadd.xlane.f32.xlu0 %v8504_v12  ;;  %v8506_v34 = vpop.eup %8505  ;;  %v6236_v12 = vsub.f32 %v9125_v10, %v9515_v26  ;;  %8529 = vpow2.f32 %v6382_v18  ;;  %v6239_v18 = vsub.f32 %v9169_v5, %v9515_v26 }
 0x3bf   :  { %v8508_v63 = vpop.eup %8507  ;;  %v6628_v19 = vadd.f32 %v8506_v34, %v6627_v17  ;;  %v6384_v34 = vmul.f32 1.442695, %v6233_v22  ;;  %v6388_v17 = vmul.f32 1.442695, %v6235_v3  ;;  %v6394_v3 = vmul.f32 1.442695, %v6238_v47 }
 0x3c0   :  { %v6390_v22 = vmul.f32 1.442695, %v6236_v12  ;;  %v6396_v12 = vmul.f32 1.442695, %v6239_v18 }
 0x3c1   :  { %v8510_v35 = vpop.eup %8509  ;;  %v6629_v28 = vadd.f32 %v8508_v63, %v6628_v19  ;;  %v6386_v63 = vmul.f32 1.442695, %v6234_v0  ;;  %8531 = vpow2.f32 %v6384_v34  ;;  %v6392_v0 = vmul.f32 1.442695, %v6237_v50 }
 0x3c2   :  { %7059 = vadd.xlane.f32.xlu1 %v8510_v35  ;;  %v8512_v52 = vpop.eup %8511  ;;  %v6240_v34 = vsub.f32 %v9160_v11, %v9515_v26 }
 0x3c3   :  { %v6630_v54 = vadd.f32 %v8512_v52, %v6629_v28  ;;  %v8514_v36 = vpop.eup %8513  ;;  %8533 = vpow2.f32 %v6386_v63  ;;  %v6241_v63 = vsub.f32 %v9178_v37, %v9515_v26  ;;  %v10850_v37 = vld [vmem:[#allocation31_spill] sm:$0xff] }
 0x3c4   :  { %v8516_v62 = vpop.eup %8515  ;;  %8535 = vpow2.f32 %v6388_v17  ;;  %v6242_v17 = vsub.f32 %v9182_v9, %v9515_v26  ;;  %v6398_v50 = vmul.f32 1.442695, %v6240_v34 }
 0x3c5   :  { %v6631_v35 = vadd.f32 %v8514_v36, %v6630_v54  ;;  %v8518_v19 = vpop.eup %8517  ;;  %8537 = vpow2.f32 %v6390_v22  ;;  %v6243_v22 = vsub.f32 %v9198_v55, %v9515_v26  ;;  %v6400_v47 = vmul.f32 1.442695, %v6241_v63 }
 0x3c6   :  { %v8520_v60 = vpop.eup %8519  ;;  %8539 = vpow2.f32 %v6392_v0  ;;  %v6244_v0 = vsub.f32 %v9190_v41, %v9515_v26  ;;  %v6402_v18 = vmul.f32 1.442695, %v6242_v17 }
 0x3c7   :  { %v6632_v16 = vadd.f32 %v8516_v62, %v6631_v35  ;;  %v8522_v52 = vpop.eup %8521  ;;  %8541 = vpow2.f32 %v6394_v3  ;;  %v6245_v3 = vsub.f32 %v9206_v14, %v9515_v26  ;;  %v6404_v34 = vmul.f32 1.442695, %v6243_v22 }
 0x3c8   :  { %v8524_v36 = vpop.eup %8523  ;;  %8543 = vpow2.f32 %v6396_v12  ;;  %v6246_v12 = vsub.f32 %v9210_v8, %v9515_v26  ;;  %v6406_v63 = vmul.f32 1.442695, %v6244_v0  ;;  %v10825_v0 = vld [vmem:[#allocation58_spill] sm:$0xff]  ;;  %v10829_v8 = vld [vmem:[#allocation64_spill] sm:$0xff] }
 0x3c9   :  { %v6633_v44 = vadd.f32 %v8518_v19, %v6632_v16  ;;  %v8526_v62 = vpop.eup %8525  ;;  %8545 = vpow2.f32 %v6398_v50  ;;  %v6247_v50 = vsub.f32 %v9226_v20, %v9515_v26  ;;  %v6408_v17 = vmul.f32 1.442695, %v6245_v3  ;;  %v10826_v3 = vld [vmem:[#allocation60_spill] sm:$0xff] }
 0x3ca   :  { %v8528_v19 = vpop.eup %8527  ;;  %8547 = vpow2.f32 %v6400_v47  ;;  %v6410_v22 = vmul.f32 1.442695, %v6246_v12 }
 0x3cb   :  { %v6634_v28 = vadd.f32 %v8520_v60, %v6633_v44  ;;  %v8530_v60 = vpop.eup %8529  ;;  %8549 = vpow2.f32 %v6402_v18  ;;  %v6249_v18 = vsub.f32 %v10825_v0, %v9515_v26  ;;  %v6251_v0 = vsub.f32 %v10829_v8, %v9515_v26 }
 0x3cc   :  { %8551 = vpow2.f32 %v6404_v34  ;;  %v6250_v34 = vsub.f32 %v10826_v3, %v9515_v26  ;;  %v10830_v3 = vld [vmem:[#allocation14_spill] sm:$0xff] }
 0x3cd   :  { %v6635_v54 = vadd.f32 %v8522_v52, %v6634_v28  ;;  %8553 = vpow2.f32 %v6406_v63  ;;  %v10827_v63 = vld [vmem:[#allocation13_spill] sm:$0xff] }
 0x3ce   :  { %v8532_v52 = vpop.eup %8531  ;;  %8555 = vpow2.f32 %v6408_v17 }
 0x3cf   :  { %v6636_v35 = vadd.f32 %v8524_v36, %v6635_v54  ;;  %8557 = vpow2.f32 %v6410_v22 }
 0x3d0   :  { %v8534_v36 = vpop.eup %8533 }
 0x3d1   :  { %v6637_v16 = vadd.f32 %v8526_v62, %v6636_v35  ;;  %v8536_v62 = vpop.eup %8535 }
 0x3d3   :  { %v6638_v44 = vadd.f32 %v8528_v19, %v6637_v16  ;;  %v8538_v19 = vpop.eup %8537 }
 0x3d5   :  { %v6639_v28 = vadd.f32 %v8530_v60, %v6638_v44  ;;  %v8540_v60 = vpop.eup %8539 }
 0x3d7   :  { %v6640_v54 = vadd.f32 %v8532_v52, %v6639_v28  ;;  %v10824_v28 = vld [vmem:[#allocation54_spill] sm:$0xff] }
 0x3d8   :  { %v6248_v47 = vsub.f32 %v10824_v28, %v9515_v26 }
 0x3d9   :  { %v6641_v35 = vadd.f32 %v8534_v36, %v6640_v54  ;;  %v8542_v54 = vpop.eup %8541  ;;  %v9587_v36 = vpop.xlane.xlu0 %6216 }
 0x3da   :  { %v8544_v20 = vpop.eup %8543  ;;  %v6286_v12 = vsub.f32 %v10827_v63, %v9587_v36  ;;  %v6288_v22 = vsub.f32 %v10830_v3, %v9587_v36  ;;  %v10834_v3 = vld [vmem:[#allocation16_spill] sm:$0xff]  ;;  %v6351_v23 = vsub.f32 %v9488_v29, %v9587_v36 }
 0x3db   :  { %v6642_v16 = vadd.f32 %v8536_v62, %v6641_v35  ;;  %v6412_v35 = vmul.f32 1.442695, %v6247_v50  ;;  %v6416_v50 = vmul.f32 1.442695, %v6249_v18  ;;  %v6290_v8 = vsub.f32 %v10834_v3, %v9587_v36 }
 0x3dc   :  { %v6490_v63 = vmul.f32 1.442695, %v6286_v12 }
 0x3dd   :  { %v6643_v44 = vadd.f32 %v8538_v19, %v6642_v16  ;;  %v6414_v16 = vmul.f32 1.442695, %v6248_v47  ;;  %8559 = vpow2.f32 %v6412_v35  ;;  %v10833_v35 = vld [vmem:[#allocation66_spill] sm:$0xff] }
 0x3de   :  { %v6253_v18 = vsub.f32 %v10833_v35, %v9515_v26 }
 0x3df   :  { %v6644_v52 = vadd.f32 %v8540_v60, %v6643_v44  ;;  %v8546_v44 = vpop.eup %8545  ;;  %v10828_v60 = vld [vmem:[#allocation11_spill] sm:$0xff]  ;;  %8561 = vpow2.f32 %v6414_v16  ;;  %v10835_v16 = vld [vmem:[#allocation68_spill] sm:$0xff] }
 0x3e0   :  { %v6287_v28 = vsub.f32 %v10828_v60, %v9587_v36  ;;  %v10832_v60 = vld [vmem:[#allocation12_spill] sm:$0xff]  ;;  %8563 = vpow2.f32 %v6416_v50  ;;  %v6254_v12 = vsub.f32 %v10835_v16, %v9515_v26 }
 0x3e1   :  { %v6645_v62 = vadd.f32 %v8542_v54, %v6644_v52  ;;  %v8548_v52 = vpop.eup %8547  ;;  %v6418_v54 = vmul.f32 1.442695, %v6250_v34  ;;  %v6289_v41 = vsub.f32 %v10832_v60, %v9587_v36 }
 0x3e2   :  { %v8550_v14 = vpop.eup %8549  ;;  %v6492_v55 = vmul.f32 1.442695, %v6287_v28  ;;  %v10836_v28 = vld [vmem:[#allocation20_spill] sm:$0xff] }
 0x3e3   :  { %v6646_v19 = vadd.f32 %v8544_v20, %v6645_v62  ;;  %v10831_v20 = vld [vmem:[#allocation62_spill] sm:$0xff]  ;;  %8565 = vpow2.f32 %v6418_v54  ;;  %v6291_v9 = vsub.f32 %v10836_v28, %v9587_v36  ;;  %v6496_v50 = vmul.f32 1.442695, %v6289_v41 }
 0x3e4   :  { %v6252_v47 = vsub.f32 %v10831_v20, %v9515_v26  ;;  %v6494_v20 = vmul.f32 1.442695, %v6288_v22  ;;  %8567 = vpow2.f32 %v6490_v63  ;;  %v6424_v54 = vmul.f32 1.442695, %v6253_v18  ;;  %v10838_v22 = vld [vmem:[#allocation18_spill] sm:$0xff] }
 0x3e5   :  { %v6647_v17 = vadd.f32 %v8546_v44, %v6646_v19  ;;  %v6420_v19 = vmul.f32 1.442695, %v6251_v0  ;;  %v8552_v44 = vpop.eup %8551  ;;  %8569 = vpow2.f32 %v6492_v55  ;;  %v6292_v35 = vsub.f32 %v10838_v22, %v9587_v36  ;;  %v10839_v63 = vld [vmem:[#allocation70_spill] sm:$0xff] }
 0x3e6   :  { %v8554_v60 = vpop.eup %8553  ;;  %v10840_v41 = vld [vmem:[#allocation22_spill] sm:$0xff] }
 0x3e7   :  { %v6648_v62 = vadd.f32 %v8548_v52, %v6647_v17  ;;  %v6422_v17 = vmul.f32 1.442695, %v6252_v47  ;;  %8571 = vpow2.f32 %v6420_v19  ;;  %v8556_v3 = vpop.eup %8555  ;;  %v6498_v47 = vmul.f32 1.442695, %v6290_v8  ;;  %v10842_v8 = vld [vmem:[#allocation24_spill] sm:$0xff] }
 0x3e8   :  { %8573 = vpow2.f32 %v6494_v20  ;;  %v8558_v55 = vpop.eup %8557  ;;  %v6293_v16 = vsub.f32 %v10840_v41, %v9587_v36  ;;  %v6500_v19 = vmul.f32 1.442695, %v6291_v9  ;;  %v10844_v9 = vld [vmem:[#allocation28_spill] sm:$0xff] }
 0x3e9   :  { %v6649_v34 = vadd.f32 %v8550_v14, %v6648_v62  ;;  %v10837_v14 = vld [vmem:[#allocation72_spill] sm:$0xff]  ;;  %8575 = vpow2.f32 %v6422_v17  ;;  %v6502_v17 = vmul.f32 1.442695, %v6292_v35  ;;  %v10846_v35 = vld [vmem:[#allocation26_spill] sm:$0xff] }
 0x3ea   :  { %v6255_v0 = vsub.f32 %v10837_v14, %v9515_v26  ;;  %8577 = vpow2.f32 %v6496_v50  ;;  %v8560_v20 = vpop.eup %8559  ;;  %v6294_v14 = vsub.f32 %v10842_v8, %v9587_v36 }
 0x3eb   :  { %v6650_v52 = vadd.f32 %v8552_v44, %v6649_v34  ;;  %v6256_v34 = vsub.f32 %v10839_v63, %v9515_v26  ;;  %v6426_v44 = vmul.f32 1.442695, %v6254_v12  ;;  %8579 = vpow2.f32 %v6424_v54 }
 0x3ec   :  { %8581 = vpow2.f32 %v6498_v47  ;;  %v8562_v50 = vpop.eup %8561  ;;  %v6295_v63 = vsub.f32 %v10844_v9, %v9587_v36  ;;  %v6504_v54 = vmul.f32 1.442695, %v6293_v16 }
 0x3ed   :  { %v6651_v62 = vadd.f32 %v8554_v60, %v6650_v52  ;;  %v10841_v60 = vld [vmem:[#allocation74_spill] sm:$0xff]  ;;  %v6428_v52 = vmul.f32 1.442695, %v6255_v0  ;;  %8583 = vpow2.f32 %v6426_v44  ;;  %v8564_v47 = vpop.eup %8563  ;;  %v6506_v44 = vmul.f32 1.442695, %v6294_v14 }
 0x3ee   :  { %v6257_v18 = vsub.f32 %v10841_v60, %v9515_v26  ;;  %8585 = vpow2.f32 %v6500_v19  ;;  %v6296_v60 = vsub.f32 %v10846_v35, %v9587_v36 }
 0x3ef   :  { %v6652_v28 = vadd.f32 %v8556_v3, %v6651_v62  ;;  %v10843_v3 = vld [vmem:[#allocation76_spill] sm:$0xff]  ;;  %v6430_v62 = vmul.f32 1.442695, %v6256_v34  ;;  %8587 = vpow2.f32 %v6428_v52  ;;  %v10849_v52 = vld [vmem:[#allocation82_spill] sm:$0xff] }
 0x3f0   :  { %v6258_v12 = vsub.f32 %v10843_v3, %v9515_v26  ;;  %8589 = vpow2.f32 %v6502_v17  ;;  %v8566_v34 = vpop.eup %8565  ;;  %v10848_v3 = vld [vmem:[#allocation30_spill] sm:$0xff] }
 0x3f1   :  { %v6653_v22 = vadd.f32 %v8558_v55, %v6652_v28  ;;  %v10845_v28 = vld [vmem:[#allocation80_spill] sm:$0xff]  ;;  %v6432_v55 = vmul.f32 1.442695, %v6257_v18  ;;  %8591 = vpow2.f32 %v6430_v62  ;;  %v8568_v16 = vpop.eup %8567  ;;  %v6508_v18 = vmul.f32 1.442695, %v6295_v63 }
 0x3f2   :  { %v6259_v0 = vsub.f32 %v10845_v28, %v9515_v26  ;;  %v6434_v9 = vmul.f32 1.442695, %v6258_v12  ;;  %v6297_v28 = vsub.f32 %v10848_v3, %v9587_v36  ;;  %8593 = vpow2.f32 %v6504_v54 }
 0x3f3   :  { %v6654_v41 = vadd.f32 %v8560_v20, %v6653_v22  ;;  %v10847_v22 = vld [vmem:[#allocation78_spill] sm:$0xff]  ;;  %8595 = vpow2.f32 %v6432_v55  ;;  %v6510_v12 = vmul.f32 1.442695, %v6296_v60 }
 0x3f4   :  { %v6260_v20 = vsub.f32 %v10847_v22, %v9515_v26  ;;  %v6436_v17 = vmul.f32 1.442695, %v6259_v0  ;;  %v6298_v22 = vsub.f32 %v10850_v37, %v9587_v36  ;;  %8597 = vpow2.f32 %v6506_v44  ;;  %v10853_v37 = vld [vmem:[#allocation88_spill] sm:$0xff] }
 0x3f5   :  { %v6655_v8 = vadd.f32 %v8562_v50, %v6654_v41  ;;  %v8570_v41 = vpop.eup %8569  ;;  %v6261_v50 = vsub.f32 %v10849_v52, %v9515_v26  ;;  %8599 = vpow2.f32 %v6434_v9  ;;  %v10852_v52 = vld [vmem:[#allocation33_spill] sm:$0xff]  ;;  %v6512_v0 = vmul.f32 1.442695, %v6297_v28 }
 0x3f6   :  { %v8572_v35 = vpop.eup %8571  ;;  %v6438_v63 = vmul.f32 1.442695, %v6260_v20  ;;  %v6299_v55 = vsub.f32 %v10852_v52, %v9587_v36  ;;  %8601 = vpow2.f32 %v6508_v18  ;;  %v6263_v44 = vsub.f32 %v10853_v37, %v9515_v26  ;;  %v10855_v52 = vld [vmem:[#allocation86_spill] sm:$0xff] }
 0x3f7   :  { %v6656_v19 = vadd.f32 %v8564_v47, %v6655_v8  ;;  %v6695_v8 = vadd.f32 %v8570_v41, %v8568_v16  ;;  %v8574_v62 = vpop.eup %8573  ;;  %v10851_v47 = vld [vmem:[#allocation84_spill] sm:$0xff]  ;;  %8603 = vpow2.f32 %v6436_v17  ;;  %v6440_v60 = vmul.f32 1.442695, %v6261_v50  ;;  %v10856_v37 = vld [vmem:[#allocation34_spill] sm:$0xff] }
 0x3f8   :  { %v6262_v3 = vsub.f32 %v10851_v47, %v9515_v26  ;;  %v8576_v11 = vpop.eup %8575  ;;  %v10854_v47 = vld [vmem:[#allocation32_spill] sm:$0xff]  ;;  %8605 = vpow2.f32 %v6510_v12  ;;  %v6264_v18 = vsub.f32 %v10855_v52, %v9515_v26  ;;  %v6301_v17 = vsub.f32 %v10856_v37, %v9587_v36  ;;  %v10858_v52 = vld [vmem:[#allocation35_spill] sm:$0xff] }
 0x3f9   :  { %v6657_v14 = vadd.f32 %v8566_v34, %v6656_v19  ;;  %v6696_v34 = vadd.f32 %v8574_v62, %v6695_v8  ;;  %v8578_v19 = vpop.eup %8577  ;;  %v6300_v9 = vsub.f32 %v10854_v47, %v9587_v36  ;;  %8607 = vpow2.f32 %v6438_v63  ;;  %v10857_v47 = vld [vmem:[#allocation90_spill] sm:$0xff]  ;;  %v10859_v37 = vld [vmem:[#allocation92_spill] sm:$0xff] }
 0x3fa   :  { %v8580_v41 = vpop.eup %8579  ;;  %v6442_v28 = vmul.f32 1.442695, %v6262_v3  ;;  %8609 = vpow2.f32 %v6512_v0  ;;  %v6265_v12 = vsub.f32 %v10857_v47, %v9515_v26  ;;  %v6302_v63 = vsub.f32 %v10858_v52, %v9587_v36  ;;  %v10860_v47 = vld [vmem:[#allocation37_spill] sm:$0xff]  ;;  %v10861_v52 = vld [vmem:[#allocation96_spill] sm:$0xff] }
 0x3fb   :  { %v6658_v54 = vadd.f32 %v8572_v35, %v6657_v14  ;;  %v6514_v35 = vmul.f32 1.442695, %v6298_v22  ;;  %v6697_v20 = vadd.f32 %v8578_v19, %v6696_v34  ;;  %v8582_v14 = vpop.eup %8581  ;;  %8611 = vpow2.f32 %v6440_v60 }
 0x3fc   :  { %v8584_v62 = vpop.eup %8583  ;;  %v6444_v22 = vmul.f32 1.442695, %v6263_v44  ;;  %v6518_v3 = vmul.f32 1.442695, %v6300_v9  ;;  %v6266_v0 = vsub.f32 %v10859_v37, %v9515_v26  ;;  %v6303_v60 = vsub.f32 %v10860_v47, %v9587_v36  ;;  %v10862_v37 = vld [vmem:[#allocation36_spill] sm:$0xff]  ;;  %v10863_v47 = vld [vmem:[#allocation94_spill] sm:$0xff] }
 0x3fd   :  { %v6659_v16 = vadd.f32 %v8576_v11, %v6658_v54  ;;  %v6516_v11 = vmul.f32 1.442695, %v6299_v55  ;;  %v6698_v50 = vadd.f32 %v8582_v14, %v6697_v20  ;;  %v8586_v54 = vpop.eup %8585  ;;  %8613 = vpow2.f32 %v6514_v35 }
 0x3fe   :  { %v8588_v19 = vpop.eup %8587  ;;  %8615 = vpow2.f32 %v6442_v28  ;;  %v6446_v55 = vmul.f32 1.442695, %v6264_v18  ;;  %v6520_v44 = vmul.f32 1.442695, %v6301_v17  ;;  %v6267_v35 = vsub.f32 %v10861_v52, %v9515_v26  ;;  %v10864_v52 = vld [vmem:[#allocation38_spill] sm:$0xff] }
 0x3ff   :  { %v6660_v8 = vadd.f32 %v8580_v41, %v6659_v16  ;;  %v6699_v16 = vadd.f32 %v8586_v54, %v6698_v50  ;;  %v8590_v41 = vpop.eup %8589  ;;  %8617 = vpow2.f32 %v6516_v11  ;;  %v6448_v9 = vmul.f32 1.442695, %v6265_v12 }
 0x400   :  { %v8592_v14 = vpop.eup %8591  ;;  %8619 = vpow2.f32 %v6444_v22  ;;  %v6304_v28 = vsub.f32 %v10862_v37, %v9587_v36  ;;  %v6522_v18 = vmul.f32 1.442695, %v6302_v63  ;;  %v6268_v11 = vsub.f32 %v10863_v47, %v9515_v26  ;;  %v10865_v37 = vld [vmem:[#allocation40_spill] sm:$0xff] }
 0x401   :  { %v6661_v34 = vadd.f32 %v8584_v62, %v6660_v8  ;;  %v6700_v8 = vadd.f32 %v8590_v41, %v6699_v16  ;;  %v8594_v62 = vpop.eup %8593  ;;  %8621 = vpow2.f32 %v6518_v3  ;;  %v6450_v17 = vmul.f32 1.442695, %v6266_v0 }
 0x402   :  { %v8596_v54 = vpop.eup %8595  ;;  %8623 = vpow2.f32 %v6446_v55  ;;  %v6305_v22 = vsub.f32 %v10864_v52, %v9587_v36  ;;  %v6524_v12 = vmul.f32 1.442695, %v6303_v60  ;;  %v6269_v3 = vsub.f32 %v9374_v27, %v9515_v26  ;;  %v10866_v52 = vld [vmem:[#allocation100_spill] sm:$0xff]  ;;  %v10867_v27 = vld [vmem:[#allocation43_spill] sm:$0xff] }
 0x403   :  { %v6662_v20 = vadd.f32 %v8588_v19, %v6661_v34  ;;  %v6701_v34 = vadd.f32 %v8594_v62, %v6700_v8  ;;  %v8598_v19 = vpop.eup %8597  ;;  %8625 = vpow2.f32 %v6520_v44  ;;  %v6452_v63 = vmul.f32 1.442695, %v6267_v35 }
 0x404   :  { %v8600_v41 = vpop.eup %8599  ;;  %8627 = vpow2.f32 %v6448_v9  ;;  %v6306_v55 = vsub.f32 %v10865_v37, %v9587_v36  ;;  %v6526_v0 = vmul.f32 1.442695, %v6304_v28  ;;  %v6270_v44 = vsub.f32 %v10866_v52, %v9515_v26  ;;  %v10868_v37 = vld [vmem:[#allocation104_spill] sm:$0xff]  ;;  %v10869_v52 = vld [vmem:[#allocation41_spill] sm:$0xff] }
 0x405   :  { %v6663_v50 = vadd.f32 %v8592_v14, %v6662_v20  ;;  %v6702_v20 = vadd.f32 %v8598_v19, %v6701_v34  ;;  %v8602_v14 = vpop.eup %8601  ;;  %8629 = vpow2.f32 %v6522_v18  ;;  %v6454_v60 = vmul.f32 1.442695, %v6268_v11 }
 0x406   :  { %v8604_v62 = vpop.eup %8603  ;;  %8631 = vpow2.f32 %v6450_v17  ;;  %v6307_v9 = vsub.f32 %v10867_v27, %v9587_v36  ;;  %v6528_v35 = vmul.f32 1.442695, %v6305_v22  ;;  %v6271_v18 = vsub.f32 %v10868_v37, %v9515_v26  ;;  %v10870_v27 = vld [vmem:[#allocation102_spill] sm:$0xff]  ;;  %v10871_v37 = vld [vmem:[#allocation45_spill] sm:$0xff] }
 0x407   :  { %v6664_v16 = vadd.f32 %v8596_v54, %v6663_v50  ;;  %v6703_v50 = vadd.f32 %v8602_v14, %v6702_v20  ;;  %v8606_v54 = vpop.eup %8605  ;;  %8633 = vpow2.f32 %v6524_v12  ;;  %v6456_v28 = vmul.f32 1.442695, %v6269_v3 }
 0x408   :  { %v8608_v19 = vpop.eup %8607  ;;  %8635 = vpow2.f32 %v6452_v63  ;;  %v6308_v17 = vsub.f32 %v10869_v52, %v9587_v36  ;;  %v6530_v11 = vmul.f32 1.442695, %v6306_v55  ;;  %v6272_v12 = vsub.f32 %v10870_v27, %v9515_v26  ;;  %v10872_v52 = vld [vmem:[#allocation106_spill] sm:$0xff]  ;;  %v10873_v27 = vld [vmem:[#allocation47_spill] sm:$0xff] }
 0x409   :  { %v6665_v8 = vadd.f32 %v8600_v41, %v6664_v16  ;;  %v6704_v16 = vadd.f32 %v8606_v54, %v6703_v50  ;;  %v8610_v41 = vpop.eup %8609  ;;  %8637 = vpow2.f32 %v6526_v0  ;;  %v6458_v22 = vmul.f32 1.442695, %v6270_v44 }
 0x40a   :  { %v8612_v14 = vpop.eup %8611  ;;  %8639 = vpow2.f32 %v6454_v60  ;;  %v6309_v63 = vsub.f32 %v10871_v37, %v9587_v36  ;;  %v6532_v3 = vmul.f32 1.442695, %v6307_v9  ;;  %v6273_v0 = vsub.f32 %v10872_v52, %v9515_v26  ;;  %v10874_v37 = vld [vmem:[#allocation108_spill] sm:$0xff]  ;;  %v10875_v52 = vld [vmem:[#allocation51_spill] sm:$0xff] }
 0x40b   :  { %v6666_v34 = vadd.f32 %v8604_v62, %v6665_v8  ;;  %v6705_v8 = vadd.f32 %v8610_v41, %v6704_v16  ;;  %v8614_v62 = vpop.eup %8613  ;;  %8641 = vpow2.f32 %v6528_v35  ;;  %v6460_v55 = vmul.f32 1.442695, %v6271_v18 }
 0x40c   :  { %v8616_v54 = vpop.eup %8615  ;;  %8643 = vpow2.f32 %v6456_v28  ;;  %v6310_v60 = vsub.f32 %v10873_v27, %v9587_v36  ;;  %v6534_v44 = vmul.f32 1.442695, %v6308_v17  ;;  %v6274_v35 = vsub.f32 %v10874_v37, %v9515_v26  ;;  %v10876_v27 = vld [vmem:[#allocation49_spill] sm:$0xff] }
 0x40d   :  { %v6667_v20 = vadd.f32 %v8608_v19, %v6666_v34  ;;  %v6706_v34 = vadd.f32 %v8614_v62, %v6705_v8  ;;  %v8618_v19 = vpop.eup %8617  ;;  %8645 = vpow2.f32 %v6530_v11  ;;  %v6462_v9 = vmul.f32 1.442695, %v6272_v12 }
 0x40e   :  { %v8620_v41 = vpop.eup %8619  ;;  %8647 = vpow2.f32 %v6458_v22  ;;  %v6311_v28 = vsub.f32 %v10875_v52, %v9587_v36  ;;  %v6536_v18 = vmul.f32 1.442695, %v6309_v63  ;;  %v6275_v11 = vsub.f32 %v9422_v15, %v9515_v26  ;;  %v10877_v52 = vld [vmem:[#allocation110_spill] sm:$0xff]  ;;  %v10878_v15 = vld [vmem:[#allocation53_spill] sm:$0xff] }
 0x40f   :  { %v6668_v50 = vadd.f32 %v8612_v14, %v6667_v20  ;;  %v6707_v20 = vadd.f32 %v8618_v19, %v6706_v34  ;;  %v8622_v14 = vpop.eup %8621  ;;  %8649 = vpow2.f32 %v6532_v3  ;;  %v6464_v17 = vmul.f32 1.442695, %v6273_v0 }
 0x410   :  { %v8624_v62 = vpop.eup %8623  ;;  %8651 = vpow2.f32 %v6460_v55  ;;  %v6312_v22 = vsub.f32 %v10876_v27, %v9587_v36  ;;  %v6538_v12 = vmul.f32 1.442695, %v6310_v60  ;;  %v6276_v3 = vsub.f32 %v10877_v52, %v9515_v26  ;;  %v10879_v27 = vld [vmem:[#allocation55_spill] sm:$0xff] }
 0x411   :  { %v6669_v16 = vadd.f32 %v8616_v54, %v6668_v50  ;;  %v6708_v50 = vadd.f32 %v8622_v14, %v6707_v20  ;;  %v8626_v54 = vpop.eup %8625  ;;  %8653 = vpow2.f32 %v6534_v44  ;;  %v6466_v63 = vmul.f32 1.442695, %v6274_v35 }
 0x412   :  { %v8628_v19 = vpop.eup %8627  ;;  %8655 = vpow2.f32 %v6462_v9  ;;  %v6313_v55 = vsub.f32 %v10878_v15, %v9587_v36  ;;  %v6540_v0 = vmul.f32 1.442695, %v6311_v28  ;;  %v6277_v44 = vsub.f32 %v9430_v38, %v9515_v26  ;;  %v10880_v15 = vld [vmem:[#allocation59_spill] sm:$0xff] }
 0x413   :  { %v6670_v8 = vadd.f32 %v8620_v41, %v6669_v16  ;;  %v6709_v16 = vadd.f32 %v8626_v54, %v6708_v50  ;;  %v8630_v41 = vpop.eup %8629  ;;  %8657 = vpow2.f32 %v6536_v18  ;;  %v6468_v60 = vmul.f32 1.442695, %v6275_v11 }
 0x414   :  { %v8632_v14 = vpop.eup %8631  ;;  %8659 = vpow2.f32 %v6464_v17  ;;  %v6314_v9 = vsub.f32 %v10879_v27, %v9587_v36  ;;  %v6542_v35 = vmul.f32 1.442695, %v6312_v22  ;;  %v6278_v18 = vsub.f32 %v9434_v25, %v9515_v26  ;;  %v10881_v27 = vld [vmem:[#allocation57_spill] sm:$0xff] }
 0x415   :  { %v6671_v34 = vadd.f32 %v8624_v62, %v6670_v8  ;;  %v6710_v8 = vadd.f32 %v8630_v41, %v6709_v16  ;;  %v8634_v62 = vpop.eup %8633  ;;  %8661 = vpow2.f32 %v6538_v12  ;;  %v6470_v28 = vmul.f32 1.442695, %v6276_v3 }
 0x416   :  { %v8636_v54 = vpop.eup %8635  ;;  %8663 = vpow2.f32 %v6466_v63  ;;  %v6315_v17 = vsub.f32 %v10880_v15, %v9587_v36  ;;  %v6544_v11 = vmul.f32 1.442695, %v6313_v55  ;;  %v6279_v12 = vsub.f32 %v9450_v1, %v9515_v26  ;;  %v10882_v15 = vld [vmem:[#allocation61_spill] sm:$0xff] }
 0x417   :  { %v6672_v20 = vadd.f32 %v8628_v19, %v6671_v34  ;;  %v6711_v34 = vadd.f32 %v8634_v62, %v6710_v8  ;;  %v8638_v19 = vpop.eup %8637  ;;  %8665 = vpow2.f32 %v6540_v0  ;;  %v6472_v22 = vmul.f32 1.442695, %v6277_v44 }
 0x418   :  { %v8640_v41 = vpop.eup %8639  ;;  %8667 = vpow2.f32 %v6468_v60  ;;  %v6316_v63 = vsub.f32 %v10881_v27, %v9587_v36  ;;  %v6546_v3 = vmul.f32 1.442695, %v6314_v9  ;;  %v6280_v0 = vsub.f32 %v9442_v58, %v9515_v26  ;;  %v10883_v27 = vld [vmem:[#allocation63_spill] sm:$0xff] }
 0x419   :  { %v6673_v50 = vadd.f32 %v8632_v14, %v6672_v20  ;;  %v6712_v20 = vadd.f32 %v8638_v19, %v6711_v34  ;;  %v8642_v14 = vpop.eup %8641  ;;  %8669 = vpow2.f32 %v6542_v35  ;;  %v6474_v55 = vmul.f32 1.442695, %v6278_v18 }
 0x41a   :  { %v8644_v62 = vpop.eup %8643  ;;  %8671 = vpow2.f32 %v6470_v28  ;;  %v6317_v60 = vsub.f32 %v10882_v15, %v9587_v36  ;;  %v6548_v44 = vmul.f32 1.442695, %v6315_v17  ;;  %v6281_v35 = vsub.f32 %v9459_v2, %v9515_v26  ;;  %v10884_v15 = vld [vmem:[#allocation67_spill] sm:$0xff] }
 0x41b   :  { %v6674_v16 = vadd.f32 %v8636_v54, %v6673_v50  ;;  %v6713_v50 = vadd.f32 %v8642_v14, %v6712_v20  ;;  %v8646_v54 = vpop.eup %8645  ;;  %8673 = vpow2.f32 %v6544_v11  ;;  %v6476_v9 = vmul.f32 1.442695, %v6279_v12 }
 0x41c   :  { %v8648_v19 = vpop.eup %8647  ;;  %8675 = vpow2.f32 %v6472_v22  ;;  %v6318_v28 = vsub.f32 %v10883_v27, %v9587_v36  ;;  %v6550_v18 = vmul.f32 1.442695, %v6316_v63  ;;  %v6282_v11 = vsub.f32 %v9466_v46, %v9515_v26  ;;  %v10885_v27 = vld [vmem:[#allocation65_spill] sm:$0xff] }
 0x41d   :  { %v6675_v8 = vadd.f32 %v8640_v41, %v6674_v16  ;;  %v6714_v16 = vadd.f32 %v8646_v54, %v6713_v50  ;;  %v8650_v41 = vpop.eup %8649  ;;  %8677 = vpow2.f32 %v6546_v3  ;;  %v6478_v17 = vmul.f32 1.442695, %v6280_v0 }
 0x41e   :  { %v8652_v14 = vpop.eup %8651  ;;  %8679 = vpow2.f32 %v6474_v55  ;;  %v6319_v22 = vsub.f32 %v10884_v15, %v9587_v36  ;;  %v6552_v12 = vmul.f32 1.442695, %v6317_v60  ;;  %v6283_v3 = vsub.f32 %v9476_v32, %v9515_v26  ;;  %v10886_v15 = vld [vmem:[#allocation69_spill] sm:$0xff] }
 0x41f   :  { %v6676_v34 = vadd.f32 %v8644_v62, %v6675_v8  ;;  %v6715_v8 = vadd.f32 %v8650_v41, %v6714_v16  ;;  %v8654_v62 = vpop.eup %8653  ;;  %8681 = vpow2.f32 %v6548_v44  ;;  %v6480_v63 = vmul.f32 1.442695, %v6281_v35 }
 0x420   :  { %v8656_v54 = vpop.eup %8655  ;;  %8683 = vpow2.f32 %v6476_v9  ;;  %v6320_v55 = vsub.f32 %v10885_v27, %v9587_v36  ;;  %v6554_v0 = vmul.f32 1.442695, %v6318_v28  ;;  %v6284_v44 = vsub.f32 %v9468_v56, %v9515_v26  ;;  %v10887_v27 = vld [vmem:[#allocation71_spill] sm:$0xff] }
 0x421   :  { %v6677_v20 = vadd.f32 %v8648_v19, %v6676_v34  ;;  %v6716_v34 = vadd.f32 %v8654_v62, %v6715_v8  ;;  %v8658_v19 = vpop.eup %8657  ;;  %8685 = vpow2.f32 %v6550_v18  ;;  %v6482_v60 = vmul.f32 1.442695, %v6282_v11 }
 0x422   :  { %v8660_v41 = vpop.eup %8659  ;;  %8687 = vpow2.f32 %v6478_v17  ;;  %v6321_v9 = vsub.f32 %v10886_v15, %v9587_v36  ;;  %v6556_v35 = vmul.f32 1.442695, %v6319_v22  ;;  %v6285_v18 = vsub.f32 %v9481_v24, %v9515_v26 }
 0x423   :  { %v6678_v50 = vadd.f32 %v8652_v14, %v6677_v20  ;;  %v6717_v20 = vadd.f32 %v8658_v19, %v6716_v34  ;;  %v8662_v14 = vpop.eup %8661  ;;  %8689 = vpow2.f32 %v6552_v12  ;;  %v6484_v28 = vmul.f32 1.442695, %v6283_v3 }
 0x424   :  { %v8664_v62 = vpop.eup %8663  ;;  %8691 = vpow2.f32 %v6480_v63  ;;  %v6322_v17 = vsub.f32 %v10887_v27, %v9587_v36  ;;  %v6558_v11 = vmul.f32 1.442695, %v6320_v55  ;;  %v6486_v15 = vmul.f32 1.442695, %v6284_v44 }
 0x425   :  { %v6679_v16 = vadd.f32 %v8656_v54, %v6678_v50  ;;  %v6718_v50 = vadd.f32 %v8662_v14, %v6717_v20  ;;  %v8666_v54 = vpop.eup %8665  ;;  %8693 = vpow2.f32 %v6554_v0  ;;  %v10888_v20 = vld [vmem:[#allocation75_spill] sm:$0xff]  ;;  %v6560_v24 = vmul.f32 1.442695, %v6321_v9  ;;  %v10889_v0 = vld [vmem:[#allocation73_spill] sm:$0xff] }
 0x426   :  { %v8668_v19 = vpop.eup %8667  ;;  %8695 = vpow2.f32 %v6482_v60  ;;  %v6323_v14 = vsub.f32 %v10888_v20, %v9587_v36  ;;  %v6324_v55 = vsub.f32 %v10889_v0, %v9587_v36 }
 0x427   :  { %v6680_v8 = vadd.f32 %v8660_v41, %v6679_v16  ;;  %v6719_v16 = vadd.f32 %v8666_v54, %v6718_v50  ;;  %v8670_v41 = vpop.eup %8669  ;;  %8697 = vpow2.f32 %v6556_v35  ;;  %v6562_v50 = vmul.f32 1.442695, %v6322_v17 }
 0x428   :  { %v8672_v22 = vpop.eup %8671  ;;  %8699 = vpow2.f32 %v6484_v28  ;;  %v6564_v9 = vmul.f32 1.442695, %v6323_v14  ;;  %v6566_v17 = vmul.f32 1.442695, %v6324_v55 }
 0x429   :  { %v6681_v34 = vadd.f32 %v8664_v62, %v6680_v8  ;;  %v6720_v63 = vadd.f32 %v8670_v41, %v6719_v16  ;;  %v8674_v3 = vpop.eup %8673  ;;  %v6488_v8 = vmul.f32 1.442695, %v6285_v18  ;;  %8701 = vpow2.f32 %v6558_v11 }
 0x42a   :  { %v8676_v56 = vpop.eup %8675  ;;  %8703 = vpow2.f32 %v6486_v15 }
 0x42b   :  { %v6682_v12 = vadd.f32 %v8668_v19, %v6681_v34  ;;  %v6721_v60 = vadd.f32 %v8674_v3, %v6720_v63  ;;  %v8678_v44 = vpop.eup %8677  ;;  %v10890_v19 = vld [vmem:[#allocation77_spill] sm:$0xff]  ;;  %8705 = vpow2.f32 %v6560_v24  ;;  %v10892_v3 = vld [vmem:[#allocation83_spill] sm:$0xff] }
 0x42c   :  { %v8680_v34 = vpop.eup %8679  ;;  %v6325_v35 = vsub.f32 %v10890_v19, %v9587_v36  ;;  %8707 = vpow2.f32 %v6488_v8 }
 0x42d   :  { %v6683_v62 = vadd.f32 %v8672_v22, %v6682_v12  ;;  %v6722_v16 = vadd.f32 %v8678_v44, %v6721_v60  ;;  %v8682_v28 = vpop.eup %8681  ;;  %v10891_v12 = vld [vmem:[#allocation79_spill] sm:$0xff]  ;;  %8709 = vpow2.f32 %v6562_v50 }
 0x42e   :  { %v8684_v41 = vpop.eup %8683  ;;  %v6326_v22 = vsub.f32 %v10891_v12, %v9587_v36  ;;  %8711 = vpow2.f32 %v6564_v9  ;;  %v6568_v24 = vmul.f32 1.442695, %v6325_v35 }
 0x42f   :  { %v6684_v54 = vadd.f32 %v8676_v56, %v6683_v62  ;;  %v6723_v11 = vadd.f32 %v8682_v28, %v6722_v16  ;;  %v8686_v63 = vpop.eup %8685  ;;  %v6327_v62 = vsub.f32 %v10892_v3, %v9587_v36  ;;  %8713 = vpow2.f32 %v6566_v17 }
 0x430   :  { %v8688_v56 = vpop.eup %8687  ;;  %v6570_v12 = vmul.f32 1.442695, %v6326_v22  ;;  %8715 = vpow2.f32 %v6568_v24 }
 0x431   :  { %v6685_v18 = vadd.f32 %v8680_v34, %v6684_v54  ;;  %v6724_v14 = vadd.f32 %v8686_v63, %v6723_v11  ;;  %v8690_v60 = vpop.eup %8689  ;;  %v10893_v54 = vld [vmem:[#allocation81_spill] sm:$0xff]  ;;  %v6572_v3 = vmul.f32 1.442695, %v6327_v62 }
 0x432   :  { %v8692_v8 = vpop.eup %8691  ;;  %v6328_v34 = vsub.f32 %v10893_v54, %v9587_v36  ;;  %8717 = vpow2.f32 %v6570_v12 }
 0x433   :  { %v6686_v15 = vadd.f32 %v8684_v41, %v6685_v18  ;;  %v6725_v50 = vadd.f32 %v8690_v60, %v6724_v14  ;;  %v8694_v55 = vpop.eup %8693  ;;  %v10894_v18 = vld [vmem:[#allocation85_spill] sm:$0xff]  ;;  %8719 = vpow2.f32 %v6572_v3 }
 0x434   :  { %v8696_v28 = vpop.eup %8695  ;;  %v6329_v41 = vsub.f32 %v10894_v18, %v9587_v36  ;;  %v6574_v54 = vmul.f32 1.442695, %v6328_v34 }
 0x435   :  { %v6687_v44 = vadd.f32 %v8688_v56, %v6686_v15  ;;  %v6726_v9 = vadd.f32 %v8694_v55, %v6725_v50  ;;  %v8698_v35 = vpop.eup %8697  ;;  %v10895_v15 = vld [vmem:[#allocation87_spill] sm:$0xff] }
 0x436   :  { %v8700_v63 = vpop.eup %8699  ;;  %v6330_v56 = vsub.f32 %v10895_v15, %v9587_v36  ;;  %v6576_v18 = vmul.f32 1.442695, %v6329_v41  ;;  %8721 = vpow2.f32 %v6574_v54  ;;  %v10899_v41 = vld [vmem:[#allocation95_spill] sm:$0xff] }
 0x437   :  { %v6688_v16 = vadd.f32 %v8692_v8, %v6687_v44  ;;  %v6727_v17 = vadd.f32 %v8698_v35, %v6726_v9  ;;  %v8702_v22 = vpop.eup %8701  ;;  %v10896_v44 = vld [vmem:[#allocation91_spill] sm:$0xff]  ;;  %v10898_v35 = vld [vmem:[#allocation93_spill] sm:$0xff] }
 0x438   :  { %v8704_v60 = vpop.eup %8703  ;;  %v6331_v8 = vsub.f32 %v10896_v44, %v9587_v36  ;;  %v6578_v15 = vmul.f32 1.442695, %v6330_v56  ;;  %8723 = vpow2.f32 %v6576_v18  ;;  %v10900_v54 = vld [vmem:[#allocation99_spill] sm:$0xff]  ;;  %v10901_v18 = vld [vmem:[#allocation97_spill] sm:$0xff] }
 0x439   :  { %v6689_v11 = vadd.f32 %v8696_v28, %v6688_v16  ;;  %v6728_v24 = vadd.f32 %v8702_v22, %v6727_v17  ;;  %v8706_v62 = vpop.eup %8705  ;;  %v10897_v16 = vld [vmem:[#allocation89_spill] sm:$0xff]  ;;  %v6334_v17 = vsub.f32 %v10899_v41, %v9587_v36  ;;  %v6335_v56 = vsub.f32 %v10900_v54, %v9587_v36 }
 0x43a   :  { %v8708_v55 = vpop.eup %8707  ;;  %v6332_v28 = vsub.f32 %v10897_v16, %v9587_v36  ;;  %8725 = vpow2.f32 %v6578_v15  ;;  %v10902_v15 = vld [vmem:[#allocation101_spill] sm:$0xff] }
 0x43b   :  { %v6690_v14 = vadd.f32 %v8700_v63, %v6689_v11  ;;  %v6729_v12 = vadd.f32 %v8706_v62, %v6728_v24  ;;  %v8710_v34 = vpop.eup %8709  ;;  %v6333_v11 = vsub.f32 %v10898_v35, %v9587_v36  ;;  %v6580_v63 = vmul.f32 1.442695, %v6331_v8 }
 0x43c   :  { %v8712_v3 = vpop.eup %8711  ;;  %v6582_v22 = vmul.f32 1.442695, %v6332_v28  ;;  %v6336_v8 = vsub.f32 %v10901_v18, %v9587_v36  ;;  %v6588_v28 = vmul.f32 1.442695, %v6335_v56  ;;  %v10905_v56 = vld [vmem:[#allocation105_spill] sm:$0xff] }
 0x43d   :  { %v6691_v50 = vadd.f32 %v8704_v60, %v6690_v14  ;;  %v6730_v44 = vadd.f32 %v8710_v34, %v6729_v12  ;;  %v8714_v60 = vpop.eup %8713  ;;  %8727 = vpow2.f32 %v6580_v63  ;;  %v6584_v24 = vmul.f32 1.442695, %v6333_v11  ;;  %v10903_v11 = vld [vmem:[#allocation103_spill] sm:$0xff] }
 0x43e   :  { %8729 = vpow2.f32 %v6582_v22  ;;  %v6338_v63 = vsub.f32 %v10903_v11, %v9587_v36 }
 0x43f   :  { %v6692_v9 = vadd.f32 %v8708_v55, %v6691_v50  ;;  %v6731_v14 = vadd.f32 %v8712_v3, %v6730_v44  ;;  %v8716_v50 = vpop.eup %8715  ;;  %v6586_v55 = vmul.f32 1.442695, %v6334_v17  ;;  %v6337_v44 = vsub.f32 %v10902_v15, %v9587_v36  ;;  %v10904_v17 = vld [vmem:[#allocation107_spill] sm:$0xff] }
 0x441   :  { %6693 = vadd.xlane.f32.xlu0 %v6692_v9  ;;  %v6732_v62 = vadd.f32 %v8714_v60, %v6731_v14  ;;  %v8718_v9 = vpop.eup %8717  ;;  %v6590_v14 = vmul.f32 1.442695, %v6336_v8  ;;  %v10906_v8 = vld [vmem:[#allocation109_spill] sm:$0xff] }
 0x442   :  { %v8720_v54 = vpop.eup %8719 }
 0x443   :  { %v6733_v12 = vadd.f32 %v8716_v50, %v6732_v62  ;;  %v8722_v22 = vpop.eup %8721  ;;  %v6339_v62 = vsub.f32 %v10904_v17, %v9587_v36  ;;  %v6592_v50 = vmul.f32 1.442695, %v6337_v44  ;;  %v10907_v17 = vld [vmem:[#allocation111_spill] sm:$0xff] }
 0x445   :  { %v6734_v3 = vadd.f32 %v8718_v9, %v6733_v12  ;;  %v8724_v15 = vpop.eup %8723  ;;  %v6594_v12 = vmul.f32 1.442695, %v6338_v63  ;;  %v6343_v63 = vsub.f32 %v9432_v59, %v9587_v36 }
 0x447   :  { %v7058_v34 = vpop.xlane.xlu0 %7057  ;;  %v6735_v60 = vadd.f32 %v8720_v54, %v6734_v3  ;;  %v8726_v11 = vpop.eup %8725  ;;  %v6341_v54 = vsub.f32 %v10906_v8, %v9587_v36  ;;  %v6604_v59 = vmul.f32 1.442695, %v6343_v63  ;;  %v10911_v63 = vld [vmem:[#allocation118_spill] sm:$0xff] }
 0x448   :  { %8731 = vlog2.f32 %v7058_v34 }
 0x449   :  { %8733 = vpow2.f32 %v6584_v24  ;;  %v6736_v34 = vadd.f32 %v8722_v22, %v6735_v60  ;;  %v6340_v24 = vsub.f32 %v10905_v56, %v9587_v36 }
 0x44a   :  { %8735 = vpow2.f32 %v6586_v55  ;;  %v6596_v55 = vmul.f32 1.442695, %v6339_v62  ;;  %v8728_v3 = vpop.eup %8727  ;;  %v10908_v62 = vld [vmem:[#allocation113_spill] sm:$0xff] }
 0x44b   :  { %v7060_v18 = vpop.xlane.xlu1 %7059  ;;  %v6737_v9 = vadd.f32 %v8724_v15, %v6736_v34  ;;  %v6598_v44 = vmul.f32 1.442695, %v6340_v24  ;;  %v8730_v22 = vpop.eup %8729  ;;  %v6600_v15 = vmul.f32 1.442695, %v6341_v54 }
 0x44c   :  { %8737 = vlog2.f32 %v7060_v18 }
 0x44d   :  { %8739 = vpow2.f32 %v6588_v28  ;;  %v6738_v18 = vadd.f32 %v8726_v11, %v6737_v9  ;;  %v6342_v28 = vsub.f32 %v10907_v17, %v9587_v36  ;;  %v6344_v11 = vsub.f32 %v10908_v62, %v9587_v36 }
 0x44e   :  { %8741 = vpow2.f32 %v6590_v14 }
 0x44f   :  { %8743 = vpow2.f32 %v6592_v50  ;;  %v6739_v60 = vadd.f32 %v8728_v3, %v6738_v18  ;;  %v6602_v50 = vmul.f32 1.442695, %v6342_v28  ;;  %v10909_v18 = vld [vmem:[#allocation115_spill] sm:$0xff]  ;;  %v6606_v28 = vmul.f32 1.442695, %v6344_v11 }
 0x450   :  { %8745 = vpow2.f32 %v6594_v12  ;;  %v6345_v3 = vsub.f32 %v10909_v18, %v9587_v36 }
 0x451   :  { %8747 = vpow2.f32 %v6596_v55  ;;  %v6740_v14 = vadd.f32 %v8730_v22, %v6739_v60  ;;  %v10910_v22 = vld [vmem:[#allocation116_spill] sm:$0xff] }
 0x452   :  { %8749 = vpow2.f32 %v6598_v44  ;;  %v6346_v62 = vsub.f32 %v10910_v22, %v9587_v36 }
 0x453   :  { %8751 = vpow2.f32 %v6600_v15  ;;  %v6608_v15 = vmul.f32 1.442695, %v6345_v3 }
 0x454   :  { %8753 = vpow2.f32 %v6602_v50  ;;  %v10912_v50 = vld [vmem:[#allocation117_spill] sm:$0xff] }
 0x455   :  { %v8732_v41 = vpop.eup %8731  ;;  %8755 = vpow2.f32 %v6604_v59 }
 0x456   :  { %v8734_v34 = vpop.eup %8733  ;;  %v7062_v8 = vmul.f32 0.6931472, %v8732_v41  ;;  %8757 = vpow2.f32 %v6606_v28 }
 0x457   :  { %v6741_v9 = vadd.f32 %v8734_v34, %v6740_v14  ;;  %v8736_v17 = vpop.eup %8735  ;;  %8759 = vpow2.f32 %v6608_v15 }
 0x458   :  { %v7065_v24 = vadd.f32 %v7062_v8, %v9525_v57 }
 0x459   :  { %v8738_v12 = vpop.eup %8737  ;;  %v6742_v55 = vadd.f32 %v8736_v17, %v6741_v9  ;;  %v6347_v17 = vsub.f32 %v10911_v63, %v9587_v36  ;;  %v6348_v9 = vsub.f32 %v10912_v50, %v9587_v36 }
 0x45a   :  { %v8740_v54 = vpop.eup %8739  ;;  %v7067_v60 = vsub.f32 %v9504_v48, %v7065_v24  ;;  %v7064_v41 = vmul.f32 0.6931472, %v8738_v12  ;;  %v10913_v12 = vld [vmem:[#allocation120_spill] sm:$0xff] }
 0x45b   :  { %v6743_v44 = vadd.f32 %v8740_v54, %v6742_v55  ;;  %v8742_v14 = vpop.eup %8741  ;;  %v6349_v3 = vsub.f32 %v10913_v12, %v9587_v36  ;;  %v6612_v55 = vmul.f32 1.442695, %v6347_v17 }
 0x45c   :  { %v7069_v57 = vsel %vm7044_vm1, %v7067_v60, %v9499_v30  ;;  %v7066_v8 = vadd.f32 %v7064_v41, %v9533_v31  ;;  %v8744_v34 = vpop.eup %8743  ;;  %v6610_v30 = vmul.f32 1.442695, %v6346_v62  ;;  %v6350_v62 = vsub.f32 %v9478_v61, %v9587_v36 }
 0x45d   :  { %v6744_v48 = vadd.f32 %v8742_v14, %v6743_v44  ;;  %7071 = vst [vmem:[%s10505_s4] sm:$0xff] %v7069_v57  ;;  %v8746_v31 = vpop.eup %8745  ;;  %v6614_v60 = vmul.f32 1.442695, %v6348_v9  ;;  %v6352_v57 = vsub.f32 %v9484_v49, %v9587_v36 }
 0x45e   :  { %v7068_v11 = vsub.f32 %v9512_v45, %v7066_v8  ;;  %v8748_v45 = vpop.eup %8747  ;;  %8761 = vpow2.f32 %v6610_v30  ;;  %v6618_v8 = vmul.f32 1.442695, %v6350_v62 }
 0x45f   :  { %v6745_v24 = vadd.f32 %v8744_v34, %v6744_v48  ;;  %v8750_v28 = vpop.eup %8749  ;;  %8763 = vpow2.f32 %v6612_v55  ;;  %v6353_v48 = vsub.f32 %v9491_v4, %v9587_v36  ;;  %v6620_v34 = vmul.f32 1.442695, %v6351_v23 }
 0x460   :  { %v7070_v59 = vsel %vm7044_vm1, %v7068_v11, %v9507_v21  ;;  %v6616_v21 = vmul.f32 1.442695, %v6349_v3  ;;  %v8752_v14 = vpop.eup %8751  ;;  %8765 = vpow2.f32 %v6614_v60  ;;  %v6622_v30 = vmul.f32 1.442695, %v6352_v57 }
 0x461   :  { %v6746_v54 = vadd.f32 %v8746_v31, %v6745_v24  ;;  %7072 = vst [vmem:[%s10505_s4 + $0x8] sm:$0xff] %v7070_v59  ;;  %v8754_v15 = vpop.eup %8753  ;;  %v6624_v59 = vmul.f32 1.442695, %v6353_v48 }
 0x462   :  { %8767 = vpow2.f32 %v6616_v21  ;;  %v8756_v9 = vpop.eup %8755 }
 0x463   :  { %v6747_v41 = vadd.f32 %v8748_v45, %v6746_v54  ;;  %8769 = vpow2.f32 %v6618_v8  ;;  %v8758_v31 = vpop.eup %8757 }
 0x464   :  { %8771 = vpow2.f32 %v6620_v34  ;;  %v8760_v55 = vpop.eup %8759 }
 0x465   :  { %v6748_v44 = vadd.f32 %v8750_v28, %v6747_v41  ;;  %8773 = vpow2.f32 %v6622_v30 }
 0x466   :  { %8775 = vpow2.f32 %v6624_v59 }
 0x467   :  { %v6749_v17 = vadd.f32 %v8752_v14, %v6748_v44 }
 0x469   :  { %v6750_v11 = vadd.f32 %v8754_v15, %v6749_v17 }
 0x46b   :  { %v6751_v24 = vadd.f32 %v8756_v9, %v6750_v11  ;;  %v8762_v45 = vpop.eup %8761 }
 0x46c   :  { %v8764_v60 = vpop.eup %8763 }
 0x46d   :  { %v6752_v3 = vadd.f32 %v8758_v31, %v6751_v24  ;;  %v8766_v28 = vpop.eup %8765 }
 0x46f   :  { %v6753_v54 = vadd.f32 %v8760_v55, %v6752_v3  ;;  %v8768_v23 = vpop.eup %8767  ;;  %v10914_v55 = vld [vmem:[#allocation9_spill] sm:$0xff] }
 0x470   :  { %v8770_v14 = vpop.eup %8769 }
 0x471   :  { %v6754_v62 = vadd.f32 %v8762_v45, %v6753_v54  ;;  %v8772_v57 = vpop.eup %8771  ;;  %v10915_v45 = vld [vmem:[#allocation10_spill] sm:$0xff] }
 0x472   :  { %v8774_v15 = vpop.eup %8773 }
 0x473   :  { %v6755_v41 = vadd.f32 %v8764_v60, %v6754_v62  ;;  %v8776_v48 = vpop.eup %8775 }
 0x475   :  { %v6756_v21 = vadd.f32 %v8766_v28, %v6755_v41  ;;  %v10916_v41 = vld [vmem:[#allocation17_spill] sm:$0xff] }
 0x477   :  { %v6757_v44 = vadd.f32 %v8768_v23, %v6756_v21 }
 0x479   :  { %v6758_v8 = vadd.f32 %v8770_v14, %v6757_v44  ;;  %v10920_v14 = vld [vmem:[#allocation25_spill] sm:$0xff] }
 0x47b   :  { %v6759_v17 = vadd.f32 %v8772_v57, %v6758_v8  ;;  %v10921_v57 = vld [vmem:[#allocation23_spill] sm:$0xff] }
 0x47d   :  { %v6760_v34 = vadd.f32 %v8774_v15, %v6759_v17 }
 0x47f   :  { %v6761_v11 = vadd.f32 %v8776_v48, %v6760_v34  ;;  %v10923_v34 = vld [vmem:[#allocation29_spill] sm:$0xff] }
 0x481   :  { %6762 = vadd.xlane.f32.xlu1 %v6761_v11 }
 0x4ca   :  { %v6694_v9 = vpop.xlane.xlu0 %6693 }
 0x4cb   :  { %8777 = vlog2.f32 %v6694_v9 }
 0x4d8   :  { %v8778_v30 = vpop.eup %8777 }
 0x4d9   :  { %v6765_v24 = vmul.f32 0.6931472, %v8778_v30 }
 0x4db   :  { %v9816_v31 = vadd.f32 %v6765_v24, %v9515_v26  ;;  %v10917_v26 = vld [vmem:[#allocation15_spill] sm:$0xff] }
 0x4dd   :  { %v6770_v59 = vsub.f32 %v8975_v51, %v9816_v31  ;;  %v6771_v3 = vsub.f32 %v8979_v53, %v9816_v31  ;;  %v6772_v54 = vsub.f32 %v10914_v55, %v9816_v31  ;;  %v6773_v62 = vsub.f32 %v10915_v45, %v9816_v31  ;;  %v10918_v51 = vld [vmem:[#allocation19_spill] sm:$0xff]  ;;  %v10919_v53 = vld [vmem:[#allocation21_spill] sm:$0xff]  ;;  %v10927_v55 = vld [vmem:[#allocation48_spill] sm:$0xff] }
 0x4de   :  { %v6774_v60 = vsub.f32 %v9000_v6, %v9816_v31  ;;  %v6775_v28 = vsub.f32 %v10916_v41, %v9816_v31  ;;  %v6776_v21 = vsub.f32 %v10917_v26, %v9816_v31  ;;  %v6777_v23 = vsub.f32 %v10918_v51, %v9816_v31  ;;  %v10922_v6 = vld [vmem:[#allocation27_spill] sm:$0xff]  ;;  %v10928_v45 = vld [vmem:[#allocation46_spill] sm:$0xff] }
 0x4df   :  { %v6778_v44 = vsub.f32 %v10919_v53, %v9816_v31  ;;  %v6779_v8 = vsub.f32 %v10920_v14, %v9816_v31  ;;  %v6780_v17 = vsub.f32 %v10921_v57, %v9816_v31  ;;  %v6781_v15 = vsub.f32 %v10922_v6, %v9816_v31  ;;  %6906 = vst [vmem:[%s10504_s3] sm:$0xff] %v6770_v59  ;;  %v10925_v59 = vld [vmem:[#allocation42_spill] sm:$0xff] }
 0x4e0   :  { %6907 = vst [vmem:[%s10504_s3 + $0x8] sm:$0xff] %v6771_v3  ;;  %6908 = vst [vmem:[%s10504_s3 + $0x10] sm:$0xff] %v6772_v54  ;;  %v6782_v48 = vsub.f32 %v10923_v34, %v9816_v31  ;;  %v6783_v11 = vsub.f32 %v9100_v33, %v9816_v31  ;;  %v6784_v9 = vsub.f32 %v9087_v7, %v9816_v31 }
 0x4e1   :  { %6909 = vst [vmem:[%s10504_s3 + $0x18] sm:$0xff] %v6773_v62  ;;  %v6785_v30 = vsub.f32 %v9111_v42, %v9816_v31  ;;  %6910 = vst [vmem:[%s10504_s3 + $0x20] sm:$0xff] %v6774_v60  ;;  %v6786_v7 = vsub.f32 %v9115_v39, %v9816_v31  ;;  %v6787_v33 = vsub.f32 %v9137_v40, %v9816_v31  ;;  %v10929_v60 = vld [vmem:[#allocation50_spill] sm:$0xff] }
 0x4e2   :  { %6911 = vst [vmem:[%s10504_s3 + $0x28] sm:$0xff] %v6775_v28  ;;  %6912 = vst [vmem:[%s10504_s3 + $0x30] sm:$0xff] %v6776_v21  ;;  %v6788_v42 = vsub.f32 %v9125_v10, %v9816_v31  ;;  %v6789_v24 = vsub.f32 %v9147_v13, %v9816_v31  ;;  %v6790_v39 = vsub.f32 %v9151_v43, %v9816_v31  ;;  %v10924_v10 = vld [vmem:[#allocation39_spill] sm:$0xff]  ;;  %v10926_v43 = vld [vmem:[#allocation44_spill] sm:$0xff] }
 0x4e3   :  { %6913 = vst [vmem:[%s10504_s3 + $0x38] sm:$0xff] %v6777_v23  ;;  %6914 = vst [vmem:[%s10504_s3 + $0x40] sm:$0xff] %v6778_v44  ;;  %v6791_v13 = vsub.f32 %v9169_v5, %v9816_v31  ;;  %v6792_v40 = vsub.f32 %v10924_v10, %v9816_v31  ;;  %v6793_v3 = vsub.f32 %v10925_v59, %v9816_v31  ;;  %v10930_v28 = vld [vmem:[#allocation52_spill] sm:$0xff]  ;;  %v10932_v23 = vld [vmem:[#allocation54_spill] sm:$0xff] }
 0x4e4   :  { %6915 = vst [vmem:[%s10504_s3 + $0x48] sm:$0xff] %v6779_v8  ;;  %6916 = vst [vmem:[%s10504_s3 + $0x50] sm:$0xff] %v6780_v17  ;;  %v6794_v5 = vsub.f32 %v10926_v43, %v9816_v31  ;;  %v6795_v54 = vsub.f32 %v10927_v55, %v9816_v31  ;;  %v6796_v62 = vsub.f32 %v10928_v45, %v9816_v31  ;;  %v10931_v21 = vld [vmem:[#allocation56_spill] sm:$0xff]  ;;  %v10933_v44 = vld [vmem:[#allocation58_spill] sm:$0xff] }
 0x4e5   :  { %6917 = vst [vmem:[%s10504_s3 + $0x58] sm:$0xff] %v6781_v15  ;;  %6918 = vst [vmem:[%s10504_s3 + $0x60] sm:$0xff] %v6782_v48  ;;  %v6797_v41 = vsub.f32 %v10929_v60, %v9816_v31  ;;  %v6798_v26 = vsub.f32 %v10930_v28, %v9816_v31  ;;  %v6799_v51 = vsub.f32 %v10931_v21, %v9816_v31  ;;  %v10934_v8 = vld [vmem:[#allocation60_spill] sm:$0xff]  ;;  %v10936_v15 = vld [vmem:[#allocation62_spill] sm:$0xff] }
 0x4e6   :  { %6919 = vst [vmem:[%s10504_s3 + $0x68] sm:$0xff] %v6783_v11  ;;  %6920 = vst [vmem:[%s10504_s3 + $0x70] sm:$0xff] %v6784_v9  ;;  %v6800_v53 = vsub.f32 %v10932_v23, %v9816_v31  ;;  %v6801_v14 = vsub.f32 %v10933_v44, %v9816_v31  ;;  %v6802_v57 = vsub.f32 %v10934_v8, %v9816_v31  ;;  %v10935_v17 = vld [vmem:[#allocation64_spill] sm:$0xff]  ;;  %v10937_v48 = vld [vmem:[#allocation66_spill] sm:$0xff] }
 0x4e7   :  { %6921 = vst [vmem:[%s10504_s3 + $0x78] sm:$0xff] %v6785_v30  ;;  %6922 = vst [vmem:[%s10504_s3 + $0x80] sm:$0xff] %v6786_v7  ;;  %v6803_v6 = vsub.f32 %v10935_v17, %v9816_v31  ;;  %v6804_v34 = vsub.f32 %v10936_v15, %v9816_v31  ;;  %v6805_v11 = vsub.f32 %v10937_v48, %v9816_v31  ;;  %v10938_v9 = vld [vmem:[#allocation68_spill] sm:$0xff]  ;;  %v10944_v43 = vld [vmem:[#allocation78_spill] sm:$0xff] }
 0x4e8   :  { %6923 = vst [vmem:[%s10504_s3 + $0x88] sm:$0xff] %v6787_v33  ;;  %6924 = vst [vmem:[%s10504_s3 + $0x90] sm:$0xff] %v6788_v42  ;;  %v6806_v30 = vsub.f32 %v10938_v9, %v9816_v31  ;;  %v10939_v7 = vld [vmem:[#allocation72_spill] sm:$0xff]  ;;  %v10940_v42 = vld [vmem:[#allocation70_spill] sm:$0xff]  ;;  %v6820_v8 = vsub.f32 %v10863_v47, %v9816_v31 }
 0x4e9   :  { %6925 = vst [vmem:[%s10504_s3 + $0x98] sm:$0xff] %v6789_v24  ;;  %6926 = vst [vmem:[%s10504_s3 + $0xa0] sm:$0xff] %v6790_v39  ;;  %v6807_v33 = vsub.f32 %v10939_v7, %v9816_v31  ;;  %v6808_v24 = vsub.f32 %v10940_v42, %v9816_v31  ;;  %v10941_v39 = vld [vmem:[#allocation74_spill] sm:$0xff]  ;;  %v10942_v10 = vld [vmem:[#allocation76_spill] sm:$0xff]  ;;  %v6826_v7 = vsub.f32 %v10874_v37, %v9816_v31 }
 0x4ea   :  { %6927 = vst [vmem:[%s10504_s3 + $0xa8] sm:$0xff] %v6791_v13  ;;  %6928 = vst [vmem:[%s10504_s3 + $0xb0] sm:$0xff] %v6792_v40  ;;  %v6809_v13 = vsub.f32 %v10941_v39, %v9816_v31  ;;  %v6810_v40 = vsub.f32 %v10942_v10, %v9816_v31  ;;  %v10943_v59 = vld [vmem:[#allocation80_spill] sm:$0xff]  ;;  %v10945_v55 = vld [vmem:[#allocation82_spill] sm:$0xff]  ;;  %v6829_v39 = vsub.f32 %v9430_v38, %v9816_v31 }
 0x4eb   :  { %6929 = vst [vmem:[%s10504_s3 + $0xb8] sm:$0xff] %v6793_v3  ;;  %6930 = vst [vmem:[%s10504_s3 + $0xc0] sm:$0xff] %v6794_v5  ;;  %v6811_v3 = vsub.f32 %v10943_v59, %v9816_v31  ;;  %v6812_v5 = vsub.f32 %v10944_v43, %v9816_v31  ;;  %v10946_v45 = vld [vmem:[#allocation84_spill] sm:$0xff]  ;;  %v10948_v28 = vld [vmem:[#allocation86_spill] sm:$0xff]  ;;  %v6830_v37 = vsub.f32 %v9434_v25, %v9816_v31 }
 0x4ec   :  { %6931 = vst [vmem:[%s10504_s3 + $0xc8] sm:$0xff] %v6795_v54  ;;  %6932 = vst [vmem:[%s10504_s3 + $0xd0] sm:$0xff] %v6796_v62  ;;  %v6813_v54 = vsub.f32 %v10945_v55, %v9816_v31  ;;  %v6814_v62 = vsub.f32 %v10946_v45, %v9816_v31  ;;  %v10947_v60 = vld [vmem:[#allocation88_spill] sm:$0xff]  ;;  %v10949_v21 = vld [vmem:[#allocation90_spill] sm:$0xff]  ;;  %v6831_v38 = vsub.f32 %v9450_v1, %v9816_v31 }
 0x4ed   :  { %6933 = vst [vmem:[%s10504_s3 + $0xd8] sm:$0xff] %v6797_v41  ;;  %6934 = vst [vmem:[%s10504_s3 + $0xe0] sm:$0xff] %v6798_v26  ;;  %v6815_v41 = vsub.f32 %v10947_v60, %v9816_v31  ;;  %v6816_v26 = vsub.f32 %v10948_v28, %v9816_v31  ;;  %v10950_v23 = vld [vmem:[#allocation92_spill] sm:$0xff]  ;;  %v10955_v48 = vld [vmem:[#allocation102_spill] sm:$0xff]  ;;  %v6834_v25 = vsub.f32 %v9466_v46, %v9816_v31 }
 0x4ee   :  { %6935 = vst [vmem:[%s10504_s3 + $0xe8] sm:$0xff] %v6799_v51  ;;  %6936 = vst [vmem:[%s10504_s3 + $0xf0] sm:$0xff] %v6800_v53  ;;  %v6817_v51 = vsub.f32 %v10949_v21, %v9816_v31  ;;  %v6818_v53 = vsub.f32 %v10950_v23, %v9816_v31  ;;  %v10951_v44 = vld [vmem:[#allocation96_spill] sm:$0xff]  ;;  %v10956_v9 = vld [vmem:[#allocation106_spill] sm:$0xff] }
 0x4ef   :  { %6937 = vst [vmem:[%s10504_s3 + $0xf8] sm:$0xff] %v6801_v14  ;;  %6938 = vst [vmem:[%s10504_s3 + $0x100] sm:$0xff] %v6802_v57  ;;  %v6819_v14 = vsub.f32 %v10951_v44, %v9816_v31  ;;  %v10952_v57 = vld [vmem:[#allocation98_spill] sm:$0xff]  ;;  %v10953_v47 = vld [vmem:[#allocation100_spill] sm:$0xff] }
 0x4f0   :  { %6939 = vst [vmem:[%s10504_s3 + $0x108] sm:$0xff] %v6803_v6  ;;  %6940 = vst [vmem:[%s10504_s3 + $0x110] sm:$0xff] %v6804_v34  ;;  %v6821_v17 = vsub.f32 %v10952_v57, %v9816_v31  ;;  %v6822_v6 = vsub.f32 %v10953_v47, %v9816_v31  ;;  %v10954_v15 = vld [vmem:[#allocation104_spill] sm:$0xff]  ;;  %v10958_v1 = vld [vmem:[#allocation119_spill] sm:$0xff] }
 0x4f1   :  { %6941 = vst [vmem:[%s10504_s3 + $0x118] sm:$0xff] %v6805_v11  ;;  %6942 = vst [vmem:[%s10504_s3 + $0x120] sm:$0xff] %v6806_v30  ;;  %v6823_v34 = vsub.f32 %v10954_v15, %v9816_v31  ;;  %v6824_v11 = vsub.f32 %v10955_v48, %v9816_v31  ;;  %v6825_v30 = vsub.f32 %v10956_v9, %v9816_v31  ;;  %v10959_v10 = vld [vmem:[#allocation121_spill] sm:$0xff]  ;;  %v10967_v23 = vld [vmem:[#allocation22_spill] sm:$0xff] }
 0x4f2   :  { %6943 = vst [vmem:[%s10504_s3 + $0x128] sm:$0xff] %v6807_v33  ;;  %6944 = vst [vmem:[%s10504_s3 + $0x130] sm:$0xff] %v6808_v24  ;;  %v10957_v33 = vld [vmem:[#allocation112_spill] sm:$0xff]  ;;  %v6828_v24 = vsub.f32 %v10877_v52, %v9816_v31  ;;  %v6832_v52 = vsub.f32 %v9442_v58, %v9816_v31  ;;  %v6835_v58 = vsub.f32 %v9476_v32, %v9816_v31 }
 0x4f3   :  { %6945 = vst [vmem:[%s10504_s3 + $0x138] sm:$0xff] %v6809_v13  ;;  %6946 = vst [vmem:[%s10504_s3 + $0x140] sm:$0xff] %v6810_v40  ;;  %v6827_v42 = vsub.f32 %v10957_v33, %v9816_v31  ;;  %v6833_v13 = vsub.f32 %v9459_v2, %v9816_v31  ;;  %v6836_v2 = vsub.f32 %v10958_v1, %v9816_v31  ;;  %v10968_v44 = vld [vmem:[#allocation24_spill] sm:$0xff]  ;;  %v10975_v33 = vld [vmem:[#allocation34_spill] sm:$0xff] }
 0x4f4   :  { %6947 = vst [vmem:[%s10504_s3 + $0x148] sm:$0xff] %v6811_v3  ;;  %6948 = vst [vmem:[%s10504_s3 + $0x150] sm:$0xff] %v6812_v5  ;;  %v6837_v40 = vsub.f32 %v10959_v10, %v9816_v31  ;;  %v10960_v3 = vld [vmem:[#allocation13_spill] sm:$0xff]  ;;  %v10961_v5 = vld [vmem:[#allocation11_spill] sm:$0xff] }
 0x4f5   :  { %6949 = vst [vmem:[%s10504_s3 + $0x158] sm:$0xff] %v6813_v54  ;;  %6950 = vst [vmem:[%s10504_s3 + $0x160] sm:$0xff] %v6814_v62  ;;  %v10962_v54 = vld [vmem:[#allocation14_spill] sm:$0xff]  ;;  %v10963_v62 = vld [vmem:[#allocation12_spill] sm:$0xff] }
 0x4f6   :  { %6951 = vst [vmem:[%s10504_s3 + $0x168] sm:$0xff] %v6815_v41  ;;  %6952 = vst [vmem:[%s10504_s3 + $0x170] sm:$0xff] %v6816_v26  ;;  %v10964_v41 = vld [vmem:[#allocation16_spill] sm:$0xff]  ;;  %v10981_v10 = vld [vmem:[#allocation43_spill] sm:$0xff] }
 0x4f7   :  { %6953 = vst [vmem:[%s10504_s3 + $0x178] sm:$0xff] %v6817_v51  ;;  %6954 = vst [vmem:[%s10504_s3 + $0x180] sm:$0xff] %v6818_v53  ;;  %v10965_v26 = vld [vmem:[#allocation20_spill] sm:$0xff] }
 0x4f8   :  { %6955 = vst [vmem:[%s10504_s3 + $0x188] sm:$0xff] %v6819_v14  ;;  %6956 = vst [vmem:[%s10504_s3 + $0x190] sm:$0xff] %v6820_v8  ;;  %v10969_v8 = vld [vmem:[#allocation28_spill] sm:$0xff] }
 0x4f9   :  { %6957 = vst [vmem:[%s10504_s3 + $0x198] sm:$0xff] %v6821_v17  ;;  %6958 = vst [vmem:[%s10504_s3 + $0x1a0] sm:$0xff] %v6822_v6  ;;  %v10970_v17 = vld [vmem:[#allocation26_spill] sm:$0xff]  ;;  %v10980_v1 = vld [vmem:[#allocation40_spill] sm:$0xff] }
 0x4fa   :  { %6959 = vst [vmem:[%s10504_s3 + $0x1a8] sm:$0xff] %v6823_v34  ;;  %6960 = vst [vmem:[%s10504_s3 + $0x1b0] sm:$0xff] %v6824_v11  ;;  %v10971_v6 = vld [vmem:[#allocation30_spill] sm:$0xff]  ;;  %v10972_v34 = vld [vmem:[#allocation31_spill] sm:$0xff] }
 0x4fb   :  { %6961 = vst [vmem:[%s10504_s3 + $0x1b8] sm:$0xff] %v6825_v30  ;;  %6962 = vst [vmem:[%s10504_s3 + $0x1c0] sm:$0xff] %v6826_v7  ;;  %v10973_v11 = vld [vmem:[#allocation33_spill] sm:$0xff]  ;;  %v10974_v30 = vld [vmem:[#allocation32_spill] sm:$0xff] }
 0x4fc   :  { %6963 = vst [vmem:[%s10504_s3 + $0x1c8] sm:$0xff] %v6827_v42  ;;  %6964 = vst [vmem:[%s10504_s3 + $0x1d0] sm:$0xff] %v6828_v24  ;;  %v10976_v24 = vld [vmem:[#allocation35_spill] sm:$0xff] }
 0x4fd   :  { %6965 = vst [vmem:[%s10504_s3 + $0x1d8] sm:$0xff] %v6829_v39  ;;  %6966 = vst [vmem:[%s10504_s3 + $0x1e0] sm:$0xff] %v6830_v37  ;;  %v10977_v37 = vld [vmem:[#allocation37_spill] sm:$0xff] }
 0x4fe   :  { %6967 = vst [vmem:[%s10504_s3 + $0x1e8] sm:$0xff] %v6831_v38  ;;  %6968 = vst [vmem:[%s10504_s3 + $0x1f0] sm:$0xff] %v6832_v52  ;;  %v10978_v52 = vld [vmem:[#allocation36_spill] sm:$0xff] }
 0x4ff   :  { %6969 = vst [vmem:[%s10504_s3 + $0x1f8] sm:$0xff] %v6833_v13  ;;  %6970 = vst [vmem:[%s10504_s3 + $0x200] sm:$0xff] %v6834_v25  ;;  %v10979_v25 = vld [vmem:[#allocation38_spill] sm:$0xff] }
 0x500   :  { %6971 = vst [vmem:[%s10504_s3 + $0x208] sm:$0xff] %v6835_v58  ;;  %6972 = vst [vmem:[%s10504_s3 + $0x210] sm:$0xff] %v6836_v2 }
 0x501   :  { %6973 = vst [vmem:[%s10504_s3 + $0x218] sm:$0xff] %v6837_v40 }
 0x50a   :  { %v6763_v32 = vpop.xlane.xlu1 %6762 }
 0x50b   :  { %8779 = vlog2.f32 %v6763_v32  ;;  %v10982_v32 = vld [vmem:[#allocation41_spill] sm:$0xff] }
 0x518   :  { %v8780_v46 = vpop.eup %8779 }
 0x519   :  { %v6767_v31 = vmul.f32 0.6931472, %v8780_v46 }
 0x51b   :  { %v10159_v59 = vadd.f32 %v6767_v31, %v9587_v36  ;;  %v10966_v36 = vld [vmem:[#allocation18_spill] sm:$0xff]  ;;  %v10983_v31 = vld [vmem:[#allocation45_spill] sm:$0xff] }
 0x51d   :  { %v6838_v43 = vsub.f32 %v10960_v3, %v10159_v59  ;;  %v6839_v55 = vsub.f32 %v10961_v5, %v10159_v59  ;;  %v6840_v45 = vsub.f32 %v10962_v54, %v10159_v59  ;;  %v6841_v60 = vsub.f32 %v10963_v62, %v10159_v59 }
 0x51e   :  { %v6842_v28 = vsub.f32 %v10964_v41, %v10159_v59  ;;  %v6843_v21 = vsub.f32 %v10965_v26, %v10159_v59  ;;  %v6844_v51 = vsub.f32 %v10966_v36, %v10159_v59  ;;  %v6845_v53 = vsub.f32 %v10967_v23, %v10159_v59 }
 0x51f   :  { %v6846_v14 = vsub.f32 %v10968_v44, %v10159_v59  ;;  %v6847_v57 = vsub.f32 %v10969_v8, %v10159_v59  ;;  %v6848_v47 = vsub.f32 %v10970_v17, %v10159_v59  ;;  %v6849_v15 = vsub.f32 %v10971_v6, %v10159_v59  ;;  %6974 = vst [vmem:[%s10504_s3 + $0x220] sm:$0xff] %v6838_v43  ;;  %v10984_v43 = vld [vmem:[#allocation47_spill] sm:$0xff] }
 0x520   :  { %6975 = vst [vmem:[%s10504_s3 + $0x228] sm:$0xff] %v6839_v55  ;;  %6976 = vst [vmem:[%s10504_s3 + $0x230] sm:$0xff] %v6840_v45  ;;  %v6850_v48 = vsub.f32 %v10972_v34, %v10159_v59  ;;  %v6851_v9 = vsub.f32 %v10973_v11, %v10159_v59  ;;  %v6852_v7 = vsub.f32 %v10974_v30, %v10159_v59  ;;  %v10985_v55 = vld [vmem:[#allocation51_spill] sm:$0xff]  ;;  %v10986_v45 = vld [vmem:[#allocation49_spill] sm:$0xff] }
 0x521   :  { %6977 = vst [vmem:[%s10504_s3 + $0x238] sm:$0xff] %v6841_v60  ;;  %v6853_v42 = vsub.f32 %v10975_v33, %v10159_v59  ;;  %6978 = vst [vmem:[%s10504_s3 + $0x240] sm:$0xff] %v6842_v28  ;;  %v6854_v39 = vsub.f32 %v10976_v24, %v10159_v59  ;;  %v6855_v38 = vsub.f32 %v10977_v37, %v10159_v59  ;;  %v10987_v60 = vld [vmem:[#allocation53_spill] sm:$0xff]  ;;  %v10988_v28 = vld [vmem:[#allocation55_spill] sm:$0xff] }
 0x522   :  { %6979 = vst [vmem:[%s10504_s3 + $0x248] sm:$0xff] %v6843_v21  ;;  %6980 = vst [vmem:[%s10504_s3 + $0x250] sm:$0xff] %v6844_v51  ;;  %v6856_v13 = vsub.f32 %v10978_v52, %v10159_v59  ;;  %v6857_v58 = vsub.f32 %v10979_v25, %v10159_v59  ;;  %v6858_v2 = vsub.f32 %v10980_v1, %v10159_v59  ;;  %v10989_v21 = vld [vmem:[#allocation59_spill] sm:$0xff]  ;;  %v10990_v51 = vld [vmem:[#allocation57_spill] sm:$0xff] }
 0x523   :  { %6981 = vst [vmem:[%s10504_s3 + $0x258] sm:$0xff] %v6845_v53  ;;  %6982 = vst [vmem:[%s10504_s3 + $0x260] sm:$0xff] %v6846_v14  ;;  %v6859_v40 = vsub.f32 %v10981_v10, %v10159_v59  ;;  %v6860_v46 = vsub.f32 %v10982_v32, %v10159_v59  ;;  %v6861_v3 = vsub.f32 %v10983_v31, %v10159_v59  ;;  %v10991_v53 = vld [vmem:[#allocation61_spill] sm:$0xff]  ;;  %v10992_v14 = vld [vmem:[#allocation63_spill] sm:$0xff] }
 0x524   :  { %6983 = vst [vmem:[%s10504_s3 + $0x268] sm:$0xff] %v6847_v57  ;;  %6984 = vst [vmem:[%s10504_s3 + $0x270] sm:$0xff] %v6848_v47  ;;  %v6862_v5 = vsub.f32 %v10984_v43, %v10159_v59  ;;  %v6863_v54 = vsub.f32 %v10985_v55, %v10159_v59  ;;  %v6864_v62 = vsub.f32 %v10986_v45, %v10159_v59  ;;  %v10993_v57 = vld [vmem:[#allocation67_spill] sm:$0xff]  ;;  %v10994_v47 = vld [vmem:[#allocation65_spill] sm:$0xff] }
 0x525   :  { %6985 = vst [vmem:[%s10504_s3 + $0x278] sm:$0xff] %v6849_v15  ;;  %6986 = vst [vmem:[%s10504_s3 + $0x280] sm:$0xff] %v6850_v48  ;;  %v6865_v41 = vsub.f32 %v10987_v60, %v10159_v59  ;;  %v6866_v26 = vsub.f32 %v10988_v28, %v10159_v59  ;;  %v6867_v36 = vsub.f32 %v10989_v21, %v10159_v59  ;;  %v10995_v15 = vld [vmem:[#allocation69_spill] sm:$0xff] }
 0x526   :  { %6987 = vst [vmem:[%s10504_s3 + $0x288] sm:$0xff] %v6851_v9  ;;  %6988 = vst [vmem:[%s10504_s3 + $0x290] sm:$0xff] %v6852_v7  ;;  %v6868_v23 = vsub.f32 %v10990_v51, %v10159_v59  ;;  %v6869_v44 = vsub.f32 %v10991_v53, %v10159_v59  ;;  %v6870_v8 = vsub.f32 %v10992_v14, %v10159_v59  ;;  %v10998_v7 = vld [vmem:[#allocation81_spill] sm:$0xff] }
 0x527   :  { %6989 = vst [vmem:[%s10504_s3 + $0x298] sm:$0xff] %v6853_v42  ;;  %6990 = vst [vmem:[%s10504_s3 + $0x2a0] sm:$0xff] %v6854_v39  ;;  %v6871_v17 = vsub.f32 %v10993_v57, %v10159_v59  ;;  %v6872_v6 = vsub.f32 %v10994_v47, %v10159_v59  ;;  %v6873_v34 = vsub.f32 %v10995_v15, %v10159_v59  ;;  %v10999_v42 = vld [vmem:[#allocation85_spill] sm:$0xff]  ;;  %v11000_v39 = vld [vmem:[#allocation87_spill] sm:$0xff] }
 0x528   :  { %6991 = vst [vmem:[%s10504_s3 + $0x2a8] sm:$0xff] %v6855_v38  ;;  %6992 = vst [vmem:[%s10504_s3 + $0x2b0] sm:$0xff] %v6856_v13  ;;  %v6874_v48 = vsub.f32 %v10887_v27, %v10159_v59  ;;  %v6875_v11 = vsub.f32 %v10888_v20, %v10159_v59  ;;  %v6876_v9 = vsub.f32 %v10889_v0, %v10159_v59  ;;  %v10996_v27 = vld [vmem:[#allocation79_spill] sm:$0xff]  ;;  %v11008_v55 = vld [vmem:[#allocation109_spill] sm:$0xff] }
 0x529   :  { %6993 = vst [vmem:[%s10504_s3 + $0x2b8] sm:$0xff] %v6857_v58  ;;  %6994 = vst [vmem:[%s10504_s3 + $0x2c0] sm:$0xff] %v6858_v2  ;;  %v6877_v30 = vsub.f32 %v10890_v19, %v10159_v59  ;;  %v6878_v20 = vsub.f32 %v10996_v27, %v10159_v59  ;;  %v10997_v0 = vld [vmem:[#allocation83_spill] sm:$0xff]  ;;  %v6880_v33 = vsub.f32 %v10998_v7, %v10159_v59  ;;  %v11004_v2 = vld [vmem:[#allocation97_spill] sm:$0xff] }
 0x52a   :  { %6995 = vst [vmem:[%s10504_s3 + $0x2c8] sm:$0xff] %v6859_v40  ;;  %6996 = vst [vmem:[%s10504_s3 + $0x2d0] sm:$0xff] %v6860_v46  ;;  %v6879_v19 = vsub.f32 %v10997_v0, %v10159_v59  ;;  %v6881_v24 = vsub.f32 %v10999_v42, %v10159_v59  ;;  %v6882_v37 = vsub.f32 %v11000_v39, %v10159_v59  ;;  %v11001_v38 = vld [vmem:[#allocation91_spill] sm:$0xff]  ;;  %v11005_v40 = vld [vmem:[#allocation101_spill] sm:$0xff] }
 0x52b   :  { %6997 = vst [vmem:[%s10504_s3 + $0x2d8] sm:$0xff] %v6861_v3  ;;  %6998 = vst [vmem:[%s10504_s3 + $0x2e0] sm:$0xff] %v6862_v5  ;;  %v6883_v52 = vsub.f32 %v11001_v38, %v10159_v59  ;;  %v6884_v13 = vsub.f32 %v10897_v16, %v10159_v59  ;;  %v6885_v25 = vsub.f32 %v10898_v35, %v10159_v59  ;;  %v11002_v16 = vld [vmem:[#allocation95_spill] sm:$0xff] }
 0x52c   :  { %6999 = vst [vmem:[%s10504_s3 + $0x2e8] sm:$0xff] %v6863_v54  ;;  %7000 = vst [vmem:[%s10504_s3 + $0x2f0] sm:$0xff] %v6864_v62  ;;  %v6886_v58 = vsub.f32 %v11002_v16, %v10159_v59  ;;  %v11003_v35 = vld [vmem:[#allocation99_spill] sm:$0xff]  ;;  %v6888_v10 = vsub.f32 %v11004_v2, %v10159_v59  ;;  %v6889_v32 = vsub.f32 %v11005_v40, %v10159_v59  ;;  %v11010_v62 = vld [vmem:[#allocation114_spill] sm:$0xff] }
 0x52d   :  { %7001 = vst [vmem:[%s10504_s3 + $0x2f8] sm:$0xff] %v6865_v41  ;;  %7002 = vst [vmem:[%s10504_s3 + $0x300] sm:$0xff] %v6866_v26  ;;  %v6887_v1 = vsub.f32 %v11003_v35, %v10159_v59  ;;  %v11006_v46 = vld [vmem:[#allocation103_spill] sm:$0xff]  ;;  %v6892_v5 = vsub.f32 %v10905_v56, %v10159_v59  ;;  %v6893_v54 = vsub.f32 %v11008_v55, %v10159_v59  ;;  %v11011_v41 = vld [vmem:[#allocation113_spill] sm:$0xff] }
 0x52e   :  { %7003 = vst [vmem:[%s10504_s3 + $0x308] sm:$0xff] %v6867_v36  ;;  %7004 = vst [vmem:[%s10504_s3 + $0x310] sm:$0xff] %v6868_v23  ;;  %v6890_v31 = vsub.f32 %v11006_v46, %v10159_v59  ;;  %v11007_v3 = vld [vmem:[#allocation107_spill] sm:$0xff]  ;;  %v6895_v60 = vsub.f32 %v11010_v62, %v10159_v59  ;;  %v6896_v28 = vsub.f32 %v11011_v41, %v10159_v59 }
 0x52f   :  { %7005 = vst [vmem:[%s10504_s3 + $0x318] sm:$0xff] %v6869_v44  ;;  %7006 = vst [vmem:[%s10504_s3 + $0x320] sm:$0xff] %v6870_v8  ;;  %v6891_v43 = vsub.f32 %v11007_v3, %v10159_v59  ;;  %v11009_v56 = vld [vmem:[#allocation111_spill] sm:$0xff]  ;;  %v6897_v26 = vsub.f32 %v10909_v18, %v10159_v59  ;;  %v6898_v21 = vsub.f32 %v10910_v22, %v10159_v59 }
 0x530   :  { %7007 = vst [vmem:[%s10504_s3 + $0x328] sm:$0xff] %v6871_v17  ;;  %7008 = vst [vmem:[%s10504_s3 + $0x330] sm:$0xff] %v6872_v6  ;;  %v6894_v45 = vsub.f32 %v11009_v56, %v10159_v59  ;;  %v6899_v18 = vsub.f32 %v10911_v63, %v10159_v59  ;;  %v6900_v36 = vsub.f32 %v10912_v50, %v10159_v59 }
 0x531   :  { %7009 = vst [vmem:[%s10504_s3 + $0x338] sm:$0xff] %v6873_v34  ;;  %7010 = vst [vmem:[%s10504_s3 + $0x340] sm:$0xff] %v6874_v48  ;;  %v6901_v51 = vsub.f32 %v10913_v12, %v10159_v59  ;;  %v6902_v22 = vsub.f32 %v9478_v61, %v10159_v59  ;;  %v6903_v63 = vsub.f32 %v9488_v29, %v10159_v59 }
 0x532   :  { %7011 = vst [vmem:[%s10504_s3 + $0x348] sm:$0xff] %v6875_v11  ;;  %7012 = vst [vmem:[%s10504_s3 + $0x350] sm:$0xff] %v6876_v9  ;;  %v6904_v50 = vsub.f32 %v9484_v49, %v10159_v59  ;;  %v6905_v12 = vsub.f32 %v9491_v4, %v10159_v59 }
 0x533   :  { %7013 = vst [vmem:[%s10504_s3 + $0x358] sm:$0xff] %v6877_v30  ;;  %7014 = vst [vmem:[%s10504_s3 + $0x360] sm:$0xff] %v6878_v20 }
 0x534   :  { %7015 = vst [vmem:[%s10504_s3 + $0x368] sm:$0xff] %v6879_v19  ;;  %7016 = vst [vmem:[%s10504_s3 + $0x370] sm:$0xff] %v6880_v33 }
 0x535   :  { %7017 = vst [vmem:[%s10504_s3 + $0x378] sm:$0xff] %v6881_v24  ;;  %7018 = vst [vmem:[%s10504_s3 + $0x380] sm:$0xff] %v6882_v37 }
 0x536   :  { %7019 = vst [vmem:[%s10504_s3 + $0x388] sm:$0xff] %v6883_v52  ;;  %7020 = vst [vmem:[%s10504_s3 + $0x390] sm:$0xff] %v6884_v13 }
 0x537   :  { %7021 = vst [vmem:[%s10504_s3 + $0x398] sm:$0xff] %v6885_v25  ;;  %7022 = vst [vmem:[%s10504_s3 + $0x3a0] sm:$0xff] %v6886_v58 }
 0x538   :  { %7023 = vst [vmem:[%s10504_s3 + $0x3a8] sm:$0xff] %v6887_v1  ;;  %7024 = vst [vmem:[%s10504_s3 + $0x3b0] sm:$0xff] %v6888_v10 }
 0x539   :  { %7025 = vst [vmem:[%s10504_s3 + $0x3b8] sm:$0xff] %v6889_v32  ;;  %7026 = vst [vmem:[%s10504_s3 + $0x3c0] sm:$0xff] %v6890_v31 }
 0x53a   :  { %7027 = vst [vmem:[%s10504_s3 + $0x3c8] sm:$0xff] %v6891_v43  ;;  %7028 = vst [vmem:[%s10504_s3 + $0x3d0] sm:$0xff] %v6892_v5 }
 0x53b   :  { %7029 = vst [vmem:[%s10504_s3 + $0x3d8] sm:$0xff] %v6893_v54  ;;  %7030 = vst [vmem:[%s10504_s3 + $0x3e0] sm:$0xff] %v6894_v45 }
 0x53c   :  { %7031 = vst [vmem:[%s10504_s3 + $0x3e8] sm:$0xff] %v6895_v60  ;;  %7032 = vst [vmem:[%s10504_s3 + $0x3f0] sm:$0xff] %v6896_v28 }
 0x53d   :  { %7033 = vst [vmem:[%s10504_s3 + $0x3f8] sm:$0xff] %v6897_v26  ;;  %7034 = vst [vmem:[%s10504_s3 + $0x400] sm:$0xff] %v6898_v21 }
 0x53e   :  { %7035 = vst [vmem:[%s10504_s3 + $0x408] sm:$0xff] %v6899_v18  ;;  %7036 = vst [vmem:[%s10504_s3 + $0x410] sm:$0xff] %v6900_v36 }
 0x53f   :  { %7037 = vst [vmem:[%s10504_s3 + $0x418] sm:$0xff] %v6901_v51  ;;  %7038 = vst [vmem:[%s10504_s3 + $0x420] sm:$0xff] %v6902_v22 }
 0x540   :  { %7039 = vst [vmem:[%s10504_s3 + $0x428] sm:$0xff] %v6903_v63  ;;  %7040 = vst [vmem:[%s10504_s3 + $0x430] sm:$0xff] %v6904_v50 }
 0x541   :  { %7041 = vst [vmem:[%s10504_s3 + $0x438] sm:$0xff] %v6905_v12 }
 0x542   :  { %7081 = vsyncpa [#allocation4], 1 }
 0x543   :  { %7082 = vsyncpa [#allocation6], 1 }

</bundles_post_ra>
